<compile_context>
chip_gen: v5e
topology: v5e:2x2
jax: 0.10.0
libtpu: 0.0.40
codegen_flags: <defaults>
</compile_context>

<pallas_src>
import functools

import jax
import jax.numpy as jnp
from jax.experimental import pallas as pl
from jax.experimental.pallas import tpu as pltpu

LRELU_SLOPE = 0.2
BN_EPS = 1e-5
LANE = 128               # pad K / OC to the 128-lane vreg width
MAX_ROW_TILE = 4096      # cap on rows per grid step (2048-4096 sweet spot)
BLOCK_BYTES = 2 << 20    # ~2 MiB target for bf16 patch / weight blocks
VMEM_LIMIT = 32 * 1024 * 1024


def _round_up(x, m):
    return (x + m - 1) // m * m


# ---------------------------------------------------------------------------
# Pallas kernels
# ---------------------------------------------------------------------------
def _gemm_act_kernel(p_ref, w_ref, o_ref, acc_ref, *, act):
    """(row_tile, tk) x (tk, OCp) GEMM step with f32 VMEM accumulation.

    The contraction axis is the last grid axis ("arbitrary"); activation and
    the bf16 cast happen only on the final k step.
    """
    k = pl.program_id(1)

    @pl.when(k == 0)
    def _():
        acc_ref[...] = jnp.zeros_like(acc_ref)

    acc_ref[...] += jnp.dot(p_ref[...], w_ref[...],
                            preferred_element_type=jnp.float32)

    @pl.when(k == pl.num_programs(1) - 1)
    def _():
        y = acc_ref[...]
        if act == "lrelu":
            y = jnp.where(y > 0, y, LRELU_SLOPE * y)
        o_ref[...] = y.astype(o_ref.dtype)


def _gemm_stats_kernel(p_ref, w_ref, y_ref, stats_ref, acc_ref):
    """Same GEMM, but also emits per-row-tile per-channel partial sum and
    sum-of-squares computed from the f32 accumulator (so BatchNorm batch
    statistics stay f32 even though the y intermediate is bf16)."""
    k = pl.program_id(1)

    @pl.when(k == 0)
    def _():
        acc_ref[...] = jnp.zeros_like(acc_ref)

    acc_ref[...] += jnp.dot(p_ref[...], w_ref[...],
                            preferred_element_type=jnp.float32)

    @pl.when(k == pl.num_programs(1) - 1)
    def _():
        y = acc_ref[...]
        y_ref[...] = y.astype(y_ref.dtype)
        s1 = jnp.sum(y, axis=0, keepdims=True)        # (1, OCp)
        s2 = jnp.sum(y * y, axis=0, keepdims=True)    # (1, OCp)
        stats_ref[...] = jnp.concatenate([s1, s2], axis=0).reshape(
            stats_ref.shape)


# ---------------------------------------------------------------------------
# pallas_call wrappers
# ---------------------------------------------------------------------------
def _compiler_params():
    # Row tiles are independent -> "parallel" (2-TC sharding on v7x, free on
    # v5e/v6e); K axis carries the accumulator -> "arbitrary".
    return pltpu.CompilerParams(
        dimension_semantics=("parallel", "arbitrary"),
        vmem_limit_bytes=VMEM_LIMIT)


def _gemm_act_call(patches, w_mat, row_tile, tk, *, act, out_dtype):
    rows_pad, kp = patches.shape
    ocp = w_mat.shape[1]
    nt, nk = rows_pad // row_tile, kp // tk
    return pl.pallas_call(
        functools.partial(_gemm_act_kernel, act=act),
        out_shape=jax.ShapeDtypeStruct((rows_pad, ocp), out_dtype),
        grid=(nt, nk),
        in_specs=[pl.BlockSpec((row_tile, tk), lambda i, k: (i, k)),
                  pl.BlockSpec((tk, ocp), lambda i, k: (k, 0))],
        out_specs=pl.BlockSpec((row_tile, ocp), lambda i, k: (i, 0)),
        scratch_shapes=[pltpu.VMEM((row_tile, ocp), jnp.float32)],
        compiler_params=_compiler_params(),
    )(patches, w_mat)


def _gemm_stats_call(patches, w_mat, row_tile, tk):
    rows_pad, kp = patches.shape
    ocp = w_mat.shape[1]
    nt, nk = rows_pad // row_tile, kp // tk
    return pl.pallas_call(
        _gemm_stats_kernel,
        out_shape=(jax.ShapeDtypeStruct((rows_pad, ocp), jnp.bfloat16),
                   jax.ShapeDtypeStruct((nt, 2, ocp), jnp.float32)),
        grid=(nt, nk),
        in_specs=[pl.BlockSpec((row_tile, tk), lambda i, k: (i, k)),
                  pl.BlockSpec((tk, ocp), lambda i, k: (k, 0))],
        out_specs=(pl.BlockSpec((row_tile, ocp), lambda i, k: (i, 0)),
                   pl.BlockSpec((1, 2, ocp), lambda i, k: (i, 0, 0))),
        scratch_shapes=[pltpu.VMEM((row_tile, ocp), jnp.float32)],
        compiler_params=_compiler_params(),
    )(patches, w_mat)


# ---------------------------------------------------------------------------
# im2col (NHWC, no per-layer transposes) + layer glue
# ---------------------------------------------------------------------------
def _im2col_nhwc(x, k, stride, pad):
    """x: (N, H, W, C) -> patches (N*OH*OW, K*K*C) in (kh, kw, c) col order."""
    n, h, w, c = x.shape
    if pad:
        x = jnp.pad(x, ((0, 0), (pad, pad), (pad, pad), (0, 0)))
    oh = (h + 2 * pad - k) // stride + 1
    ow = (w + 2 * pad - k) // stride + 1
    cols = []
    for kh in range(k):
        for kw in range(k):
            cols.append(x[:, kh:kh + stride * oh:stride,
                          kw:kw + stride * ow:stride, :])
    p = jnp.concatenate(cols, axis=-1)   # (N, OH, OW, K*K*C)
    # TODO(synk): the patch matrix is still materialized in HBM (~K*K/stride^2
    # duplication); an in-kernel patch builder using memory_space=pl.ANY +
    # manual make_async_copy of halo'd NHWC row slabs would remove that round
    # trip and is the remaining big HBM-bandwidth lever.
    return p.reshape(n * oh * ow, k * k * c), n, oh, ow


def _choose_tiles(rows, kdim, ocp):
    """Adaptive tiling: ~2 MiB bf16 patch/weight blocks, <=4 MiB f32 acc."""
    # K tile so the (tk, OCp) bf16 weight block is <= ~2 MiB.
    tk_cap = max(LANE, (BLOCK_BYTES // (2 * ocp)) // LANE * LANE)
    tk = min(_round_up(kdim, LANE), tk_cap)
    kp = _round_up(kdim, tk)
    # Row tile so the (row_tile, tk) bf16 patch block is <= ~2 MiB and the
    # (row_tile, OCp) f32 accumulator is <= ~4 MiB.
    row_cap = min(MAX_ROW_TILE, BLOCK_BYTES // (2 * tk), BLOCK_BYTES // (2 * ocp))
    row_cap = max(8, (row_cap // 8) * 8)
    row_tile = min(_round_up(rows, 8), row_cap)
    rows_pad = _round_up(rows, row_tile)
    return kp, tk, rows_pad, row_tile


def _prep_gemm_operands(x, w, stride, pad):
    """im2col (bf16), zero-pad rows to the row tile and K/OC to 128."""
    oc, _, kk, _ = w.shape
    patches, n, oh, ow = _im2col_nhwc(x, kk, stride, pad)
    rows, kdim = patches.shape
    ocp = _round_up(oc, LANE)
    kp, tk, rows_pad, row_tile = _choose_tiles(rows, kdim, ocp)
    p = jnp.pad(patches.astype(jnp.bfloat16),
                ((0, rows_pad - rows), (0, kp - kdim)))
    # (OC, IC, KH, KW) -> (KH, KW, IC, OC) to match the (kh, kw, c) patch cols.
    w_mat = w.transpose(2, 3, 1, 0).reshape(kdim, oc)
    w_mat = jnp.pad(w_mat, ((0, kp - kdim), (0, ocp - oc))).astype(jnp.bfloat16)
    return p, w_mat, row_tile, tk, (rows, oc, n, oh, ow)


def _conv_act(x, w, *, stride, pad, act):
    p, w_mat, row_tile, tk, (rows, oc, n, oh, ow) = _prep_gemm_operands(
        x, w, stride, pad)
    y = _gemm_act_call(p, w_mat, row_tile, tk, act=act, out_dtype=jnp.bfloat16)
    return y[:rows, :oc].reshape(n, oh, ow, oc)


def _conv_bn_lrelu(x, w, gamma, beta, *, stride, pad):
    p, w_mat, row_tile, tk, (rows, oc, n, oh, ow) = _prep_gemm_operands(
        x, w, stride, pad)
    y, stats = _gemm_stats_call(p, w_mat, row_tile, tk)
    # Reduce the tiny per-tile partials (padded rows contribute 0).
    s1 = jnp.sum(stats[:, 0, :oc], axis=0)
    s2 = jnp.sum(stats[:, 1, :oc], axis=0)
    mean = s1 / rows
    var = jnp.maximum(s2 / rows - mean * mean, 0.0)   # biased var (training BN)
    scale = gamma.astype(jnp.float32) * jax.lax.rsqrt(var + BN_EPS)
    shift = beta.astype(jnp.float32) - mean * scale
    h = y[:rows, :oc].reshape(n, oh, ow, oc)
    # Folded BN + LeakyReLU in plain JAX (f32 math): XLA fuses this elementwise
    # chain into the next layer's im2col slicing, so the standalone affine
    # Pallas pass (a full extra activation HBM round trip) is gone.
    h = h.astype(jnp.float32) * scale + shift
    h = jnp.where(h > 0, h, LRELU_SLOPE * h)
    return h.astype(jnp.bfloat16)


# ---------------------------------------------------------------------------
# Full Disc forward (input NCHW, like the PyTorch module)
# ---------------------------------------------------------------------------
def disc_forward(x, params):
    w1, w2, w3, w4, w5 = params["conv_w"]
    g2, g3, g4 = params["bn_gamma"]
    b2, b3, b4 = params["bn_beta"]
    # Cast to bf16 before the single NCHW -> NHWC transpose so every HBM
    # materialization downstream (including layer1's patches) is bf16.
    h = jnp.transpose(x.astype(jnp.bfloat16), (0, 2, 3, 1))
    h = _conv_act(h, w1, stride=2, pad=1, act="lrelu")
    h = _conv_bn_lrelu(h, w2, g2, b2, stride=2, pad=1)
    h = _conv_bn_lrelu(h, w3, g3, b3, stride=2, pad=1)
    h = _conv_bn_lrelu(h, w4, g4, b4, stride=2, pad=1)
    # Final 4x4 valid conv -> 1x1 + sigmoid: rows == batch and OC == 1, so a
    # pallas_call would leave the MXU ~99% idle and write 128x padded output;
    # compute it as a tiny plain-JAX dot instead (per perf review).
    p5, n, oh, ow = _im2col_nhwc(h, w5.shape[2], 1, 0)
    w5_mat = w5.transpose(2, 3, 1, 0).reshape(-1, w5.shape[0]).astype(jnp.float32)
    y5 = jax.nn.sigmoid(p5.astype(jnp.float32) @ w5_mat)
    h = y5.reshape(n, oh, ow, w5.shape[0])
    return jnp.transpose(h, (0, 3, 1, 2))     # (N, 1, 1, 1)


def init_params(key, input_dim, ndf):
    ks = jax.random.split(key, 11)
    shapes = [
        (ndf, input_dim, 4, 4),
        (ndf * 2, ndf, 4, 4),
        (ndf * 4, ndf * 2, 4, 4),
        (ndf * 8, ndf * 4, 4, 4),
        (1, ndf * 8, 4, 4),
    ]
    conv_w = [0.02 * jax.random.normal(k, s, jnp.float32)
              for k, s in zip(ks[:5], shapes)]
    chans = [ndf * 2, ndf * 4, ndf * 8]
    bn_gamma = [1.0 + 0.1 * jax.random.normal(k, (c,), jnp.float32)
                for k, c in zip(ks[5:8], chans)]
    bn_beta = [0.1 * jax.random.normal(k, (c,), jnp.float32)
               for k, c in zip(ks[8:11], chans)]
    return {"conv_w": conv_w, "bn_gamma": bn_gamma, "bn_beta": bn_beta}


# Pure-JAX f32 reference (matches PyTorch training-mode forward) for sanity.
def ref_forward(x, params):
    def conv(h, w, s, p):
        return jax.lax.conv_general_dilated(
            h, w, (s, s), [(p, p), (p, p)],
            dimension_numbers=("NCHW", "OIHW", "NCHW"))

    def bn(h, g, b):
        mean = jnp.mean(h, axis=(0, 2, 3), keepdims=True)
        var = jnp.mean((h - mean) ** 2, axis=(0, 2, 3), keepdims=True)
        return ((h - mean) * jax.lax.rsqrt(var + BN_EPS)
                * g[None, :, None, None] + b[None, :, None, None])

    def lrelu(h):
        return jnp.where(h > 0, h, LRELU_SLOPE * h)

    w1, w2, w3, w4, w5 = params["conv_w"]
    g2, g3, g4 = params["bn_gamma"]
    b2, b3, b4 = params["bn_beta"]
    h = lrelu(conv(x, w1, 2, 1))
    h = lrelu(bn(conv(h, w2, 2, 1), g2, b2))
    h = lrelu(bn(conv(h, w3, 2, 1), g3, b3))
    h = lrelu(bn(conv(h, w4, 2, 1), g4, b4))
    return jax.nn.sigmoid(conv(h, w5, 1, 0))


if __name__ == "__main__":
    # DCGAN discriminator expects 64x64 inputs (final 4x4 valid conv -> 1x1).
    batch, input_dim, ndf, hw = 2, 3, 8, 64

    key = jax.random.PRNGKey(0)
    kx, kp = jax.random.split(key)
    x = jax.random.normal(kx, (batch, input_dim, hw, hw), jnp.float32)
    params = init_params(kp, input_dim, ndf)

    out = jax.block_until_ready(jax.jit(disc_forward)(x, params))
    assert out.shape == (batch, 1, 1, 1), out.shape
    assert bool(jnp.all((out >= 0.0) & (out <= 1.0)))      # sigmoid range

    ref = jax.block_until_ready(jax.jit(ref_forward)(x, params))
    max_err = float(jnp.max(jnp.abs(out - ref)))
    assert max_err < 0.1, max_err                            # bf16-MXU tolerance

    print("KERNEL_OK")
</pallas_src>

<mosaic_0001>
module attributes {stable_mosaic.version = 11 : i64} {
  func.func @_gemm_act_kernel(%arg0: i32, %arg1: i32, %arg2: memref<2048x128xbf16, #tpu.memory_space<vmem>>, %arg3: memref<128x128xbf16, #tpu.memory_space<vmem>>, %arg4: memref<2048x128xbf16, #tpu.memory_space<vmem>>, %arg5: memref<2048x128xf32, #tpu.memory_space<vmem>>) attributes {dimension_semantics = [#tpu.dimension_semantics<parallel>, #tpu.dimension_semantics<arbitrary>], iteration_bounds = array<i64: 1, 1>, scalar_prefetch = 0 : i64, scratch_operands = 1 : i64, tpu.core_type = #tpu.core_type<tc>, window_params = [{transform_indices = @transform_0, window_bounds = array<i64: 2048, 128>}, {transform_indices = @transform_1, window_bounds = array<i64: 128, 128>}, {transform_indices = @transform_2, window_bounds = array<i64: 2048, 128>}]} {
    %c0_i32 = arith.constant 0 : i32
    %0 = arith.cmpi eq, %arg1, %c0_i32 : i32
    %1 = arith.extui %0 : i1 to i32
    %c0_i32_0 = arith.constant 0 : i32
    %2 = arith.cmpi ne, %1, %c0_i32_0 : i32
    scf.if %2 {
      %cst_10 = arith.constant 0.000000e+00 : f32
      %12 = vector.broadcast %cst_10 : f32 to vector<2048x128xf32>
      %c0_11 = arith.constant 0 : index
      %c0_12 = arith.constant 0 : index
      %13 = vector.load %arg5[%c0_11, %c0_12] : memref<2048x128xf32, #tpu.memory_space<vmem>>, vector<2048x128xf32>
      tpu.vector_store %arg5[%c0_11, %c0_12], %12 {strides = array<i32>} : memref<2048x128xf32, #tpu.memory_space<vmem>>, vector<2048x128xf32>,
    } else {
    }
    %c0 = arith.constant 0 : index
    %c0_1 = arith.constant 0 : index
    %3 = vector.load %arg5[%c0, %c0_1] : memref<2048x128xf32, #tpu.memory_space<vmem>>, vector<2048x128xf32>
    %c0_2 = arith.constant 0 : index
    %c0_3 = arith.constant 0 : index
    %4 = vector.load %arg2[%c0_2, %c0_3] : memref<2048x128xbf16, #tpu.memory_space<vmem>>, vector<2048x128xbf16>
    %c0_4 = arith.constant 0 : index
    %c0_5 = arith.constant 0 : index
    %5 = vector.load %arg3[%c0_4, %c0_5] : memref<128x128xbf16, #tpu.memory_space<vmem>>, vector<128x128xbf16>
    %cst = arith.constant dense<0.000000e+00> : vector<2048x128xf32>
    %6 = tpu.matmul %4, %5, %cst {dimension_numbers = #tpu.dot_dimension_numbers<[1], [0], [0], [1], [0, 0, 1, 1], [], []>} : vector<2048x128xbf16>, vector<128x128xbf16>, vector<2048x128xf32> -> vector<2048x128xf32>
    %7 = arith.addf %3, %6 : vector<2048x128xf32>
    %c0_6 = arith.constant 0 : index
    %c0_7 = arith.constant 0 : index
    %8 = vector.load %arg5[%c0_6, %c0_7] : memref<2048x128xf32, #tpu.memory_space<vmem>>, vector<2048x128xf32>
    tpu.vector_store %arg5[%c0_6, %c0_7], %7 {strides = array<i32>} : memref<2048x128xf32, #tpu.memory_space<vmem>>, vector<2048x128xf32>,
    %c0_i32_8 = arith.constant 0 : i32
    %9 = arith.cmpi eq, %arg1, %c0_i32_8 : i32
    %10 = arith.extui %9 : i1 to i32
    %c0_i32_9 = arith.constant 0 : i32
    %11 = arith.cmpi ne, %10, %c0_i32_9 : i32
    scf.if %11 {
      %c0_10 = arith.constant 0 : index
      %c0_11 = arith.constant 0 : index
      %12 = vector.load %arg5[%c0_10, %c0_11] : memref<2048x128xf32, #tpu.memory_space<vmem>>, vector<2048x128xf32>
      %cst_12 = arith.constant 0.000000e+00 : f32
      %13 = vector.broadcast %cst_12 : f32 to vector<2048x128xf32>
      %14 = arith.cmpf ogt, %12, %13 : vector<2048x128xf32>
      %cst_13 = arith.constant 2.000000e-01 : f32
      %15 = vector.broadcast %cst_13 : f32 to vector<2048x128xf32>
      %16 = arith.mulf %15, %12 : vector<2048x128xf32>
      %17 = arith.select %14, %12, %16 : vector<2048x128xi1>, vector<2048x128xf32>
      %18 = arith.truncf %17 : vector<2048x128xf32> to vector<2048x128xbf16>
      %c0_14 = arith.constant 0 : index
      %c0_15 = arith.constant 0 : index
      %19 = vector.load %arg4[%c0_14, %c0_15] : memref<2048x128xbf16, #tpu.memory_space<vmem>>, vector<2048x128xbf16>
      tpu.vector_store %arg4[%c0_14, %c0_15], %18 {strides = array<i32>} : memref<2048x128xbf16, #tpu.memory_space<vmem>>, vector<2048x128xbf16>,
    } else {
    }
    return
  }
  func.func @transform_0(%arg0: i32, %arg1: i32) -> (i32, i32) {
    %c0_i32 = arith.constant 0 : i32
    return %arg0, %arg1 : i32, i32
  }
  func.func @transform_1(%arg0: i32, %arg1: i32) -> (i32, i32) {
    %c0_i32 = arith.constant 0 : i32
    %c0_i32_0 = arith.constant 0 : i32
    return %arg1, %c0_i32 : i32, i32
  }
  func.func @transform_2(%arg0: i32, %arg1: i32) -> (i32, i32) {
    %c0_i32 = arith.constant 0 : i32
    %c0_i32_0 = arith.constant 0 : i32
    return %arg0, %c0_i32 : i32, i32
  }
}

module attributes {stable_mosaic.version = 11 : i64} {
  func.func @_gemm_stats_kernel(%arg0: i32, %arg1: i32, %arg2: memref<512x128xbf16, #tpu.memory_space<vmem>>, %arg3: memref<128x128xbf16, #tpu.memory_space<vmem>>, %arg4: memref<512x128xbf16, #tpu.memory_space<vmem>>, %arg5: memref<1x2x128xf32, #tpu.memory_space<vmem>>, %arg6: memref<512x128xf32, #tpu.memory_space<vmem>>) attributes {dimension_semantics = [#tpu.dimension_semantics<parallel>, #tpu.dimension_semantics<arbitrary>], iteration_bounds = array<i64: 1, 1>, scalar_prefetch = 0 : i64, scratch_operands = 1 : i64, tpu.core_type = #tpu.core_type<tc>, window_params = [{transform_indices = @transform_0, window_bounds = array<i64: 512, 128>}, {transform_indices = @transform_1, window_bounds = array<i64: 128, 128>}, {transform_indices = @transform_2, window_bounds = array<i64: 512, 128>}, {transform_indices = @transform_3, window_bounds = array<i64: 1, 2, 128>}]} {
    %c0_i32 = arith.constant 0 : i32
    %0 = arith.cmpi eq, %arg1, %c0_i32 : i32
    %1 = arith.extui %0 : i1 to i32
    %c0_i32_0 = arith.constant 0 : i32
    %2 = arith.cmpi ne, %1, %c0_i32_0 : i32
    scf.if %2 {
      %cst_10 = arith.constant 0.000000e+00 : f32
      %12 = vector.broadcast %cst_10 : f32 to vector<512x128xf32>
      %c0_11 = arith.constant 0 : index
      %c0_12 = arith.constant 0 : index
      %13 = vector.load %arg6[%c0_11, %c0_12] : memref<512x128xf32, #tpu.memory_space<vmem>>, vector<512x128xf32>
      tpu.vector_store %arg6[%c0_11, %c0_12], %12 {strides = array<i32>} : memref<512x128xf32, #tpu.memory_space<vmem>>, vector<512x128xf32>,
    } else {
    }
    %c0 = arith.constant 0 : index
    %c0_1 = arith.constant 0 : index
    %3 = vector.load %arg6[%c0, %c0_1] : memref<512x128xf32, #tpu.memory_space<vmem>>, vector<512x128xf32>
    %c0_2 = arith.constant 0 : index
    %c0_3 = arith.constant 0 : index
    %4 = vector.load %arg2[%c0_2, %c0_3] : memref<512x128xbf16, #tpu.memory_space<vmem>>, vector<512x128xbf16>
    %c0_4 = arith.constant 0 : index
    %c0_5 = arith.constant 0 : index
    %5 = vector.load %arg3[%c0_4, %c0_5] : memref<128x128xbf16, #tpu.memory_space<vmem>>, vector<128x128xbf16>
    %cst = arith.constant dense<0.000000e+00> : vector<512x128xf32>
    %6 = tpu.matmul %4, %5, %cst {dimension_numbers = #tpu.dot_dimension_numbers<[1], [0], [0], [1], [0, 0, 1, 1], [], []>} : vector<512x128xbf16>, vector<128x128xbf16>, vector<512x128xf32> -> vector<512x128xf32>
    %7 = arith.addf %3, %6 : vector<512x128xf32>
    %c0_6 = arith.constant 0 : index
    %c0_7 = arith.constant 0 : index
    %8 = vector.load %arg6[%c0_6, %c0_7] : memref<512x128xf32, #tpu.memory_space<vmem>>, vector<512x128xf32>
    tpu.vector_store %arg6[%c0_6, %c0_7], %7 {strides = array<i32>} : memref<512x128xf32, #tpu.memory_space<vmem>>, vector<512x128xf32>,
    %c0_i32_8 = arith.constant 0 : i32
    %9 = arith.cmpi eq, %arg1, %c0_i32_8 : i32
    %10 = arith.extui %9 : i1 to i32
    %c0_i32_9 = arith.constant 0 : i32
    %11 = arith.cmpi ne, %10, %c0_i32_9 : i32
    scf.if %11 {
      %c0_10 = arith.constant 0 : index
      %c0_11 = arith.constant 0 : index
      %12 = vector.load %arg6[%c0_10, %c0_11] : memref<512x128xf32, #tpu.memory_space<vmem>>, vector<512x128xf32>
      %13 = arith.truncf %12 : vector<512x128xf32> to vector<512x128xbf16>
      %c0_12 = arith.constant 0 : index
      %c0_13 = arith.constant 0 : index
      %14 = vector.load %arg4[%c0_12, %c0_13] : memref<512x128xbf16, #tpu.memory_space<vmem>>, vector<512x128xbf16>
      tpu.vector_store %arg4[%c0_12, %c0_13], %13 {strides = array<i32>} : memref<512x128xbf16, #tpu.memory_space<vmem>>, vector<512x128xbf16>,
      %cst_14 = arith.constant dense<0.000000e+00> : vector<128xf32>
      %15 = vector.multi_reduction <add>, %12, %cst_14 [0] : vector<512x128xf32> to vector<128xf32>
      %16 = vector.shape_cast %15 : vector<128xf32> to vector<1x128xf32>
      %17 = arith.mulf %12, %12 : vector<512x128xf32>
      %cst_15 = arith.constant dense<0.000000e+00> : vector<128xf32>
      %18 = vector.multi_reduction <add>, %17, %cst_15 [0] : vector<512x128xf32> to vector<128xf32>
      %19 = vector.shape_cast %18 : vector<128xf32> to vector<1x128xf32>
      %20 = tpu.concatenate %16, %19 in 0 : vector<1x128xf32>, vector<1x128xf32> -> vector<2x128xf32>
      %21 = vector.shape_cast %20 : vector<2x128xf32> to vector<1x2x128xf32>
      %c0_16 = arith.constant 0 : index
      %c0_17 = arith.constant 0 : index
      %c0_18 = arith.constant 0 : index
      %22 = vector.load %arg5[%c0_16, %c0_17, %c0_18] : memref<1x2x128xf32, #tpu.memory_space<vmem>>, vector<1x2x128xf32>
      tpu.vector_store %arg5[%c0_16, %c0_17, %c0_18], %21 {strides = array<i32>} : memref<1x2x128xf32, #tpu.memory_space<vmem>>, vector<1x2x128xf32>,
    } else {
    }
    return
  }
  func.func @transform_0(%arg0: i32, %arg1: i32) -> (i32, i32) {
    %c0_i32 = arith.constant 0 : i32
    return %arg0, %arg1 : i32, i32
  }
  func.func @transform_1(%arg0: i32, %arg1: i32) -> (i32, i32) {
    %c0_i32 = arith.constant 0 : i32
    %c0_i32_0 = arith.constant 0 : i32
    return %arg1, %c0_i32 : i32, i32
  }
  func.func @transform_2(%arg0: i32, %arg1: i32) -> (i32, i32) {
    %c0_i32 = arith.constant 0 : i32
    %c0_i32_0 = arith.constant 0 : i32
    return %arg0, %c0_i32 : i32, i32
  }
  func.func @transform_3(%arg0: i32, %arg1: i32) -> (i32, i32, i32) {
    %c0_i32 = arith.constant 0 : i32
    %c0_i32_0 = arith.constant 0 : i32
    %c0_i32_1 = arith.constant 0 : i32
    return %arg0, %c0_i32, %c0_i32_0 : i32, i32, i32
  }
}

module attributes {stable_mosaic.version = 11 : i64} {
  func.func @_gemm_stats_kernel(%arg0: i32, %arg1: i32, %arg2: memref<128x256xbf16, #tpu.memory_space<vmem>>, %arg3: memref<256x128xbf16, #tpu.memory_space<vmem>>, %arg4: memref<128x128xbf16, #tpu.memory_space<vmem>>, %arg5: memref<1x2x128xf32, #tpu.memory_space<vmem>>, %arg6: memref<128x128xf32, #tpu.memory_space<vmem>>) attributes {dimension_semantics = [#tpu.dimension_semantics<parallel>, #tpu.dimension_semantics<arbitrary>], iteration_bounds = array<i64: 1, 1>, scalar_prefetch = 0 : i64, scratch_operands = 1 : i64, tpu.core_type = #tpu.core_type<tc>, window_params = [{transform_indices = @transform_0, window_bounds = array<i64: 128, 256>}, {transform_indices = @transform_1, window_bounds = array<i64: 256, 128>}, {transform_indices = @transform_2, window_bounds = array<i64: 128, 128>}, {transform_indices = @transform_3, window_bounds = array<i64: 1, 2, 128>}]} {
    %c0_i32 = arith.constant 0 : i32
    %0 = arith.cmpi eq, %arg1, %c0_i32 : i32
    %1 = arith.extui %0 : i1 to i32
    %c0_i32_0 = arith.constant 0 : i32
    %2 = arith.cmpi ne, %1, %c0_i32_0 : i32
    scf.if %2 {
      %cst_10 = arith.constant 0.000000e+00 : f32
      %12 = vector.broadcast %cst_10 : f32 to vector<128x128xf32>
      %c0_11 = arith.constant 0 : index
      %c0_12 = arith.constant 0 : index
      %13 = vector.load %arg6[%c0_11, %c0_12] : memref<128x128xf32, #tpu.memory_space<vmem>>, vector<128x128xf32>
      tpu.vector_store %arg6[%c0_11, %c0_12], %12 {strides = array<i32>} : memref<128x128xf32, #tpu.memory_space<vmem>>, vector<128x128xf32>,
    } else {
    }
    %c0 = arith.constant 0 : index
    %c0_1 = arith.constant 0 : index
    %3 = vector.load %arg6[%c0, %c0_1] : memref<128x128xf32, #tpu.memory_space<vmem>>, vector<128x128xf32>
    %c0_2 = arith.constant 0 : index
    %c0_3 = arith.constant 0 : index
    %4 = vector.load %arg2[%c0_2, %c0_3] : memref<128x256xbf16, #tpu.memory_space<vmem>>, vector<128x256xbf16>
    %c0_4 = arith.constant 0 : index
    %c0_5 = arith.constant 0 : index
    %5 = vector.load %arg3[%c0_4, %c0_5] : memref<256x128xbf16, #tpu.memory_space<vmem>>, vector<256x128xbf16>
    %cst = arith.constant dense<0.000000e+00> : vector<128x128xf32>
    %6 = tpu.matmul %4, %5, %cst {dimension_numbers = #tpu.dot_dimension_numbers<[1], [0], [0], [1], [0, 0, 1, 1], [], []>} : vector<128x256xbf16>, vector<256x128xbf16>, vector<128x128xf32> -> vector<128x128xf32>
    %7 = arith.addf %3, %6 : vector<128x128xf32>
    %c0_6 = arith.constant 0 : index
    %c0_7 = arith.constant 0 : index
    %8 = vector.load %arg6[%c0_6, %c0_7] : memref<128x128xf32, #tpu.memory_space<vmem>>, vector<128x128xf32>
    tpu.vector_store %arg6[%c0_6, %c0_7], %7 {strides = array<i32>} : memref<128x128xf32, #tpu.memory_space<vmem>>, vector<128x128xf32>,
    %c0_i32_8 = arith.constant 0 : i32
    %9 = arith.cmpi eq, %arg1, %c0_i32_8 : i32
    %10 = arith.extui %9 : i1 to i32
    %c0_i32_9 = arith.constant 0 : i32
    %11 = arith.cmpi ne, %10, %c0_i32_9 : i32
    scf.if %11 {
      %c0_10 = arith.constant 0 : index
      %c0_11 = arith.constant 0 : index
      %12 = vector.load %arg6[%c0_10, %c0_11] : memref<128x128xf32, #tpu.memory_space<vmem>>, vector<128x128xf32>
      %13 = arith.truncf %12 : vector<128x128xf32> to vector<128x128xbf16>
      %c0_12 = arith.constant 0 : index
      %c0_13 = arith.constant 0 : index
      %14 = vector.load %arg4[%c0_12, %c0_13] : memref<128x128xbf16, #tpu.memory_space<vmem>>, vector<128x128xbf16>
      tpu.vector_store %arg4[%c0_12, %c0_13], %13 {strides = array<i32>} : memref<128x128xbf16, #tpu.memory_space<vmem>>, vector<128x128xbf16>,
      %cst_14 = arith.constant dense<0.000000e+00> : vector<128xf32>
      %15 = vector.multi_reduction <add>, %12, %cst_14 [0] : vector<128x128xf32> to vector<128xf32>
      %16 = vector.shape_cast %15 : vector<128xf32> to vector<1x128xf32>
      %17 = arith.mulf %12, %12 : vector<128x128xf32>
      %cst_15 = arith.constant dense<0.000000e+00> : vector<128xf32>
      %18 = vector.multi_reduction <add>, %17, %cst_15 [0] : vector<128x128xf32> to vector<128xf32>
      %19 = vector.shape_cast %18 : vector<128xf32> to vector<1x128xf32>
      %20 = tpu.concatenate %16, %19 in 0 : vector<1x128xf32>, vector<1x128xf32> -> vector<2x128xf32>
      %21 = vector.shape_cast %20 : vector<2x128xf32> to vector<1x2x128xf32>
      %c0_16 = arith.constant 0 : index
      %c0_17 = arith.constant 0 : index
      %c0_18 = arith.constant 0 : index
      %22 = vector.load %arg5[%c0_16, %c0_17, %c0_18] : memref<1x2x128xf32, #tpu.memory_space<vmem>>, vector<1x2x128xf32>
      tpu.vector_store %arg5[%c0_16, %c0_17, %c0_18], %21 {strides = array<i32>} : memref<1x2x128xf32, #tpu.memory_space<vmem>>, vector<1x2x128xf32>,
    } else {
    }
    return
  }
  func.func @transform_0(%arg0: i32, %arg1: i32) -> (i32, i32) {
    %c0_i32 = arith.constant 0 : i32
    return %arg0, %arg1 : i32, i32
  }
  func.func @transform_1(%arg0: i32, %arg1: i32) -> (i32, i32) {
    %c0_i32 = arith.constant 0 : i32
    %c0_i32_0 = arith.constant 0 : i32
    return %arg1, %c0_i32 : i32, i32
  }
  func.func @transform_2(%arg0: i32, %arg1: i32) -> (i32, i32) {
    %c0_i32 = arith.constant 0 : i32
    %c0_i32_0 = arith.constant 0 : i32
    return %arg0, %c0_i32 : i32, i32
  }
  func.func @transform_3(%arg0: i32, %arg1: i32) -> (i32, i32, i32) {
    %c0_i32 = arith.constant 0 : i32
    %c0_i32_0 = arith.constant 0 : i32
    %c0_i32_1 = arith.constant 0 : i32
    return %arg0, %c0_i32, %c0_i32_0 : i32, i32, i32
  }
}

module attributes {stable_mosaic.version = 11 : i64} {
  func.func @_gemm_stats_kernel(%arg0: i32, %arg1: i32, %arg2: memref<32x512xbf16, #tpu.memory_space<vmem>>, %arg3: memref<512x128xbf16, #tpu.memory_space<vmem>>, %arg4: memref<32x128xbf16, #tpu.memory_space<vmem>>, %arg5: memref<1x2x128xf32, #tpu.memory_space<vmem>>, %arg6: memref<32x128xf32, #tpu.memory_space<vmem>>) attributes {dimension_semantics = [#tpu.dimension_semantics<parallel>, #tpu.dimension_semantics<arbitrary>], iteration_bounds = array<i64: 1, 1>, scalar_prefetch = 0 : i64, scratch_operands = 1 : i64, tpu.core_type = #tpu.core_type<tc>, window_params = [{transform_indices = @transform_0, window_bounds = array<i64: 32, 512>}, {transform_indices = @transform_1, window_bounds = array<i64: 512, 128>}, {transform_indices = @transform_2, window_bounds = array<i64: 32, 128>}, {transform_indices = @transform_3, window_bounds = array<i64: 1, 2, 128>}]} {
    %c0_i32 = arith.constant 0 : i32
    %0 = arith.cmpi eq, %arg1, %c0_i32 : i32
    %1 = arith.extui %0 : i1 to i32
    %c0_i32_0 = arith.constant 0 : i32
    %2 = arith.cmpi ne, %1, %c0_i32_0 : i32
    scf.if %2 {
      %cst_10 = arith.constant 0.000000e+00 : f32
      %12 = vector.broadcast %cst_10 : f32 to vector<32x128xf32>
      %c0_11 = arith.constant 0 : index
      %c0_12 = arith.constant 0 : index
      %13 = vector.load %arg6[%c0_11, %c0_12] : memref<32x128xf32, #tpu.memory_space<vmem>>, vector<32x128xf32>
      tpu.vector_store %arg6[%c0_11, %c0_12], %12 {strides = array<i32>} : memref<32x128xf32, #tpu.memory_space<vmem>>, vector<32x128xf32>,
    } else {
    }
    %c0 = arith.constant 0 : index
    %c0_1 = arith.constant 0 : index
    %3 = vector.load %arg6[%c0, %c0_1] : memref<32x128xf32, #tpu.memory_space<vmem>>, vector<32x128xf32>
    %c0_2 = arith.constant 0 : index
    %c0_3 = arith.constant 0 : index
    %4 = vector.load %arg2[%c0_2, %c0_3] : memref<32x512xbf16, #tpu.memory_space<vmem>>, vector<32x512xbf16>
    %c0_4 = arith.constant 0 : index
    %c0_5 = arith.constant 0 : index
    %5 = vector.load %arg3[%c0_4, %c0_5] : memref<512x128xbf16, #tpu.memory_space<vmem>>, vector<512x128xbf16>
    %cst = arith.constant dense<0.000000e+00> : vector<32x128xf32>
    %6 = tpu.matmul %4, %5, %cst {dimension_numbers = #tpu.dot_dimension_numbers<[1], [0], [0], [1], [0, 0, 1, 1], [], []>} : vector<32x512xbf16>, vector<512x128xbf16>, vector<32x128xf32> -> vector<32x128xf32>
    %7 = arith.addf %3, %6 : vector<32x128xf32>
    %c0_6 = arith.constant 0 : index
    %c0_7 = arith.constant 0 : index
    %8 = vector.load %arg6[%c0_6, %c0_7] : memref<32x128xf32, #tpu.memory_space<vmem>>, vector<32x128xf32>
    tpu.vector_store %arg6[%c0_6, %c0_7], %7 {strides = array<i32>} : memref<32x128xf32, #tpu.memory_space<vmem>>, vector<32x128xf32>,
    %c0_i32_8 = arith.constant 0 : i32
    %9 = arith.cmpi eq, %arg1, %c0_i32_8 : i32
    %10 = arith.extui %9 : i1 to i32
    %c0_i32_9 = arith.constant 0 : i32
    %11 = arith.cmpi ne, %10, %c0_i32_9 : i32
    scf.if %11 {
      %c0_10 = arith.constant 0 : index
      %c0_11 = arith.constant 0 : index
      %12 = vector.load %arg6[%c0_10, %c0_11] : memref<32x128xf32, #tpu.memory_space<vmem>>, vector<32x128xf32>
      %13 = arith.truncf %12 : vector<32x128xf32> to vector<32x128xbf16>
      %c0_12 = arith.constant 0 : index
      %c0_13 = arith.constant 0 : index
      %14 = vector.load %arg4[%c0_12, %c0_13] : memref<32x128xbf16, #tpu.memory_space<vmem>>, vector<32x128xbf16>
      tpu.vector_store %arg4[%c0_12, %c0_13], %13 {strides = array<i32>} : memref<32x128xbf16, #tpu.memory_space<vmem>>, vector<32x128xbf16>,
      %cst_14 = arith.constant dense<0.000000e+00> : vector<128xf32>
      %15 = vector.multi_reduction <add>, %12, %cst_14 [0] : vector<32x128xf32> to vector<128xf32>
      %16 = vector.shape_cast %15 : vector<128xf32> to vector<1x128xf32>
      %17 = arith.mulf %12, %12 : vector<32x128xf32>
      %cst_15 = arith.constant dense<0.000000e+00> : vector<128xf32>
      %18 = vector.multi_reduction <add>, %17, %cst_15 [0] : vector<32x128xf32> to vector<128xf32>
      %19 = vector.shape_cast %18 : vector<128xf32> to vector<1x128xf32>
      %20 = tpu.concatenate %16, %19 in 0 : vector<1x128xf32>, vector<1x128xf32> -> vector<2x128xf32>
      %21 = vector.shape_cast %20 : vector<2x128xf32> to vector<1x2x128xf32>
      %c0_16 = arith.constant 0 : index
      %c0_17 = arith.constant 0 : index
      %c0_18 = arith.constant 0 : index
      %22 = vector.load %arg5[%c0_16, %c0_17, %c0_18] : memref<1x2x128xf32, #tpu.memory_space<vmem>>, vector<1x2x128xf32>
      tpu.vector_store %arg5[%c0_16, %c0_17, %c0_18], %21 {strides = array<i32>} : memref<1x2x128xf32, #tpu.memory_space<vmem>>, vector<1x2x128xf32>,
    } else {
    }
    return
  }
  func.func @transform_0(%arg0: i32, %arg1: i32) -> (i32, i32) {
    %c0_i32 = arith.constant 0 : i32
    return %arg0, %arg1 : i32, i32
  }
  func.func @transform_1(%arg0: i32, %arg1: i32) -> (i32, i32) {
    %c0_i32 = arith.constant 0 : i32
    %c0_i32_0 = arith.constant 0 : i32
    return %arg1, %c0_i32 : i32, i32
  }
  func.func @transform_2(%arg0: i32, %arg1: i32) -> (i32, i32) {
    %c0_i32 = arith.constant 0 : i32
    %c0_i32_0 = arith.constant 0 : i32
    return %arg0, %c0_i32 : i32, i32
  }
  func.func @transform_3(%arg0: i32, %arg1: i32) -> (i32, i32, i32) {
    %c0_i32 = arith.constant 0 : i32
    %c0_i32_0 = arith.constant 0 : i32
    %c0_i32_1 = arith.constant 0 : i32
    return %arg0, %c0_i32, %c0_i32_0 : i32, i32, i32
  }
}

</mosaic_0001>

<bundles_post_ra>
// kernel: disc_forward.4
= control target key start
LH: loop header
LB: loop body
LE: loop exit
PB: predicated region body
PF: predicated region fallthrough
CT: control target
= control target key end

     0   :  { %s6611_s1 = inlined_call_operand.vmem [shape: bf16[128,128], index: 1, kind: input, shape index: {}]   ;;  %s6612_s0 = inlined_call_operand.vmem [shape: bf16[2048,128], index: 0, kind: input, shape index: {}]   ;;  %s6613_s2 = inlined_call_operand.vmem [shape: bf16[2048,128], index: 2, kind: output, shape index: {}]  }
   0x1   :  { %v4998_v0 = vld [vmem:[%s6611_s1 + $0x38] sm:$0xff]  ;;  %v4997_v1 = vld [vmem:[%s6611_s1 + $0x30] sm:$0xff]  ;;  %v4996_v2 = vld [vmem:[%s6611_s1 + $0x28] sm:$0xff] }
   0x2   :  { %1615 = vmatpush.bf16.msra.mxu0 %v4998_v0  ;;  %5766 = vmatpush.bf16.msra.mxu1 %v4998_v0  ;;  %v4995_v3 = vld [vmem:[%s6611_s1 + $0x20] sm:$0xff]  ;;  %v4994_v4 = vld [vmem:[%s6611_s1 + $0x18] sm:$0xff]  ;;  %v4993_v5 = vld [vmem:[%s6611_s1 + $0x10] sm:$0xff] }
   0x3   :  { %5767 = vmatpush.bf16.msra.mxu2 %v4998_v0  ;;  %5768 = vmatpush.bf16.msra.mxu3 %v4998_v0  ;;  %v4992_v6 = vld [vmem:[%s6611_s1 + $0x8] sm:$0xff]  ;;  %v4991_v7 = vld [vmem:[%s6611_s1] sm:$0xff]  ;;  %v4865_v16 = vld [vmem:[%s6612_s0 + $0x10] sm:$0xff] }
   0x4   :  { %v4863_v8 = vld [vmem:[%s6612_s0] sm:$0xff]  ;;  %v4864_v12 = vld [vmem:[%s6612_s0 + $0x8] sm:$0xff]  ;;  %v4897_v17 = vld [vmem:[%s6612_s0 + $0x110] sm:$0xff] }
   0x5   :  { %v4895_v9 = vld [vmem:[%s6612_s0 + $0x100] sm:$0xff]  ;;  %v4896_v13 = vld [vmem:[%s6612_s0 + $0x108] sm:$0xff]  ;;  %v4929_v18 = vld [vmem:[%s6612_s0 + $0x210] sm:$0xff] }
   0x6   :  { %1616 = vmatpush.bf16.msra.mxu0 %v4997_v1  ;;  %5769 = vmatpush.bf16.msra.mxu1 %v4997_v1  ;;  %v4927_v10 = vld [vmem:[%s6612_s0 + $0x200] sm:$0xff]  ;;  %v4928_v14 = vld [vmem:[%s6612_s0 + $0x208] sm:$0xff]  ;;  %v4961_v19 = vld [vmem:[%s6612_s0 + $0x310] sm:$0xff] }
   0x7   :  { %5770 = vmatpush.bf16.msra.mxu2 %v4997_v1  ;;  %5771 = vmatpush.bf16.msra.mxu3 %v4997_v1  ;;  %v4959_v11 = vld [vmem:[%s6612_s0 + $0x300] sm:$0xff]  ;;  %v4960_v15 = vld [vmem:[%s6612_s0 + $0x308] sm:$0xff]  ;;  %v4866_v20 = vld [vmem:[%s6612_s0 + $0x18] sm:$0xff] }
   0x8   :  { %v4898_v21 = vld [vmem:[%s6612_s0 + $0x118] sm:$0xff]  ;;  %v4867_v24 = vld [vmem:[%s6612_s0 + $0x20] sm:$0xff]  ;;  %v4868_v28 = vld [vmem:[%s6612_s0 + $0x28] sm:$0xff] }
   0x9   :  { %v4930_v22 = vld [vmem:[%s6612_s0 + $0x218] sm:$0xff]  ;;  %v4899_v25 = vld [vmem:[%s6612_s0 + $0x120] sm:$0xff]  ;;  %v4900_v29 = vld [vmem:[%s6612_s0 + $0x128] sm:$0xff] }
   0xa   :  { %1617 = vmatpush.bf16.msra.mxu0 %v4996_v2  ;;  %5772 = vmatpush.bf16.msra.mxu1 %v4996_v2  ;;  %v4962_v23 = vld [vmem:[%s6612_s0 + $0x318] sm:$0xff]  ;;  %v4931_v26 = vld [vmem:[%s6612_s0 + $0x220] sm:$0xff]  ;;  %v4932_v30 = vld [vmem:[%s6612_s0 + $0x228] sm:$0xff] }
   0xb   :  { %5773 = vmatpush.bf16.msra.mxu2 %v4996_v2  ;;  %5774 = vmatpush.bf16.msra.mxu3 %v4996_v2  ;;  %v4963_v27 = vld [vmem:[%s6612_s0 + $0x320] sm:$0xff]  ;;  %v4964_v31 = vld [vmem:[%s6612_s0 + $0x328] sm:$0xff]  ;;  %v4869_v32 = vld [vmem:[%s6612_s0 + $0x30] sm:$0xff] }
   0xc   :  { %v4901_v33 = vld [vmem:[%s6612_s0 + $0x130] sm:$0xff]  ;;  %v4870_v36 = vld [vmem:[%s6612_s0 + $0x38] sm:$0xff]  ;;  %v4871_v40 = vld [vmem:[%s6612_s0 + $0x40] sm:$0xff] }
   0xd   :  { %v4933_v34 = vld [vmem:[%s6612_s0 + $0x230] sm:$0xff]  ;;  %v4902_v37 = vld [vmem:[%s6612_s0 + $0x138] sm:$0xff]  ;;  %v4903_v41 = vld [vmem:[%s6612_s0 + $0x140] sm:$0xff] }
   0xe   :  { %1618 = vmatpush.bf16.msra.mxu0 %v4995_v3  ;;  %5775 = vmatpush.bf16.msra.mxu1 %v4995_v3  ;;  %v4965_v35 = vld [vmem:[%s6612_s0 + $0x330] sm:$0xff]  ;;  %v4934_v38 = vld [vmem:[%s6612_s0 + $0x238] sm:$0xff]  ;;  %v4935_v44 = vld [vmem:[%s6612_s0 + $0x240] sm:$0xff] }
   0xf   :  { %5776 = vmatpush.bf16.msra.mxu2 %v4995_v3  ;;  %5777 = vmatpush.bf16.msra.mxu3 %v4995_v3  ;;  %v4966_v39 = vld [vmem:[%s6612_s0 + $0x338] sm:$0xff]  ;;  %v4967_v45 = vld [vmem:[%s6612_s0 + $0x340] sm:$0xff]  ;;  %v4872_v0 = vld [vmem:[%s6612_s0 + $0x48] sm:$0xff] }
  0x10   :  { %v4904_v1 = vld [vmem:[%s6612_s0 + $0x148] sm:$0xff] }
  0x11   :  { %v4936_v2 = vld [vmem:[%s6612_s0 + $0x248] sm:$0xff] }
  0x12   :  { %1619 = vmatpush.bf16.msra.mxu0 %v4994_v4  ;;  %5778 = vmatpush.bf16.msra.mxu1 %v4994_v4 }
  0x13   :  { %5779 = vmatpush.bf16.msra.mxu2 %v4994_v4  ;;  %5780 = vmatpush.bf16.msra.mxu3 %v4994_v4 }
  0x16   :  { %1620 = vmatpush.bf16.msra.mxu0 %v4993_v5  ;;  %5781 = vmatpush.bf16.msra.mxu1 %v4993_v5 }
  0x17   :  { %5782 = vmatpush.bf16.msra.mxu2 %v4993_v5  ;;  %5783 = vmatpush.bf16.msra.mxu3 %v4993_v5 }
  0x1a   :  { %1621 = vmatpush.bf16.msra.mxu0 %v4992_v6  ;;  %5784 = vmatpush.bf16.msra.mxu1 %v4992_v6 }
  0x1b   :  { %5785 = vmatpush.bf16.msra.mxu2 %v4992_v6  ;;  %5786 = vmatpush.bf16.msra.mxu3 %v4992_v6 }
  0x1e   :  { %1622 = vmatpush.bf16.msra.mxu0 %v4991_v7  ;;  %5787 = vmatpush.bf16.msra.mxu1 %v4991_v7 }
  0x1f   :  { %5788 = vmatpush.bf16.msra.mxu2 %v4991_v7  ;;  %5789 = vmatpush.bf16.msra.mxu3 %v4991_v7  ;;  %v4968_v7 = vld [vmem:[%s6612_s0 + $0x348] sm:$0xff] }
  0x21   :  { %1623 = vmatmul.bf16.vlgmr.msra.gmra.mxu0 %v4863_v8  ;;  %1783 = vmatmul.bf16.vlgmr.msra.gmra.mxu1 %v4895_v9 }
  0x22   :  { %1943 = vmatmul.bf16.vlgmr.msra.gmra.mxu2 %v4927_v10  ;;  %2103 = vmatmul.bf16.vlgmr.msra.gmra.mxu3 %v4959_v11 }
  0x31   :  { %1628 = vmatmul.bf16.gmra.mxu0 %v4864_v12  ;;  %1788 = vmatmul.bf16.gmra.mxu1 %v4896_v13 }
  0x32   :  { %1948 = vmatmul.bf16.gmra.mxu2 %v4928_v14  ;;  %2108 = vmatmul.bf16.gmra.mxu3 %v4960_v15 }
  0x41   :  { %1633 = vmatmul.bf16.gmra.mxu0 %v4865_v16  ;;  %1793 = vmatmul.bf16.gmra.mxu1 %v4897_v17 }
  0x42   :  { %1953 = vmatmul.bf16.gmra.mxu2 %v4929_v18  ;;  %2113 = vmatmul.bf16.gmra.mxu3 %v4961_v19 }
  0x51   :  { %1638 = vmatmul.bf16.gmra.mxu0 %v4866_v20  ;;  %1798 = vmatmul.bf16.gmra.mxu1 %v4898_v21 }
  0x52   :  { %1958 = vmatmul.bf16.gmra.mxu2 %v4930_v22  ;;  %2118 = vmatmul.bf16.gmra.mxu3 %v4962_v23 }
  0x61   :  { %1643 = vmatmul.bf16.gmra.mxu0 %v4867_v24  ;;  %1803 = vmatmul.bf16.gmra.mxu1 %v4899_v25 }
  0x62   :  { %1963 = vmatmul.bf16.gmra.mxu2 %v4931_v26  ;;  %2123 = vmatmul.bf16.gmra.mxu3 %v4963_v27 }
  0x71   :  { %1648 = vmatmul.bf16.gmra.mxu0 %v4868_v28  ;;  %1808 = vmatmul.bf16.gmra.mxu1 %v4900_v29 }
  0x72   :  { %1968 = vmatmul.bf16.gmra.mxu2 %v4932_v30  ;;  %2128 = vmatmul.bf16.gmra.mxu3 %v4964_v31 }
  0x81   :  { %1653 = vmatmul.bf16.gmra.mxu0 %v4869_v32  ;;  %1813 = vmatmul.bf16.gmra.mxu1 %v4901_v33  ;;  %v4873_v32 = vld [vmem:[%s6612_s0 + $0x50] sm:$0xff] }
  0x82   :  { %1973 = vmatmul.bf16.gmra.mxu2 %v4933_v34  ;;  %2133 = vmatmul.bf16.gmra.mxu3 %v4965_v35  ;;  %v4905_v33 = vld [vmem:[%s6612_s0 + $0x150] sm:$0xff] }
  0x83   :  { %v4937_v34 = vld [vmem:[%s6612_s0 + $0x250] sm:$0xff] }
  0x91   :  { %1658 = vmatmul.bf16.gmra.mxu0 %v4870_v36  ;;  %1818 = vmatmul.bf16.gmra.mxu1 %v4902_v37 }
  0x92   :  { %1978 = vmatmul.bf16.gmra.mxu2 %v4934_v38  ;;  %2138 = vmatmul.bf16.gmra.mxu3 %v4966_v39  ;;  %v4969_v39 = vld [vmem:[%s6612_s0 + $0x350] sm:$0xff] }
  0x9e   :  { %v1624_v42 = vpop.f32.mrf.mxu0  ;;  %v1784_v43 = vpop.f32.mrf.mxu1 }
  0x9f   :  { %v3291_v46 = vmul.f32 0.2, %v1624_v42  ;;  %v3355_v47 = vmul.f32 0.2, %v1784_v43  ;;  %vm3035_vm0 = vcmp.gt.f32.partialorder %v1624_v42, 0.0  ;;  %vm3099_vm1 = vcmp.gt.f32.partialorder %v1784_v43, 0.0 }
  0xa1   :  { %1663 = vmatmul.bf16.gmra.mxu0 %v4871_v40  ;;  %1823 = vmatmul.bf16.gmra.mxu1 %v4903_v41  ;;  %v3547_v54 = vsel %vm3035_vm0, %v1624_v42, %v3291_v46  ;;  %v3611_v55 = vsel %vm3099_vm1, %v1784_v43, %v3355_v47 }
  0xa2   :  { %1983 = vmatmul.bf16.gmra.mxu2 %v4935_v44  ;;  %2143 = vmatmul.bf16.gmra.mxu3 %v4967_v45 }
  0xa5   :  { %v1944_v48 = vpop.f32.mrf.mxu2  ;;  %v2104_v49 = vpop.f32.mrf.mxu3 }
  0xa6   :  { %v1626_v50 = vpop.f32.mrf.mxu0  ;;  %v1786_v51 = vpop.f32.mrf.mxu1  ;;  %v3419_v60 = vmul.f32 0.2, %v1944_v48  ;;  %v3483_v61 = vmul.f32 0.2, %v2104_v49  ;;  %vm3163_vm4 = vcmp.gt.f32.partialorder %v1944_v48, 0.0  ;;  %vm3227_vm5 = vcmp.gt.f32.partialorder %v2104_v49, 0.0 }
  0xa7   :  { %vm3036_vm2 = vcmp.gt.f32.partialorder %v1626_v50, 0.0  ;;  %v3292_v52 = vmul.f32 0.2, %v1626_v50  ;;  %vm3100_vm3 = vcmp.gt.f32.partialorder %v1786_v51, 0.0  ;;  %v3356_v53 = vmul.f32 0.2, %v1786_v51 }
  0xa8   :  { %v3675_v8 = vsel %vm3163_vm4, %v1944_v48, %v3419_v60  ;;  %v3739_v9 = vsel %vm3227_vm5, %v2104_v49, %v3483_v61 }
  0xa9   :  { %v3548_v56 = vsel %vm3036_vm2, %v1626_v50, %v3292_v52  ;;  %v3612_v57 = vsel %vm3100_vm3, %v1786_v51, %v3356_v53 }
  0xaa   :  { %v5002_v58 = vpack.c.bf16 %v3548_v56, %v3547_v54  ;;  %v5162_v59 = vpack.c.bf16 %v3612_v57, %v3611_v55 }
  0xac   :  { %5003 = vst [vmem:[%s6613_s2] sm:$0xff] %v5002_v58  }
  0xad   :  { %5670 = vst [vmem:[%s6613_s2 + $0x100] sm:$0xff] %v5162_v59   ;;  %v1946_v62 = vpop.f32.mrf.mxu2  ;;  %v2106_v63 = vpop.f32.mrf.mxu3 }
  0xae   :  { %vm3164_vm6 = vcmp.gt.f32.partialorder %v1946_v62, 0.0  ;;  %v3420_v3 = vmul.f32 0.2, %v1946_v62  ;;  %vm3228_vm7 = vcmp.gt.f32.partialorder %v2106_v63, 0.0  ;;  %v3484_v4 = vmul.f32 0.2, %v2106_v63  ;;  %v1629_v5 = vpop.f32.mrf.mxu0  ;;  %v1789_v6 = vpop.f32.mrf.mxu1 }
  0xaf   :  { %v3293_v14 = vmul.f32 0.2, %v1629_v5  ;;  %v3357_v15 = vmul.f32 0.2, %v1789_v6  ;;  %vm3037_vm8 = vcmp.gt.f32.partialorder %v1629_v5, 0.0  ;;  %vm3101_vm9 = vcmp.gt.f32.partialorder %v1789_v6, 0.0 }
  0xb0   :  { %v3676_v10 = vsel %vm3164_vm6, %v1946_v62, %v3420_v3  ;;  %v3740_v11 = vsel %vm3228_vm7, %v2106_v63, %v3484_v4 }
  0xb1   :  { %v5322_v12 = vpack.c.bf16 %v3676_v10, %v3675_v8  ;;  %v5482_v13 = vpack.c.bf16 %v3740_v11, %v3739_v9  ;;  %1668 = vmatmul.bf16.gmra.mxu0 %v4872_v0  ;;  %1828 = vmatmul.bf16.gmra.mxu1 %v4904_v1  ;;  %v3549_v22 = vsel %vm3037_vm8, %v1629_v5, %v3293_v14  ;;  %v4874_v0 = vld [vmem:[%s6612_s0 + $0x58] sm:$0xff] }
  0xb2   :  { %1988 = vmatmul.bf16.gmra.mxu2 %v4936_v2  ;;  %2148 = vmatmul.bf16.gmra.mxu3 %v4968_v7  ;;  %v3613_v23 = vsel %vm3101_vm9, %v1789_v6, %v3357_v15  ;;  %v4906_v1 = vld [vmem:[%s6612_s0 + $0x158] sm:$0xff] }
  0xb3   :  { %5702 = vst [vmem:[%s6613_s2 + $0x200] sm:$0xff] %v5322_v12   ;;  %v4938_v2 = vld [vmem:[%s6612_s0 + $0x258] sm:$0xff] }
  0xb4   :  { %5734 = vst [vmem:[%s6613_s2 + $0x300] sm:$0xff] %v5482_v13   ;;  %v4970_v7 = vld [vmem:[%s6612_s0 + $0x358] sm:$0xff] }
  0xb5   :  { %v1949_v16 = vpop.f32.mrf.mxu2  ;;  %v2109_v17 = vpop.f32.mrf.mxu3 }
  0xb6   :  { %v1631_v18 = vpop.f32.mrf.mxu0  ;;  %v1791_v19 = vpop.f32.mrf.mxu1  ;;  %v3421_v28 = vmul.f32 0.2, %v1949_v16  ;;  %v3485_v29 = vmul.f32 0.2, %v2109_v17  ;;  %vm3165_vm12 = vcmp.gt.f32.partialorder %v1949_v16, 0.0  ;;  %vm3229_vm13 = vcmp.gt.f32.partialorder %v2109_v17, 0.0 }
  0xb7   :  { %vm3038_vm10 = vcmp.gt.f32.partialorder %v1631_v18, 0.0  ;;  %v3294_v20 = vmul.f32 0.2, %v1631_v18  ;;  %vm3102_vm11 = vcmp.gt.f32.partialorder %v1791_v19, 0.0  ;;  %v3358_v21 = vmul.f32 0.2, %v1791_v19 }
  0xb8   :  { %v3677_v40 = vsel %vm3165_vm12, %v1949_v16, %v3421_v28  ;;  %v3741_v41 = vsel %vm3229_vm13, %v2109_v17, %v3485_v29 }
  0xb9   :  { %v3550_v24 = vsel %vm3038_vm10, %v1631_v18, %v3294_v20  ;;  %v3614_v25 = vsel %vm3102_vm11, %v1791_v19, %v3358_v21 }
  0xba   :  { %v5007_v26 = vpack.c.bf16 %v3550_v24, %v3549_v22  ;;  %v5167_v27 = vpack.c.bf16 %v3614_v25, %v3613_v23 }
  0xbc   :  { %5639 = vst [vmem:[%s6613_s2 + $0x8] sm:$0xff] %v5007_v26  }
  0xbd   :  { %5671 = vst [vmem:[%s6613_s2 + $0x108] sm:$0xff] %v5167_v27   ;;  %v1951_v30 = vpop.f32.mrf.mxu2  ;;  %v2111_v31 = vpop.f32.mrf.mxu3 }
  0xbe   :  { %vm3166_vm14 = vcmp.gt.f32.partialorder %v1951_v30, 0.0  ;;  %v3422_v35 = vmul.f32 0.2, %v1951_v30  ;;  %vm3230_vm15 = vcmp.gt.f32.partialorder %v2111_v31, 0.0  ;;  %v3486_v36 = vmul.f32 0.2, %v2111_v31  ;;  %v1634_v37 = vpop.f32.mrf.mxu0  ;;  %v1794_v38 = vpop.f32.mrf.mxu1 }
  0xbf   :  { %v3295_v46 = vmul.f32 0.2, %v1634_v37  ;;  %v3359_v47 = vmul.f32 0.2, %v1794_v38  ;;  %vm3039_vm0 = vcmp.gt.f32.partialorder %v1634_v37, 0.0  ;;  %vm3103_vm1 = vcmp.gt.f32.partialorder %v1794_v38, 0.0 }
  0xc0   :  { %v3678_v42 = vsel %vm3166_vm14, %v1951_v30, %v3422_v35  ;;  %v3742_v43 = vsel %vm3230_vm15, %v2111_v31, %v3486_v36 }
  0xc1   :  { %v5327_v44 = vpack.c.bf16 %v3678_v42, %v3677_v40  ;;  %v5487_v45 = vpack.c.bf16 %v3742_v43, %v3741_v41  ;;  %1673 = vmatmul.bf16.gmra.mxu0 %v4873_v32  ;;  %1833 = vmatmul.bf16.gmra.mxu1 %v4905_v33  ;;  %v3551_v54 = vsel %vm3039_vm0, %v1634_v37, %v3295_v46  ;;  %v4875_v32 = vld [vmem:[%s6612_s0 + $0x60] sm:$0xff] }
  0xc2   :  { %1993 = vmatmul.bf16.gmra.mxu2 %v4937_v34  ;;  %2153 = vmatmul.bf16.gmra.mxu3 %v4969_v39  ;;  %v3615_v55 = vsel %vm3103_vm1, %v1794_v38, %v3359_v47  ;;  %v4907_v33 = vld [vmem:[%s6612_s0 + $0x160] sm:$0xff] }
  0xc3   :  { %5703 = vst [vmem:[%s6613_s2 + $0x208] sm:$0xff] %v5327_v44   ;;  %v4939_v34 = vld [vmem:[%s6612_s0 + $0x260] sm:$0xff] }
  0xc4   :  { %5735 = vst [vmem:[%s6613_s2 + $0x308] sm:$0xff] %v5487_v45   ;;  %v4971_v39 = vld [vmem:[%s6612_s0 + $0x360] sm:$0xff] }
  0xc5   :  { %v1954_v48 = vpop.f32.mrf.mxu2  ;;  %v2114_v49 = vpop.f32.mrf.mxu3 }
  0xc6   :  { %v1636_v50 = vpop.f32.mrf.mxu0  ;;  %v1796_v51 = vpop.f32.mrf.mxu1  ;;  %v3423_v60 = vmul.f32 0.2, %v1954_v48  ;;  %v3487_v61 = vmul.f32 0.2, %v2114_v49  ;;  %vm3167_vm4 = vcmp.gt.f32.partialorder %v1954_v48, 0.0  ;;  %vm3231_vm5 = vcmp.gt.f32.partialorder %v2114_v49, 0.0 }
  0xc7   :  { %vm3040_vm2 = vcmp.gt.f32.partialorder %v1636_v50, 0.0  ;;  %v3296_v52 = vmul.f32 0.2, %v1636_v50  ;;  %vm3104_vm3 = vcmp.gt.f32.partialorder %v1796_v51, 0.0  ;;  %v3360_v53 = vmul.f32 0.2, %v1796_v51 }
  0xc8   :  { %v3679_v8 = vsel %vm3167_vm4, %v1954_v48, %v3423_v60  ;;  %v3743_v9 = vsel %vm3231_vm5, %v2114_v49, %v3487_v61 }
  0xc9   :  { %v3552_v56 = vsel %vm3040_vm2, %v1636_v50, %v3296_v52  ;;  %v3616_v57 = vsel %vm3104_vm3, %v1796_v51, %v3360_v53 }
  0xca   :  { %v5012_v58 = vpack.c.bf16 %v3552_v56, %v3551_v54  ;;  %v5172_v59 = vpack.c.bf16 %v3616_v57, %v3615_v55 }
  0xcc   :  { %5640 = vst [vmem:[%s6613_s2 + $0x10] sm:$0xff] %v5012_v58  }
  0xcd   :  { %5672 = vst [vmem:[%s6613_s2 + $0x110] sm:$0xff] %v5172_v59   ;;  %v1956_v62 = vpop.f32.mrf.mxu2  ;;  %v2116_v63 = vpop.f32.mrf.mxu3 }
  0xce   :  { %vm3168_vm6 = vcmp.gt.f32.partialorder %v1956_v62, 0.0  ;;  %v3424_v3 = vmul.f32 0.2, %v1956_v62  ;;  %vm3232_vm7 = vcmp.gt.f32.partialorder %v2116_v63, 0.0  ;;  %v3488_v4 = vmul.f32 0.2, %v2116_v63  ;;  %v1639_v5 = vpop.f32.mrf.mxu0  ;;  %v1799_v6 = vpop.f32.mrf.mxu1 }
  0xcf   :  { %v3297_v14 = vmul.f32 0.2, %v1639_v5  ;;  %v3361_v15 = vmul.f32 0.2, %v1799_v6  ;;  %vm3041_vm8 = vcmp.gt.f32.partialorder %v1639_v5, 0.0  ;;  %vm3105_vm9 = vcmp.gt.f32.partialorder %v1799_v6, 0.0 }
  0xd0   :  { %v3680_v10 = vsel %vm3168_vm6, %v1956_v62, %v3424_v3  ;;  %v3744_v11 = vsel %vm3232_vm7, %v2116_v63, %v3488_v4 }
  0xd1   :  { %v5332_v12 = vpack.c.bf16 %v3680_v10, %v3679_v8  ;;  %v5492_v13 = vpack.c.bf16 %v3744_v11, %v3743_v9  ;;  %1678 = vmatmul.bf16.gmra.mxu0 %v4874_v0  ;;  %1838 = vmatmul.bf16.gmra.mxu1 %v4906_v1  ;;  %v3553_v22 = vsel %vm3041_vm8, %v1639_v5, %v3297_v14  ;;  %v4876_v0 = vld [vmem:[%s6612_s0 + $0x68] sm:$0xff] }
  0xd2   :  { %1998 = vmatmul.bf16.gmra.mxu2 %v4938_v2  ;;  %2158 = vmatmul.bf16.gmra.mxu3 %v4970_v7  ;;  %v3617_v23 = vsel %vm3105_vm9, %v1799_v6, %v3361_v15  ;;  %v4908_v1 = vld [vmem:[%s6612_s0 + $0x168] sm:$0xff] }
  0xd3   :  { %5704 = vst [vmem:[%s6613_s2 + $0x210] sm:$0xff] %v5332_v12   ;;  %v4940_v2 = vld [vmem:[%s6612_s0 + $0x268] sm:$0xff] }
  0xd4   :  { %5736 = vst [vmem:[%s6613_s2 + $0x310] sm:$0xff] %v5492_v13   ;;  %v4972_v7 = vld [vmem:[%s6612_s0 + $0x368] sm:$0xff] }
  0xd5   :  { %v1959_v16 = vpop.f32.mrf.mxu2  ;;  %v2119_v17 = vpop.f32.mrf.mxu3 }
  0xd6   :  { %v1641_v18 = vpop.f32.mrf.mxu0  ;;  %v1801_v19 = vpop.f32.mrf.mxu1  ;;  %v3425_v28 = vmul.f32 0.2, %v1959_v16  ;;  %v3489_v29 = vmul.f32 0.2, %v2119_v17  ;;  %vm3169_vm12 = vcmp.gt.f32.partialorder %v1959_v16, 0.0  ;;  %vm3233_vm13 = vcmp.gt.f32.partialorder %v2119_v17, 0.0 }
  0xd7   :  { %vm3042_vm10 = vcmp.gt.f32.partialorder %v1641_v18, 0.0  ;;  %v3298_v20 = vmul.f32 0.2, %v1641_v18  ;;  %vm3106_vm11 = vcmp.gt.f32.partialorder %v1801_v19, 0.0  ;;  %v3362_v21 = vmul.f32 0.2, %v1801_v19 }
  0xd8   :  { %v3681_v40 = vsel %vm3169_vm12, %v1959_v16, %v3425_v28  ;;  %v3745_v41 = vsel %vm3233_vm13, %v2119_v17, %v3489_v29 }
  0xd9   :  { %v3554_v24 = vsel %vm3042_vm10, %v1641_v18, %v3298_v20  ;;  %v3618_v25 = vsel %vm3106_vm11, %v1801_v19, %v3362_v21 }
  0xda   :  { %v5017_v26 = vpack.c.bf16 %v3554_v24, %v3553_v22  ;;  %v5177_v27 = vpack.c.bf16 %v3618_v25, %v3617_v23 }
  0xdc   :  { %5641 = vst [vmem:[%s6613_s2 + $0x18] sm:$0xff] %v5017_v26  }
  0xdd   :  { %5673 = vst [vmem:[%s6613_s2 + $0x118] sm:$0xff] %v5177_v27   ;;  %v1961_v30 = vpop.f32.mrf.mxu2  ;;  %v2121_v31 = vpop.f32.mrf.mxu3 }
  0xde   :  { %vm3170_vm14 = vcmp.gt.f32.partialorder %v1961_v30, 0.0  ;;  %v3426_v35 = vmul.f32 0.2, %v1961_v30  ;;  %vm3234_vm15 = vcmp.gt.f32.partialorder %v2121_v31, 0.0  ;;  %v3490_v36 = vmul.f32 0.2, %v2121_v31  ;;  %v1644_v37 = vpop.f32.mrf.mxu0  ;;  %v1804_v38 = vpop.f32.mrf.mxu1 }
  0xdf   :  { %v3299_v46 = vmul.f32 0.2, %v1644_v37  ;;  %v3363_v47 = vmul.f32 0.2, %v1804_v38  ;;  %vm3043_vm0 = vcmp.gt.f32.partialorder %v1644_v37, 0.0  ;;  %vm3107_vm1 = vcmp.gt.f32.partialorder %v1804_v38, 0.0 }
  0xe0   :  { %v3682_v42 = vsel %vm3170_vm14, %v1961_v30, %v3426_v35  ;;  %v3746_v43 = vsel %vm3234_vm15, %v2121_v31, %v3490_v36 }
  0xe1   :  { %v5337_v44 = vpack.c.bf16 %v3682_v42, %v3681_v40  ;;  %v5497_v45 = vpack.c.bf16 %v3746_v43, %v3745_v41  ;;  %1683 = vmatmul.bf16.gmra.mxu0 %v4875_v32  ;;  %1843 = vmatmul.bf16.gmra.mxu1 %v4907_v33  ;;  %v3555_v54 = vsel %vm3043_vm0, %v1644_v37, %v3299_v46  ;;  %v4877_v32 = vld [vmem:[%s6612_s0 + $0x70] sm:$0xff] }
  0xe2   :  { %2003 = vmatmul.bf16.gmra.mxu2 %v4939_v34  ;;  %2163 = vmatmul.bf16.gmra.mxu3 %v4971_v39  ;;  %v3619_v55 = vsel %vm3107_vm1, %v1804_v38, %v3363_v47  ;;  %v4909_v33 = vld [vmem:[%s6612_s0 + $0x170] sm:$0xff] }
  0xe3   :  { %5705 = vst [vmem:[%s6613_s2 + $0x218] sm:$0xff] %v5337_v44   ;;  %v4941_v34 = vld [vmem:[%s6612_s0 + $0x270] sm:$0xff] }
  0xe4   :  { %5737 = vst [vmem:[%s6613_s2 + $0x318] sm:$0xff] %v5497_v45   ;;  %v4973_v39 = vld [vmem:[%s6612_s0 + $0x370] sm:$0xff] }
  0xe5   :  { %v1964_v48 = vpop.f32.mrf.mxu2  ;;  %v2124_v49 = vpop.f32.mrf.mxu3 }
  0xe6   :  { %v1646_v50 = vpop.f32.mrf.mxu0  ;;  %v1806_v51 = vpop.f32.mrf.mxu1  ;;  %v3427_v60 = vmul.f32 0.2, %v1964_v48  ;;  %v3491_v61 = vmul.f32 0.2, %v2124_v49  ;;  %vm3171_vm4 = vcmp.gt.f32.partialorder %v1964_v48, 0.0  ;;  %vm3235_vm5 = vcmp.gt.f32.partialorder %v2124_v49, 0.0 }
  0xe7   :  { %vm3044_vm2 = vcmp.gt.f32.partialorder %v1646_v50, 0.0  ;;  %v3300_v52 = vmul.f32 0.2, %v1646_v50  ;;  %vm3108_vm3 = vcmp.gt.f32.partialorder %v1806_v51, 0.0  ;;  %v3364_v53 = vmul.f32 0.2, %v1806_v51 }
  0xe8   :  { %v3683_v8 = vsel %vm3171_vm4, %v1964_v48, %v3427_v60  ;;  %v3747_v9 = vsel %vm3235_vm5, %v2124_v49, %v3491_v61 }
  0xe9   :  { %v3556_v56 = vsel %vm3044_vm2, %v1646_v50, %v3300_v52  ;;  %v3620_v57 = vsel %vm3108_vm3, %v1806_v51, %v3364_v53 }
  0xea   :  { %v5022_v58 = vpack.c.bf16 %v3556_v56, %v3555_v54  ;;  %v5182_v59 = vpack.c.bf16 %v3620_v57, %v3619_v55 }
  0xec   :  { %5642 = vst [vmem:[%s6613_s2 + $0x20] sm:$0xff] %v5022_v58  }
  0xed   :  { %5674 = vst [vmem:[%s6613_s2 + $0x120] sm:$0xff] %v5182_v59   ;;  %v1966_v62 = vpop.f32.mrf.mxu2  ;;  %v2126_v63 = vpop.f32.mrf.mxu3 }
  0xee   :  { %vm3172_vm6 = vcmp.gt.f32.partialorder %v1966_v62, 0.0  ;;  %v3428_v3 = vmul.f32 0.2, %v1966_v62  ;;  %vm3236_vm7 = vcmp.gt.f32.partialorder %v2126_v63, 0.0  ;;  %v3492_v4 = vmul.f32 0.2, %v2126_v63  ;;  %v1649_v5 = vpop.f32.mrf.mxu0  ;;  %v1809_v6 = vpop.f32.mrf.mxu1 }
  0xef   :  { %v3301_v14 = vmul.f32 0.2, %v1649_v5  ;;  %v3365_v15 = vmul.f32 0.2, %v1809_v6  ;;  %vm3045_vm8 = vcmp.gt.f32.partialorder %v1649_v5, 0.0  ;;  %vm3109_vm9 = vcmp.gt.f32.partialorder %v1809_v6, 0.0 }
  0xf0   :  { %v3684_v10 = vsel %vm3172_vm6, %v1966_v62, %v3428_v3  ;;  %v3748_v11 = vsel %vm3236_vm7, %v2126_v63, %v3492_v4 }
  0xf1   :  { %v5342_v12 = vpack.c.bf16 %v3684_v10, %v3683_v8  ;;  %v5502_v13 = vpack.c.bf16 %v3748_v11, %v3747_v9  ;;  %1688 = vmatmul.bf16.gmra.mxu0 %v4876_v0  ;;  %1848 = vmatmul.bf16.gmra.mxu1 %v4908_v1  ;;  %v3557_v22 = vsel %vm3045_vm8, %v1649_v5, %v3301_v14  ;;  %v4878_v0 = vld [vmem:[%s6612_s0 + $0x78] sm:$0xff] }
  0xf2   :  { %2008 = vmatmul.bf16.gmra.mxu2 %v4940_v2  ;;  %2168 = vmatmul.bf16.gmra.mxu3 %v4972_v7  ;;  %v3621_v23 = vsel %vm3109_vm9, %v1809_v6, %v3365_v15  ;;  %v4910_v1 = vld [vmem:[%s6612_s0 + $0x178] sm:$0xff] }
  0xf3   :  { %5706 = vst [vmem:[%s6613_s2 + $0x220] sm:$0xff] %v5342_v12   ;;  %v4942_v2 = vld [vmem:[%s6612_s0 + $0x278] sm:$0xff] }
  0xf4   :  { %5738 = vst [vmem:[%s6613_s2 + $0x320] sm:$0xff] %v5502_v13   ;;  %v4974_v7 = vld [vmem:[%s6612_s0 + $0x378] sm:$0xff] }
  0xf5   :  { %v1969_v16 = vpop.f32.mrf.mxu2  ;;  %v2129_v17 = vpop.f32.mrf.mxu3 }
  0xf6   :  { %v1651_v18 = vpop.f32.mrf.mxu0  ;;  %v1811_v19 = vpop.f32.mrf.mxu1  ;;  %v3429_v28 = vmul.f32 0.2, %v1969_v16  ;;  %v3493_v29 = vmul.f32 0.2, %v2129_v17  ;;  %vm3173_vm12 = vcmp.gt.f32.partialorder %v1969_v16, 0.0  ;;  %vm3237_vm13 = vcmp.gt.f32.partialorder %v2129_v17, 0.0 }
  0xf7   :  { %vm3046_vm10 = vcmp.gt.f32.partialorder %v1651_v18, 0.0  ;;  %v3302_v20 = vmul.f32 0.2, %v1651_v18  ;;  %vm3110_vm11 = vcmp.gt.f32.partialorder %v1811_v19, 0.0  ;;  %v3366_v21 = vmul.f32 0.2, %v1811_v19 }
  0xf8   :  { %v3685_v40 = vsel %vm3173_vm12, %v1969_v16, %v3429_v28  ;;  %v3749_v41 = vsel %vm3237_vm13, %v2129_v17, %v3493_v29 }
  0xf9   :  { %v3558_v24 = vsel %vm3046_vm10, %v1651_v18, %v3302_v20  ;;  %v3622_v25 = vsel %vm3110_vm11, %v1811_v19, %v3366_v21 }
  0xfa   :  { %v5027_v26 = vpack.c.bf16 %v3558_v24, %v3557_v22  ;;  %v5187_v27 = vpack.c.bf16 %v3622_v25, %v3621_v23 }
  0xfc   :  { %5643 = vst [vmem:[%s6613_s2 + $0x28] sm:$0xff] %v5027_v26  }
  0xfd   :  { %5675 = vst [vmem:[%s6613_s2 + $0x128] sm:$0xff] %v5187_v27   ;;  %v1971_v30 = vpop.f32.mrf.mxu2  ;;  %v2131_v31 = vpop.f32.mrf.mxu3 }
  0xfe   :  { %vm3174_vm14 = vcmp.gt.f32.partialorder %v1971_v30, 0.0  ;;  %v3430_v35 = vmul.f32 0.2, %v1971_v30  ;;  %vm3238_vm15 = vcmp.gt.f32.partialorder %v2131_v31, 0.0  ;;  %v3494_v36 = vmul.f32 0.2, %v2131_v31  ;;  %v1654_v37 = vpop.f32.mrf.mxu0  ;;  %v1814_v38 = vpop.f32.mrf.mxu1 }
  0xff   :  { %v3303_v46 = vmul.f32 0.2, %v1654_v37  ;;  %v3367_v47 = vmul.f32 0.2, %v1814_v38  ;;  %vm3047_vm0 = vcmp.gt.f32.partialorder %v1654_v37, 0.0  ;;  %vm3111_vm1 = vcmp.gt.f32.partialorder %v1814_v38, 0.0 }
 0x100   :  { %v3686_v42 = vsel %vm3174_vm14, %v1971_v30, %v3430_v35  ;;  %v3750_v43 = vsel %vm3238_vm15, %v2131_v31, %v3494_v36 }
 0x101   :  { %v5347_v44 = vpack.c.bf16 %v3686_v42, %v3685_v40  ;;  %v5507_v45 = vpack.c.bf16 %v3750_v43, %v3749_v41  ;;  %1693 = vmatmul.bf16.gmra.mxu0 %v4877_v32  ;;  %1853 = vmatmul.bf16.gmra.mxu1 %v4909_v33  ;;  %v3559_v54 = vsel %vm3047_vm0, %v1654_v37, %v3303_v46  ;;  %v4879_v32 = vld [vmem:[%s6612_s0 + $0x80] sm:$0xff] }
 0x102   :  { %2013 = vmatmul.bf16.gmra.mxu2 %v4941_v34  ;;  %2173 = vmatmul.bf16.gmra.mxu3 %v4973_v39  ;;  %v3623_v55 = vsel %vm3111_vm1, %v1814_v38, %v3367_v47  ;;  %v4911_v33 = vld [vmem:[%s6612_s0 + $0x180] sm:$0xff] }
 0x103   :  { %5707 = vst [vmem:[%s6613_s2 + $0x228] sm:$0xff] %v5347_v44   ;;  %v4943_v34 = vld [vmem:[%s6612_s0 + $0x280] sm:$0xff] }
 0x104   :  { %5739 = vst [vmem:[%s6613_s2 + $0x328] sm:$0xff] %v5507_v45   ;;  %v4975_v39 = vld [vmem:[%s6612_s0 + $0x380] sm:$0xff] }
 0x105   :  { %v1974_v48 = vpop.f32.mrf.mxu2  ;;  %v2134_v49 = vpop.f32.mrf.mxu3 }
 0x106   :  { %v1656_v50 = vpop.f32.mrf.mxu0  ;;  %v1816_v51 = vpop.f32.mrf.mxu1  ;;  %v3431_v60 = vmul.f32 0.2, %v1974_v48  ;;  %v3495_v61 = vmul.f32 0.2, %v2134_v49  ;;  %vm3175_vm4 = vcmp.gt.f32.partialorder %v1974_v48, 0.0  ;;  %vm3239_vm5 = vcmp.gt.f32.partialorder %v2134_v49, 0.0 }
 0x107   :  { %vm3048_vm2 = vcmp.gt.f32.partialorder %v1656_v50, 0.0  ;;  %v3304_v52 = vmul.f32 0.2, %v1656_v50  ;;  %vm3112_vm3 = vcmp.gt.f32.partialorder %v1816_v51, 0.0  ;;  %v3368_v53 = vmul.f32 0.2, %v1816_v51 }
 0x108   :  { %v3687_v8 = vsel %vm3175_vm4, %v1974_v48, %v3431_v60  ;;  %v3751_v9 = vsel %vm3239_vm5, %v2134_v49, %v3495_v61 }
 0x109   :  { %v3560_v56 = vsel %vm3048_vm2, %v1656_v50, %v3304_v52  ;;  %v3624_v57 = vsel %vm3112_vm3, %v1816_v51, %v3368_v53 }
 0x10a   :  { %v5032_v58 = vpack.c.bf16 %v3560_v56, %v3559_v54  ;;  %v5192_v59 = vpack.c.bf16 %v3624_v57, %v3623_v55 }
 0x10c   :  { %5644 = vst [vmem:[%s6613_s2 + $0x30] sm:$0xff] %v5032_v58  }
 0x10d   :  { %5676 = vst [vmem:[%s6613_s2 + $0x130] sm:$0xff] %v5192_v59   ;;  %v1976_v62 = vpop.f32.mrf.mxu2  ;;  %v2136_v63 = vpop.f32.mrf.mxu3 }
 0x10e   :  { %vm3176_vm6 = vcmp.gt.f32.partialorder %v1976_v62, 0.0  ;;  %v3432_v3 = vmul.f32 0.2, %v1976_v62  ;;  %vm3240_vm7 = vcmp.gt.f32.partialorder %v2136_v63, 0.0  ;;  %v3496_v4 = vmul.f32 0.2, %v2136_v63  ;;  %v1659_v5 = vpop.f32.mrf.mxu0  ;;  %v1819_v6 = vpop.f32.mrf.mxu1 }
 0x10f   :  { %v3305_v14 = vmul.f32 0.2, %v1659_v5  ;;  %v3369_v15 = vmul.f32 0.2, %v1819_v6  ;;  %vm3049_vm8 = vcmp.gt.f32.partialorder %v1659_v5, 0.0  ;;  %vm3113_vm9 = vcmp.gt.f32.partialorder %v1819_v6, 0.0 }
 0x110   :  { %v3688_v10 = vsel %vm3176_vm6, %v1976_v62, %v3432_v3  ;;  %v3752_v11 = vsel %vm3240_vm7, %v2136_v63, %v3496_v4 }
 0x111   :  { %v5352_v12 = vpack.c.bf16 %v3688_v10, %v3687_v8  ;;  %v5512_v13 = vpack.c.bf16 %v3752_v11, %v3751_v9  ;;  %1698 = vmatmul.bf16.gmra.mxu0 %v4878_v0  ;;  %1858 = vmatmul.bf16.gmra.mxu1 %v4910_v1  ;;  %v3561_v22 = vsel %vm3049_vm8, %v1659_v5, %v3305_v14  ;;  %v4880_v0 = vld [vmem:[%s6612_s0 + $0x88] sm:$0xff] }
 0x112   :  { %2018 = vmatmul.bf16.gmra.mxu2 %v4942_v2  ;;  %2178 = vmatmul.bf16.gmra.mxu3 %v4974_v7  ;;  %v3625_v23 = vsel %vm3113_vm9, %v1819_v6, %v3369_v15  ;;  %v4912_v1 = vld [vmem:[%s6612_s0 + $0x188] sm:$0xff] }
 0x113   :  { %5708 = vst [vmem:[%s6613_s2 + $0x230] sm:$0xff] %v5352_v12   ;;  %v4944_v2 = vld [vmem:[%s6612_s0 + $0x288] sm:$0xff] }
 0x114   :  { %5740 = vst [vmem:[%s6613_s2 + $0x330] sm:$0xff] %v5512_v13   ;;  %v4976_v7 = vld [vmem:[%s6612_s0 + $0x388] sm:$0xff] }
 0x115   :  { %v1979_v16 = vpop.f32.mrf.mxu2  ;;  %v2139_v17 = vpop.f32.mrf.mxu3 }
 0x116   :  { %v1661_v18 = vpop.f32.mrf.mxu0  ;;  %v1821_v19 = vpop.f32.mrf.mxu1  ;;  %v3433_v28 = vmul.f32 0.2, %v1979_v16  ;;  %v3497_v29 = vmul.f32 0.2, %v2139_v17  ;;  %vm3177_vm12 = vcmp.gt.f32.partialorder %v1979_v16, 0.0  ;;  %vm3241_vm13 = vcmp.gt.f32.partialorder %v2139_v17, 0.0 }
 0x117   :  { %vm3050_vm10 = vcmp.gt.f32.partialorder %v1661_v18, 0.0  ;;  %v3306_v20 = vmul.f32 0.2, %v1661_v18  ;;  %vm3114_vm11 = vcmp.gt.f32.partialorder %v1821_v19, 0.0  ;;  %v3370_v21 = vmul.f32 0.2, %v1821_v19 }
 0x118   :  { %v3689_v40 = vsel %vm3177_vm12, %v1979_v16, %v3433_v28  ;;  %v3753_v41 = vsel %vm3241_vm13, %v2139_v17, %v3497_v29 }
 0x119   :  { %v3562_v24 = vsel %vm3050_vm10, %v1661_v18, %v3306_v20  ;;  %v3626_v25 = vsel %vm3114_vm11, %v1821_v19, %v3370_v21 }
 0x11a   :  { %v5037_v26 = vpack.c.bf16 %v3562_v24, %v3561_v22  ;;  %v5197_v27 = vpack.c.bf16 %v3626_v25, %v3625_v23 }
 0x11c   :  { %5645 = vst [vmem:[%s6613_s2 + $0x38] sm:$0xff] %v5037_v26  }
 0x11d   :  { %5677 = vst [vmem:[%s6613_s2 + $0x138] sm:$0xff] %v5197_v27   ;;  %v1981_v30 = vpop.f32.mrf.mxu2  ;;  %v2141_v31 = vpop.f32.mrf.mxu3 }
 0x11e   :  { %vm3178_vm14 = vcmp.gt.f32.partialorder %v1981_v30, 0.0  ;;  %v3434_v35 = vmul.f32 0.2, %v1981_v30  ;;  %vm3242_vm15 = vcmp.gt.f32.partialorder %v2141_v31, 0.0  ;;  %v3498_v36 = vmul.f32 0.2, %v2141_v31  ;;  %v1664_v37 = vpop.f32.mrf.mxu0  ;;  %v1824_v38 = vpop.f32.mrf.mxu1 }
 0x11f   :  { %v3307_v46 = vmul.f32 0.2, %v1664_v37  ;;  %v3371_v47 = vmul.f32 0.2, %v1824_v38  ;;  %vm3051_vm0 = vcmp.gt.f32.partialorder %v1664_v37, 0.0  ;;  %vm3115_vm1 = vcmp.gt.f32.partialorder %v1824_v38, 0.0 }
 0x120   :  { %v3690_v42 = vsel %vm3178_vm14, %v1981_v30, %v3434_v35  ;;  %v3754_v43 = vsel %vm3242_vm15, %v2141_v31, %v3498_v36  ;;  %v4881_v31 = vld [vmem:[%s6612_s0 + $0x90] sm:$0xff] }
 0x121   :  { %v5357_v44 = vpack.c.bf16 %v3690_v42, %v3689_v40  ;;  %v5517_v45 = vpack.c.bf16 %v3754_v43, %v3753_v41  ;;  %1703 = vmatmul.bf16.gmra.mxu0 %v4879_v32  ;;  %1863 = vmatmul.bf16.gmra.mxu1 %v4911_v33  ;;  %v3563_v54 = vsel %vm3051_vm0, %v1664_v37, %v3307_v46  ;;  %v4913_v35 = vld [vmem:[%s6612_s0 + $0x190] sm:$0xff] }
 0x122   :  { %2023 = vmatmul.bf16.gmra.mxu2 %v4943_v34  ;;  %2183 = vmatmul.bf16.gmra.mxu3 %v4975_v39  ;;  %v3627_v55 = vsel %vm3115_vm1, %v1824_v38, %v3371_v47  ;;  %v4945_v36 = vld [vmem:[%s6612_s0 + $0x290] sm:$0xff] }
 0x123   :  { %5709 = vst [vmem:[%s6613_s2 + $0x238] sm:$0xff] %v5357_v44   ;;  %v4977_v39 = vld [vmem:[%s6612_s0 + $0x390] sm:$0xff] }
 0x124   :  { %5741 = vst [vmem:[%s6613_s2 + $0x338] sm:$0xff] %v5517_v45  }
 0x125   :  { %v1984_v48 = vpop.f32.mrf.mxu2  ;;  %v2144_v49 = vpop.f32.mrf.mxu3 }
 0x126   :  { %v1666_v50 = vpop.f32.mrf.mxu0  ;;  %v1826_v51 = vpop.f32.mrf.mxu1  ;;  %v3435_v60 = vmul.f32 0.2, %v1984_v48  ;;  %v3499_v61 = vmul.f32 0.2, %v2144_v49  ;;  %vm3179_vm4 = vcmp.gt.f32.partialorder %v1984_v48, 0.0  ;;  %vm3243_vm5 = vcmp.gt.f32.partialorder %v2144_v49, 0.0 }
 0x127   :  { %vm3052_vm2 = vcmp.gt.f32.partialorder %v1666_v50, 0.0  ;;  %v3308_v52 = vmul.f32 0.2, %v1666_v50  ;;  %vm3116_vm3 = vcmp.gt.f32.partialorder %v1826_v51, 0.0  ;;  %v3372_v53 = vmul.f32 0.2, %v1826_v51 }
 0x128   :  { %v3691_v8 = vsel %vm3179_vm4, %v1984_v48, %v3435_v60  ;;  %v3755_v9 = vsel %vm3243_vm5, %v2144_v49, %v3499_v61 }
 0x129   :  { %v3564_v56 = vsel %vm3052_vm2, %v1666_v50, %v3308_v52  ;;  %v3628_v57 = vsel %vm3116_vm3, %v1826_v51, %v3372_v53 }
 0x12a   :  { %v5042_v58 = vpack.c.bf16 %v3564_v56, %v3563_v54  ;;  %v5202_v59 = vpack.c.bf16 %v3628_v57, %v3627_v55 }
 0x12c   :  { %5646 = vst [vmem:[%s6613_s2 + $0x40] sm:$0xff] %v5042_v58  }
 0x12d   :  { %5678 = vst [vmem:[%s6613_s2 + $0x140] sm:$0xff] %v5202_v59   ;;  %v1986_v62 = vpop.f32.mrf.mxu2  ;;  %v2146_v63 = vpop.f32.mrf.mxu3 }
 0x12e   :  { %vm3180_vm6 = vcmp.gt.f32.partialorder %v1986_v62, 0.0  ;;  %v3436_v3 = vmul.f32 0.2, %v1986_v62  ;;  %vm3244_vm7 = vcmp.gt.f32.partialorder %v2146_v63, 0.0  ;;  %v3500_v4 = vmul.f32 0.2, %v2146_v63  ;;  %v1669_v5 = vpop.f32.mrf.mxu0  ;;  %v1829_v6 = vpop.f32.mrf.mxu1 }
 0x12f   :  { %v3309_v14 = vmul.f32 0.2, %v1669_v5  ;;  %vm3053_vm8 = vcmp.gt.f32.partialorder %v1669_v5, 0.0  ;;  %v3373_v16 = vmul.f32 0.2, %v1829_v6  ;;  %vm3117_vm9 = vcmp.gt.f32.partialorder %v1829_v6, 0.0 }
 0x130   :  { %v3692_v10 = vsel %vm3180_vm6, %v1986_v62, %v3436_v3  ;;  %v3756_v11 = vsel %vm3244_vm7, %v2146_v63, %v3500_v4  ;;  %v4882_v63 = vld [vmem:[%s6612_s0 + $0x98] sm:$0xff] }
 0x131   :  { %v5362_v12 = vpack.c.bf16 %v3692_v10, %v3691_v8  ;;  %v5522_v13 = vpack.c.bf16 %v3756_v11, %v3755_v9  ;;  %1708 = vmatmul.bf16.gmra.mxu0 %v4880_v0  ;;  %1868 = vmatmul.bf16.gmra.mxu1 %v4912_v1  ;;  %v3565_v22 = vsel %vm3053_vm8, %v1669_v5, %v3309_v14  ;;  %v4914_v3 = vld [vmem:[%s6612_s0 + $0x198] sm:$0xff] }
 0x132   :  { %2028 = vmatmul.bf16.gmra.mxu2 %v4944_v2  ;;  %2188 = vmatmul.bf16.gmra.mxu3 %v4976_v7  ;;  %v3629_v24 = vsel %vm3117_vm9, %v1829_v6, %v3373_v16  ;;  %v4946_v4 = vld [vmem:[%s6612_s0 + $0x298] sm:$0xff] }
 0x133   :  { %5710 = vst [vmem:[%s6613_s2 + $0x240] sm:$0xff] %v5362_v12   ;;  %v4978_v7 = vld [vmem:[%s6612_s0 + $0x398] sm:$0xff] }
 0x134   :  { %5742 = vst [vmem:[%s6613_s2 + $0x340] sm:$0xff] %v5522_v13  }
 0x135   :  { %v1989_v15 = vpop.f32.mrf.mxu2  ;;  %v2149_v17 = vpop.f32.mrf.mxu3 }
 0x136   :  { %v1671_v18 = vpop.f32.mrf.mxu0  ;;  %v1831_v20 = vpop.f32.mrf.mxu1  ;;  %v3437_v28 = vmul.f32 0.2, %v1989_v15  ;;  %vm3181_vm12 = vcmp.gt.f32.partialorder %v1989_v15, 0.0  ;;  %v3501_v29 = vmul.f32 0.2, %v2149_v17  ;;  %vm3245_vm13 = vcmp.gt.f32.partialorder %v2149_v17, 0.0 }
 0x137   :  { %vm3054_vm10 = vcmp.gt.f32.partialorder %v1671_v18, 0.0  ;;  %v3310_v19 = vmul.f32 0.2, %v1671_v18  ;;  %vm3118_vm11 = vcmp.gt.f32.partialorder %v1831_v20, 0.0  ;;  %v3374_v21 = vmul.f32 0.2, %v1831_v20 }
 0x138   :  { %v3693_v40 = vsel %vm3181_vm12, %v1989_v15, %v3437_v28  ;;  %v3757_v42 = vsel %vm3245_vm13, %v2149_v17, %v3501_v29 }
 0x139   :  { %v3566_v23 = vsel %vm3054_vm10, %v1671_v18, %v3310_v19  ;;  %v3630_v26 = vsel %vm3118_vm11, %v1831_v20, %v3374_v21 }
 0x13a   :  { %v5047_v25 = vpack.c.bf16 %v3566_v23, %v3565_v22  ;;  %v5207_v27 = vpack.c.bf16 %v3630_v26, %v3629_v24 }
 0x13c   :  { %5647 = vst [vmem:[%s6613_s2 + $0x48] sm:$0xff] %v5047_v25  }
 0x13d   :  { %5679 = vst [vmem:[%s6613_s2 + $0x148] sm:$0xff] %v5207_v27   ;;  %v1991_v30 = vpop.f32.mrf.mxu2  ;;  %v2151_v33 = vpop.f32.mrf.mxu3 }
 0x13e   :  { %vm3182_vm14 = vcmp.gt.f32.partialorder %v1991_v30, 0.0  ;;  %v3438_v32 = vmul.f32 0.2, %v1991_v30  ;;  %v1674_v34 = vpop.f32.mrf.mxu0  ;;  %vm3246_vm15 = vcmp.gt.f32.partialorder %v2151_v33, 0.0  ;;  %v3502_v37 = vmul.f32 0.2, %v2151_v33  ;;  %v1834_v38 = vpop.f32.mrf.mxu1 }
 0x13f   :  { %v3311_v46 = vmul.f32 0.2, %v1674_v34  ;;  %vm3055_vm0 = vcmp.gt.f32.partialorder %v1674_v34, 0.0  ;;  %v3375_v48 = vmul.f32 0.2, %v1834_v38  ;;  %vm3119_vm1 = vcmp.gt.f32.partialorder %v1834_v38, 0.0 }
 0x140   :  { %v3694_v41 = vsel %vm3182_vm14, %v1991_v30, %v3438_v32  ;;  %v3758_v44 = vsel %vm3246_vm15, %v2151_v33, %v3502_v37 }
 0x141   :  { %v5367_v43 = vpack.c.bf16 %v3694_v41, %v3693_v40  ;;  %1713 = vmatmul.bf16.gmra.mxu0 %v4881_v31  ;;  %v5527_v45 = vpack.c.bf16 %v3758_v44, %v3757_v42  ;;  %1873 = vmatmul.bf16.gmra.mxu1 %v4913_v35  ;;  %v3567_v54 = vsel %vm3055_vm0, %v1674_v34, %v3311_v46  ;;  %v4883_v31 = vld [vmem:[%s6612_s0 + $0xa0] sm:$0xff] }
 0x142   :  { %2033 = vmatmul.bf16.gmra.mxu2 %v4945_v36  ;;  %2193 = vmatmul.bf16.gmra.mxu3 %v4977_v39  ;;  %v3631_v56 = vsel %vm3119_vm1, %v1834_v38, %v3375_v48  ;;  %v4915_v35 = vld [vmem:[%s6612_s0 + $0x1a0] sm:$0xff] }
 0x143   :  { %5711 = vst [vmem:[%s6613_s2 + $0x248] sm:$0xff] %v5367_v43   ;;  %v4947_v36 = vld [vmem:[%s6612_s0 + $0x2a0] sm:$0xff] }
 0x144   :  { %5743 = vst [vmem:[%s6613_s2 + $0x348] sm:$0xff] %v5527_v45   ;;  %v4979_v39 = vld [vmem:[%s6612_s0 + $0x3a0] sm:$0xff] }
 0x145   :  { %v1994_v47 = vpop.f32.mrf.mxu2  ;;  %v2154_v49 = vpop.f32.mrf.mxu3 }
 0x146   :  { %v1676_v50 = vpop.f32.mrf.mxu0  ;;  %v1836_v52 = vpop.f32.mrf.mxu1  ;;  %v3439_v60 = vmul.f32 0.2, %v1994_v47  ;;  %vm3183_vm4 = vcmp.gt.f32.partialorder %v1994_v47, 0.0  ;;  %v3503_v61 = vmul.f32 0.2, %v2154_v49  ;;  %vm3247_vm5 = vcmp.gt.f32.partialorder %v2154_v49, 0.0 }
 0x147   :  { %vm3056_vm2 = vcmp.gt.f32.partialorder %v1676_v50, 0.0  ;;  %v3312_v51 = vmul.f32 0.2, %v1676_v50  ;;  %vm3120_vm3 = vcmp.gt.f32.partialorder %v1836_v52, 0.0  ;;  %v3376_v53 = vmul.f32 0.2, %v1836_v52 }
 0x148   :  { %v3695_v8 = vsel %vm3183_vm4, %v1994_v47, %v3439_v60  ;;  %v3759_v10 = vsel %vm3247_vm5, %v2154_v49, %v3503_v61 }
 0x149   :  { %v3568_v55 = vsel %vm3056_vm2, %v1676_v50, %v3312_v51  ;;  %v3632_v58 = vsel %vm3120_vm3, %v1836_v52, %v3376_v53 }
 0x14a   :  { %v5052_v57 = vpack.c.bf16 %v3568_v55, %v3567_v54  ;;  %v5212_v59 = vpack.c.bf16 %v3632_v58, %v3631_v56 }
 0x14c   :  { %5648 = vst [vmem:[%s6613_s2 + $0x50] sm:$0xff] %v5052_v57  }
 0x14d   :  { %5680 = vst [vmem:[%s6613_s2 + $0x150] sm:$0xff] %v5212_v59   ;;  %v1996_v62 = vpop.f32.mrf.mxu2  ;;  %v2156_v1 = vpop.f32.mrf.mxu3 }
 0x14e   :  { %vm3184_vm6 = vcmp.gt.f32.partialorder %v1996_v62, 0.0  ;;  %v3440_v0 = vmul.f32 0.2, %v1996_v62  ;;  %v1679_v2 = vpop.f32.mrf.mxu0  ;;  %vm3248_vm7 = vcmp.gt.f32.partialorder %v2156_v1, 0.0  ;;  %v3504_v5 = vmul.f32 0.2, %v2156_v1  ;;  %v1839_v6 = vpop.f32.mrf.mxu1 }
 0x14f   :  { %v3313_v14 = vmul.f32 0.2, %v1679_v2  ;;  %vm3057_vm8 = vcmp.gt.f32.partialorder %v1679_v2, 0.0  ;;  %v3377_v16 = vmul.f32 0.2, %v1839_v6  ;;  %vm3121_vm9 = vcmp.gt.f32.partialorder %v1839_v6, 0.0 }
 0x150   :  { %v3696_v9 = vsel %vm3184_vm6, %v1996_v62, %v3440_v0  ;;  %v3760_v12 = vsel %vm3248_vm7, %v2156_v1, %v3504_v5 }
 0x151   :  { %v5372_v11 = vpack.c.bf16 %v3696_v9, %v3695_v8  ;;  %1718 = vmatmul.bf16.gmra.mxu0 %v4882_v63  ;;  %v5532_v13 = vpack.c.bf16 %v3760_v12, %v3759_v10  ;;  %1878 = vmatmul.bf16.gmra.mxu1 %v4914_v3  ;;  %v3569_v22 = vsel %vm3057_vm8, %v1679_v2, %v3313_v14  ;;  %v4884_v63 = vld [vmem:[%s6612_s0 + $0xa8] sm:$0xff] }
 0x152   :  { %2038 = vmatmul.bf16.gmra.mxu2 %v4946_v4  ;;  %2198 = vmatmul.bf16.gmra.mxu3 %v4978_v7  ;;  %v3633_v24 = vsel %vm3121_vm9, %v1839_v6, %v3377_v16  ;;  %v4916_v3 = vld [vmem:[%s6612_s0 + $0x1a8] sm:$0xff] }
 0x153   :  { %5712 = vst [vmem:[%s6613_s2 + $0x250] sm:$0xff] %v5372_v11   ;;  %v4948_v4 = vld [vmem:[%s6612_s0 + $0x2a8] sm:$0xff] }
 0x154   :  { %5744 = vst [vmem:[%s6613_s2 + $0x350] sm:$0xff] %v5532_v13   ;;  %v4980_v7 = vld [vmem:[%s6612_s0 + $0x3a8] sm:$0xff] }
 0x155   :  { %v1999_v15 = vpop.f32.mrf.mxu2  ;;  %v2159_v17 = vpop.f32.mrf.mxu3 }
 0x156   :  { %v1681_v18 = vpop.f32.mrf.mxu0  ;;  %v1841_v20 = vpop.f32.mrf.mxu1  ;;  %v3441_v28 = vmul.f32 0.2, %v1999_v15  ;;  %vm3185_vm12 = vcmp.gt.f32.partialorder %v1999_v15, 0.0  ;;  %v3505_v29 = vmul.f32 0.2, %v2159_v17  ;;  %vm3249_vm13 = vcmp.gt.f32.partialorder %v2159_v17, 0.0 }
 0x157   :  { %vm3058_vm10 = vcmp.gt.f32.partialorder %v1681_v18, 0.0  ;;  %v3314_v19 = vmul.f32 0.2, %v1681_v18  ;;  %vm3122_vm11 = vcmp.gt.f32.partialorder %v1841_v20, 0.0  ;;  %v3378_v21 = vmul.f32 0.2, %v1841_v20 }
 0x158   :  { %v3697_v40 = vsel %vm3185_vm12, %v1999_v15, %v3441_v28  ;;  %v3761_v42 = vsel %vm3249_vm13, %v2159_v17, %v3505_v29 }
 0x159   :  { %v3570_v23 = vsel %vm3058_vm10, %v1681_v18, %v3314_v19  ;;  %v3634_v26 = vsel %vm3122_vm11, %v1841_v20, %v3378_v21 }
 0x15a   :  { %v5057_v25 = vpack.c.bf16 %v3570_v23, %v3569_v22  ;;  %v5217_v27 = vpack.c.bf16 %v3634_v26, %v3633_v24 }
 0x15c   :  { %5649 = vst [vmem:[%s6613_s2 + $0x58] sm:$0xff] %v5057_v25  }
 0x15d   :  { %5681 = vst [vmem:[%s6613_s2 + $0x158] sm:$0xff] %v5217_v27   ;;  %v2001_v30 = vpop.f32.mrf.mxu2  ;;  %v2161_v33 = vpop.f32.mrf.mxu3 }
 0x15e   :  { %vm3186_vm14 = vcmp.gt.f32.partialorder %v2001_v30, 0.0  ;;  %v3442_v32 = vmul.f32 0.2, %v2001_v30  ;;  %v1684_v34 = vpop.f32.mrf.mxu0  ;;  %vm3250_vm15 = vcmp.gt.f32.partialorder %v2161_v33, 0.0  ;;  %v3506_v37 = vmul.f32 0.2, %v2161_v33  ;;  %v1844_v38 = vpop.f32.mrf.mxu1 }
 0x15f   :  { %v3315_v46 = vmul.f32 0.2, %v1684_v34  ;;  %vm3059_vm0 = vcmp.gt.f32.partialorder %v1684_v34, 0.0  ;;  %v3379_v48 = vmul.f32 0.2, %v1844_v38  ;;  %vm3123_vm1 = vcmp.gt.f32.partialorder %v1844_v38, 0.0 }
 0x160   :  { %v3698_v41 = vsel %vm3186_vm14, %v2001_v30, %v3442_v32  ;;  %v3762_v44 = vsel %vm3250_vm15, %v2161_v33, %v3506_v37 }
 0x161   :  { %v5377_v43 = vpack.c.bf16 %v3698_v41, %v3697_v40  ;;  %1723 = vmatmul.bf16.gmra.mxu0 %v4883_v31  ;;  %v5537_v45 = vpack.c.bf16 %v3762_v44, %v3761_v42  ;;  %1883 = vmatmul.bf16.gmra.mxu1 %v4915_v35  ;;  %v3571_v54 = vsel %vm3059_vm0, %v1684_v34, %v3315_v46  ;;  %v4885_v31 = vld [vmem:[%s6612_s0 + $0xb0] sm:$0xff] }
 0x162   :  { %2043 = vmatmul.bf16.gmra.mxu2 %v4947_v36  ;;  %2203 = vmatmul.bf16.gmra.mxu3 %v4979_v39  ;;  %v3635_v56 = vsel %vm3123_vm1, %v1844_v38, %v3379_v48  ;;  %v4917_v35 = vld [vmem:[%s6612_s0 + $0x1b0] sm:$0xff] }
 0x163   :  { %5713 = vst [vmem:[%s6613_s2 + $0x258] sm:$0xff] %v5377_v43   ;;  %v4949_v36 = vld [vmem:[%s6612_s0 + $0x2b0] sm:$0xff] }
 0x164   :  { %5745 = vst [vmem:[%s6613_s2 + $0x358] sm:$0xff] %v5537_v45   ;;  %v4981_v39 = vld [vmem:[%s6612_s0 + $0x3b0] sm:$0xff] }
 0x165   :  { %v2004_v47 = vpop.f32.mrf.mxu2  ;;  %v2164_v49 = vpop.f32.mrf.mxu3 }
 0x166   :  { %v1686_v50 = vpop.f32.mrf.mxu0  ;;  %v1846_v52 = vpop.f32.mrf.mxu1  ;;  %v3443_v60 = vmul.f32 0.2, %v2004_v47  ;;  %vm3187_vm4 = vcmp.gt.f32.partialorder %v2004_v47, 0.0  ;;  %v3507_v61 = vmul.f32 0.2, %v2164_v49  ;;  %vm3251_vm5 = vcmp.gt.f32.partialorder %v2164_v49, 0.0 }
 0x167   :  { %vm3060_vm2 = vcmp.gt.f32.partialorder %v1686_v50, 0.0  ;;  %v3316_v51 = vmul.f32 0.2, %v1686_v50  ;;  %vm3124_vm3 = vcmp.gt.f32.partialorder %v1846_v52, 0.0  ;;  %v3380_v53 = vmul.f32 0.2, %v1846_v52 }
 0x168   :  { %v3699_v8 = vsel %vm3187_vm4, %v2004_v47, %v3443_v60  ;;  %v3763_v10 = vsel %vm3251_vm5, %v2164_v49, %v3507_v61 }
 0x169   :  { %v3572_v55 = vsel %vm3060_vm2, %v1686_v50, %v3316_v51  ;;  %v3636_v58 = vsel %vm3124_vm3, %v1846_v52, %v3380_v53 }
 0x16a   :  { %v5062_v57 = vpack.c.bf16 %v3572_v55, %v3571_v54  ;;  %v5222_v59 = vpack.c.bf16 %v3636_v58, %v3635_v56 }
 0x16c   :  { %5650 = vst [vmem:[%s6613_s2 + $0x60] sm:$0xff] %v5062_v57  }
 0x16d   :  { %5682 = vst [vmem:[%s6613_s2 + $0x160] sm:$0xff] %v5222_v59   ;;  %v2006_v62 = vpop.f32.mrf.mxu2  ;;  %v2166_v1 = vpop.f32.mrf.mxu3 }
 0x16e   :  { %vm3188_vm6 = vcmp.gt.f32.partialorder %v2006_v62, 0.0  ;;  %v3444_v0 = vmul.f32 0.2, %v2006_v62  ;;  %v1689_v2 = vpop.f32.mrf.mxu0  ;;  %vm3252_vm7 = vcmp.gt.f32.partialorder %v2166_v1, 0.0  ;;  %v3508_v5 = vmul.f32 0.2, %v2166_v1  ;;  %v1849_v6 = vpop.f32.mrf.mxu1 }
 0x16f   :  { %v3317_v14 = vmul.f32 0.2, %v1689_v2  ;;  %vm3061_vm8 = vcmp.gt.f32.partialorder %v1689_v2, 0.0  ;;  %v3381_v16 = vmul.f32 0.2, %v1849_v6  ;;  %vm3125_vm9 = vcmp.gt.f32.partialorder %v1849_v6, 0.0 }
 0x170   :  { %v3700_v9 = vsel %vm3188_vm6, %v2006_v62, %v3444_v0  ;;  %v3764_v12 = vsel %vm3252_vm7, %v2166_v1, %v3508_v5 }
 0x171   :  { %v5382_v11 = vpack.c.bf16 %v3700_v9, %v3699_v8  ;;  %1728 = vmatmul.bf16.gmra.mxu0 %v4884_v63  ;;  %v5542_v13 = vpack.c.bf16 %v3764_v12, %v3763_v10  ;;  %1888 = vmatmul.bf16.gmra.mxu1 %v4916_v3  ;;  %v3573_v22 = vsel %vm3061_vm8, %v1689_v2, %v3317_v14  ;;  %v4886_v63 = vld [vmem:[%s6612_s0 + $0xb8] sm:$0xff] }
 0x172   :  { %2048 = vmatmul.bf16.gmra.mxu2 %v4948_v4  ;;  %2208 = vmatmul.bf16.gmra.mxu3 %v4980_v7  ;;  %v3637_v24 = vsel %vm3125_vm9, %v1849_v6, %v3381_v16  ;;  %v4918_v3 = vld [vmem:[%s6612_s0 + $0x1b8] sm:$0xff] }
 0x173   :  { %5714 = vst [vmem:[%s6613_s2 + $0x260] sm:$0xff] %v5382_v11   ;;  %v4950_v4 = vld [vmem:[%s6612_s0 + $0x2b8] sm:$0xff] }
 0x174   :  { %5746 = vst [vmem:[%s6613_s2 + $0x360] sm:$0xff] %v5542_v13   ;;  %v4982_v7 = vld [vmem:[%s6612_s0 + $0x3b8] sm:$0xff] }
 0x175   :  { %v2009_v15 = vpop.f32.mrf.mxu2  ;;  %v2169_v17 = vpop.f32.mrf.mxu3 }
 0x176   :  { %v1691_v18 = vpop.f32.mrf.mxu0  ;;  %v1851_v20 = vpop.f32.mrf.mxu1  ;;  %v3445_v28 = vmul.f32 0.2, %v2009_v15  ;;  %vm3189_vm12 = vcmp.gt.f32.partialorder %v2009_v15, 0.0  ;;  %v3509_v29 = vmul.f32 0.2, %v2169_v17  ;;  %vm3253_vm13 = vcmp.gt.f32.partialorder %v2169_v17, 0.0 }
 0x177   :  { %vm3062_vm10 = vcmp.gt.f32.partialorder %v1691_v18, 0.0  ;;  %v3318_v19 = vmul.f32 0.2, %v1691_v18  ;;  %vm3126_vm11 = vcmp.gt.f32.partialorder %v1851_v20, 0.0  ;;  %v3382_v21 = vmul.f32 0.2, %v1851_v20 }
 0x178   :  { %v3701_v40 = vsel %vm3189_vm12, %v2009_v15, %v3445_v28  ;;  %v3765_v42 = vsel %vm3253_vm13, %v2169_v17, %v3509_v29 }
 0x179   :  { %v3574_v23 = vsel %vm3062_vm10, %v1691_v18, %v3318_v19  ;;  %v3638_v26 = vsel %vm3126_vm11, %v1851_v20, %v3382_v21 }
 0x17a   :  { %v5067_v25 = vpack.c.bf16 %v3574_v23, %v3573_v22  ;;  %v5227_v27 = vpack.c.bf16 %v3638_v26, %v3637_v24 }
 0x17c   :  { %5651 = vst [vmem:[%s6613_s2 + $0x68] sm:$0xff] %v5067_v25  }
 0x17d   :  { %5683 = vst [vmem:[%s6613_s2 + $0x168] sm:$0xff] %v5227_v27   ;;  %v2011_v30 = vpop.f32.mrf.mxu2  ;;  %v2171_v33 = vpop.f32.mrf.mxu3 }
 0x17e   :  { %vm3190_vm14 = vcmp.gt.f32.partialorder %v2011_v30, 0.0  ;;  %v3446_v32 = vmul.f32 0.2, %v2011_v30  ;;  %v1694_v34 = vpop.f32.mrf.mxu0  ;;  %vm3254_vm15 = vcmp.gt.f32.partialorder %v2171_v33, 0.0  ;;  %v3510_v37 = vmul.f32 0.2, %v2171_v33  ;;  %v1854_v38 = vpop.f32.mrf.mxu1 }
 0x17f   :  { %v3319_v46 = vmul.f32 0.2, %v1694_v34  ;;  %vm3063_vm0 = vcmp.gt.f32.partialorder %v1694_v34, 0.0  ;;  %v3383_v48 = vmul.f32 0.2, %v1854_v38  ;;  %vm3127_vm1 = vcmp.gt.f32.partialorder %v1854_v38, 0.0 }
 0x180   :  { %v3702_v41 = vsel %vm3190_vm14, %v2011_v30, %v3446_v32  ;;  %v3766_v44 = vsel %vm3254_vm15, %v2171_v33, %v3510_v37 }
 0x181   :  { %v5387_v43 = vpack.c.bf16 %v3702_v41, %v3701_v40  ;;  %1733 = vmatmul.bf16.gmra.mxu0 %v4885_v31  ;;  %v5547_v45 = vpack.c.bf16 %v3766_v44, %v3765_v42  ;;  %1893 = vmatmul.bf16.gmra.mxu1 %v4917_v35  ;;  %v3575_v54 = vsel %vm3063_vm0, %v1694_v34, %v3319_v46  ;;  %v4887_v31 = vld [vmem:[%s6612_s0 + $0xc0] sm:$0xff] }
 0x182   :  { %2053 = vmatmul.bf16.gmra.mxu2 %v4949_v36  ;;  %2213 = vmatmul.bf16.gmra.mxu3 %v4981_v39  ;;  %v3639_v56 = vsel %vm3127_vm1, %v1854_v38, %v3383_v48  ;;  %v4919_v35 = vld [vmem:[%s6612_s0 + $0x1c0] sm:$0xff] }
 0x183   :  { %5715 = vst [vmem:[%s6613_s2 + $0x268] sm:$0xff] %v5387_v43   ;;  %v4951_v36 = vld [vmem:[%s6612_s0 + $0x2c0] sm:$0xff] }
 0x184   :  { %5747 = vst [vmem:[%s6613_s2 + $0x368] sm:$0xff] %v5547_v45   ;;  %v4983_v39 = vld [vmem:[%s6612_s0 + $0x3c0] sm:$0xff] }
 0x185   :  { %v2014_v47 = vpop.f32.mrf.mxu2  ;;  %v2174_v49 = vpop.f32.mrf.mxu3 }
 0x186   :  { %v1696_v50 = vpop.f32.mrf.mxu0  ;;  %v1856_v52 = vpop.f32.mrf.mxu1  ;;  %v3447_v60 = vmul.f32 0.2, %v2014_v47  ;;  %vm3191_vm4 = vcmp.gt.f32.partialorder %v2014_v47, 0.0  ;;  %v3511_v61 = vmul.f32 0.2, %v2174_v49  ;;  %vm3255_vm5 = vcmp.gt.f32.partialorder %v2174_v49, 0.0 }
 0x187   :  { %vm3064_vm2 = vcmp.gt.f32.partialorder %v1696_v50, 0.0  ;;  %v3320_v51 = vmul.f32 0.2, %v1696_v50  ;;  %vm3128_vm3 = vcmp.gt.f32.partialorder %v1856_v52, 0.0  ;;  %v3384_v53 = vmul.f32 0.2, %v1856_v52 }
 0x188   :  { %v3703_v8 = vsel %vm3191_vm4, %v2014_v47, %v3447_v60  ;;  %v3767_v10 = vsel %vm3255_vm5, %v2174_v49, %v3511_v61 }
 0x189   :  { %v3576_v55 = vsel %vm3064_vm2, %v1696_v50, %v3320_v51  ;;  %v3640_v58 = vsel %vm3128_vm3, %v1856_v52, %v3384_v53 }
 0x18a   :  { %v5072_v57 = vpack.c.bf16 %v3576_v55, %v3575_v54  ;;  %v5232_v59 = vpack.c.bf16 %v3640_v58, %v3639_v56 }
 0x18c   :  { %5652 = vst [vmem:[%s6613_s2 + $0x70] sm:$0xff] %v5072_v57  }
 0x18d   :  { %5684 = vst [vmem:[%s6613_s2 + $0x170] sm:$0xff] %v5232_v59   ;;  %v2016_v62 = vpop.f32.mrf.mxu2  ;;  %v2176_v1 = vpop.f32.mrf.mxu3 }
 0x18e   :  { %vm3192_vm6 = vcmp.gt.f32.partialorder %v2016_v62, 0.0  ;;  %v3448_v0 = vmul.f32 0.2, %v2016_v62  ;;  %v1699_v2 = vpop.f32.mrf.mxu0  ;;  %vm3256_vm7 = vcmp.gt.f32.partialorder %v2176_v1, 0.0  ;;  %v3512_v5 = vmul.f32 0.2, %v2176_v1  ;;  %v1859_v6 = vpop.f32.mrf.mxu1 }
 0x18f   :  { %v3321_v14 = vmul.f32 0.2, %v1699_v2  ;;  %vm3065_vm8 = vcmp.gt.f32.partialorder %v1699_v2, 0.0  ;;  %v3385_v16 = vmul.f32 0.2, %v1859_v6  ;;  %vm3129_vm9 = vcmp.gt.f32.partialorder %v1859_v6, 0.0 }
 0x190   :  { %v3704_v9 = vsel %vm3192_vm6, %v2016_v62, %v3448_v0  ;;  %v3768_v12 = vsel %vm3256_vm7, %v2176_v1, %v3512_v5 }
 0x191   :  { %v5392_v11 = vpack.c.bf16 %v3704_v9, %v3703_v8  ;;  %1738 = vmatmul.bf16.gmra.mxu0 %v4886_v63  ;;  %v5552_v13 = vpack.c.bf16 %v3768_v12, %v3767_v10  ;;  %1898 = vmatmul.bf16.gmra.mxu1 %v4918_v3  ;;  %v3577_v22 = vsel %vm3065_vm8, %v1699_v2, %v3321_v14  ;;  %v4888_v63 = vld [vmem:[%s6612_s0 + $0xc8] sm:$0xff] }
 0x192   :  { %2058 = vmatmul.bf16.gmra.mxu2 %v4950_v4  ;;  %2218 = vmatmul.bf16.gmra.mxu3 %v4982_v7  ;;  %v3641_v24 = vsel %vm3129_vm9, %v1859_v6, %v3385_v16  ;;  %v4920_v3 = vld [vmem:[%s6612_s0 + $0x1c8] sm:$0xff] }
 0x193   :  { %5716 = vst [vmem:[%s6613_s2 + $0x270] sm:$0xff] %v5392_v11   ;;  %v4952_v4 = vld [vmem:[%s6612_s0 + $0x2c8] sm:$0xff] }
 0x194   :  { %5748 = vst [vmem:[%s6613_s2 + $0x370] sm:$0xff] %v5552_v13   ;;  %v4984_v7 = vld [vmem:[%s6612_s0 + $0x3c8] sm:$0xff] }
 0x195   :  { %v2019_v15 = vpop.f32.mrf.mxu2  ;;  %v2179_v17 = vpop.f32.mrf.mxu3 }
 0x196   :  { %v1701_v18 = vpop.f32.mrf.mxu0  ;;  %v1861_v20 = vpop.f32.mrf.mxu1  ;;  %v3449_v28 = vmul.f32 0.2, %v2019_v15  ;;  %vm3193_vm12 = vcmp.gt.f32.partialorder %v2019_v15, 0.0  ;;  %v3513_v29 = vmul.f32 0.2, %v2179_v17  ;;  %vm3257_vm13 = vcmp.gt.f32.partialorder %v2179_v17, 0.0 }
 0x197   :  { %vm3066_vm10 = vcmp.gt.f32.partialorder %v1701_v18, 0.0  ;;  %v3322_v19 = vmul.f32 0.2, %v1701_v18  ;;  %vm3130_vm11 = vcmp.gt.f32.partialorder %v1861_v20, 0.0  ;;  %v3386_v21 = vmul.f32 0.2, %v1861_v20 }
 0x198   :  { %v3705_v40 = vsel %vm3193_vm12, %v2019_v15, %v3449_v28  ;;  %v3769_v42 = vsel %vm3257_vm13, %v2179_v17, %v3513_v29 }
 0x199   :  { %v3578_v23 = vsel %vm3066_vm10, %v1701_v18, %v3322_v19  ;;  %v3642_v26 = vsel %vm3130_vm11, %v1861_v20, %v3386_v21 }
 0x19a   :  { %v5077_v25 = vpack.c.bf16 %v3578_v23, %v3577_v22  ;;  %v5237_v27 = vpack.c.bf16 %v3642_v26, %v3641_v24 }
 0x19c   :  { %5653 = vst [vmem:[%s6613_s2 + $0x78] sm:$0xff] %v5077_v25  }
 0x19d   :  { %5685 = vst [vmem:[%s6613_s2 + $0x178] sm:$0xff] %v5237_v27   ;;  %v2021_v30 = vpop.f32.mrf.mxu2  ;;  %v2181_v33 = vpop.f32.mrf.mxu3 }
 0x19e   :  { %vm3194_vm14 = vcmp.gt.f32.partialorder %v2021_v30, 0.0  ;;  %v3450_v32 = vmul.f32 0.2, %v2021_v30  ;;  %v1704_v34 = vpop.f32.mrf.mxu0  ;;  %vm3258_vm15 = vcmp.gt.f32.partialorder %v2181_v33, 0.0  ;;  %v3514_v37 = vmul.f32 0.2, %v2181_v33  ;;  %v1864_v38 = vpop.f32.mrf.mxu1 }
 0x19f   :  { %v3323_v46 = vmul.f32 0.2, %v1704_v34  ;;  %vm3067_vm0 = vcmp.gt.f32.partialorder %v1704_v34, 0.0  ;;  %v3387_v48 = vmul.f32 0.2, %v1864_v38  ;;  %vm3131_vm1 = vcmp.gt.f32.partialorder %v1864_v38, 0.0 }
 0x1a0   :  { %v3706_v41 = vsel %vm3194_vm14, %v2021_v30, %v3450_v32  ;;  %v3770_v44 = vsel %vm3258_vm15, %v2181_v33, %v3514_v37 }
 0x1a1   :  { %v5397_v43 = vpack.c.bf16 %v3706_v41, %v3705_v40  ;;  %1743 = vmatmul.bf16.gmra.mxu0 %v4887_v31  ;;  %v5557_v45 = vpack.c.bf16 %v3770_v44, %v3769_v42  ;;  %1903 = vmatmul.bf16.gmra.mxu1 %v4919_v35  ;;  %v3579_v54 = vsel %vm3067_vm0, %v1704_v34, %v3323_v46  ;;  %v4889_v31 = vld [vmem:[%s6612_s0 + $0xd0] sm:$0xff] }
 0x1a2   :  { %2063 = vmatmul.bf16.gmra.mxu2 %v4951_v36  ;;  %2223 = vmatmul.bf16.gmra.mxu3 %v4983_v39  ;;  %v3643_v56 = vsel %vm3131_vm1, %v1864_v38, %v3387_v48  ;;  %v4921_v35 = vld [vmem:[%s6612_s0 + $0x1d0] sm:$0xff] }
 0x1a3   :  { %5717 = vst [vmem:[%s6613_s2 + $0x278] sm:$0xff] %v5397_v43   ;;  %v4953_v36 = vld [vmem:[%s6612_s0 + $0x2d0] sm:$0xff] }
 0x1a4   :  { %5749 = vst [vmem:[%s6613_s2 + $0x378] sm:$0xff] %v5557_v45   ;;  %v4985_v39 = vld [vmem:[%s6612_s0 + $0x3d0] sm:$0xff] }
 0x1a5   :  { %v2024_v47 = vpop.f32.mrf.mxu2  ;;  %v2184_v49 = vpop.f32.mrf.mxu3 }
 0x1a6   :  { %v1706_v50 = vpop.f32.mrf.mxu0  ;;  %v1866_v52 = vpop.f32.mrf.mxu1  ;;  %v3451_v60 = vmul.f32 0.2, %v2024_v47  ;;  %vm3195_vm4 = vcmp.gt.f32.partialorder %v2024_v47, 0.0  ;;  %v3515_v61 = vmul.f32 0.2, %v2184_v49  ;;  %vm3259_vm5 = vcmp.gt.f32.partialorder %v2184_v49, 0.0 }
 0x1a7   :  { %vm3068_vm2 = vcmp.gt.f32.partialorder %v1706_v50, 0.0  ;;  %v3324_v51 = vmul.f32 0.2, %v1706_v50  ;;  %vm3132_vm3 = vcmp.gt.f32.partialorder %v1866_v52, 0.0  ;;  %v3388_v53 = vmul.f32 0.2, %v1866_v52 }
 0x1a8   :  { %v3707_v8 = vsel %vm3195_vm4, %v2024_v47, %v3451_v60  ;;  %v3771_v10 = vsel %vm3259_vm5, %v2184_v49, %v3515_v61 }
 0x1a9   :  { %v3580_v55 = vsel %vm3068_vm2, %v1706_v50, %v3324_v51  ;;  %v3644_v58 = vsel %vm3132_vm3, %v1866_v52, %v3388_v53 }
 0x1aa   :  { %v5082_v57 = vpack.c.bf16 %v3580_v55, %v3579_v54  ;;  %v5242_v59 = vpack.c.bf16 %v3644_v58, %v3643_v56 }
 0x1ac   :  { %5654 = vst [vmem:[%s6613_s2 + $0x80] sm:$0xff] %v5082_v57  }
 0x1ad   :  { %5686 = vst [vmem:[%s6613_s2 + $0x180] sm:$0xff] %v5242_v59   ;;  %v2026_v62 = vpop.f32.mrf.mxu2  ;;  %v2186_v1 = vpop.f32.mrf.mxu3 }
 0x1ae   :  { %vm3196_vm6 = vcmp.gt.f32.partialorder %v2026_v62, 0.0  ;;  %v3452_v0 = vmul.f32 0.2, %v2026_v62  ;;  %v1709_v2 = vpop.f32.mrf.mxu0  ;;  %vm3260_vm7 = vcmp.gt.f32.partialorder %v2186_v1, 0.0  ;;  %v3516_v5 = vmul.f32 0.2, %v2186_v1  ;;  %v1869_v6 = vpop.f32.mrf.mxu1 }
 0x1af   :  { %v3325_v14 = vmul.f32 0.2, %v1709_v2  ;;  %vm3069_vm8 = vcmp.gt.f32.partialorder %v1709_v2, 0.0  ;;  %v3389_v16 = vmul.f32 0.2, %v1869_v6  ;;  %vm3133_vm9 = vcmp.gt.f32.partialorder %v1869_v6, 0.0 }
 0x1b0   :  { %v3708_v9 = vsel %vm3196_vm6, %v2026_v62, %v3452_v0  ;;  %v3772_v12 = vsel %vm3260_vm7, %v2186_v1, %v3516_v5 }
 0x1b1   :  { %v5402_v11 = vpack.c.bf16 %v3708_v9, %v3707_v8  ;;  %1748 = vmatmul.bf16.gmra.mxu0 %v4888_v63  ;;  %v5562_v13 = vpack.c.bf16 %v3772_v12, %v3771_v10  ;;  %1908 = vmatmul.bf16.gmra.mxu1 %v4920_v3  ;;  %v3581_v22 = vsel %vm3069_vm8, %v1709_v2, %v3325_v14  ;;  %v4890_v63 = vld [vmem:[%s6612_s0 + $0xd8] sm:$0xff] }
 0x1b2   :  { %2068 = vmatmul.bf16.gmra.mxu2 %v4952_v4  ;;  %2228 = vmatmul.bf16.gmra.mxu3 %v4984_v7  ;;  %v3645_v24 = vsel %vm3133_vm9, %v1869_v6, %v3389_v16  ;;  %v4922_v3 = vld [vmem:[%s6612_s0 + $0x1d8] sm:$0xff] }
 0x1b3   :  { %5718 = vst [vmem:[%s6613_s2 + $0x280] sm:$0xff] %v5402_v11   ;;  %v4954_v4 = vld [vmem:[%s6612_s0 + $0x2d8] sm:$0xff] }
 0x1b4   :  { %5750 = vst [vmem:[%s6613_s2 + $0x380] sm:$0xff] %v5562_v13   ;;  %v4986_v7 = vld [vmem:[%s6612_s0 + $0x3d8] sm:$0xff] }
 0x1b5   :  { %v2029_v15 = vpop.f32.mrf.mxu2  ;;  %v2189_v17 = vpop.f32.mrf.mxu3 }
 0x1b6   :  { %v1711_v18 = vpop.f32.mrf.mxu0  ;;  %v1871_v20 = vpop.f32.mrf.mxu1  ;;  %v3453_v28 = vmul.f32 0.2, %v2029_v15  ;;  %vm3197_vm12 = vcmp.gt.f32.partialorder %v2029_v15, 0.0  ;;  %v3517_v29 = vmul.f32 0.2, %v2189_v17  ;;  %vm3261_vm13 = vcmp.gt.f32.partialorder %v2189_v17, 0.0 }
 0x1b7   :  { %vm3070_vm10 = vcmp.gt.f32.partialorder %v1711_v18, 0.0  ;;  %v3326_v19 = vmul.f32 0.2, %v1711_v18  ;;  %vm3134_vm11 = vcmp.gt.f32.partialorder %v1871_v20, 0.0  ;;  %v3390_v21 = vmul.f32 0.2, %v1871_v20 }
 0x1b8   :  { %v3709_v40 = vsel %vm3197_vm12, %v2029_v15, %v3453_v28  ;;  %v3773_v42 = vsel %vm3261_vm13, %v2189_v17, %v3517_v29 }
 0x1b9   :  { %v3582_v23 = vsel %vm3070_vm10, %v1711_v18, %v3326_v19  ;;  %v3646_v26 = vsel %vm3134_vm11, %v1871_v20, %v3390_v21 }
 0x1ba   :  { %v5087_v25 = vpack.c.bf16 %v3582_v23, %v3581_v22  ;;  %v5247_v27 = vpack.c.bf16 %v3646_v26, %v3645_v24 }
 0x1bc   :  { %5655 = vst [vmem:[%s6613_s2 + $0x88] sm:$0xff] %v5087_v25  }
 0x1bd   :  { %5687 = vst [vmem:[%s6613_s2 + $0x188] sm:$0xff] %v5247_v27   ;;  %v2031_v30 = vpop.f32.mrf.mxu2  ;;  %v2191_v33 = vpop.f32.mrf.mxu3 }
 0x1be   :  { %vm3198_vm14 = vcmp.gt.f32.partialorder %v2031_v30, 0.0  ;;  %v3454_v32 = vmul.f32 0.2, %v2031_v30  ;;  %v1714_v34 = vpop.f32.mrf.mxu0  ;;  %vm3262_vm15 = vcmp.gt.f32.partialorder %v2191_v33, 0.0  ;;  %v3518_v37 = vmul.f32 0.2, %v2191_v33  ;;  %v1874_v38 = vpop.f32.mrf.mxu1 }
 0x1bf   :  { %v3327_v46 = vmul.f32 0.2, %v1714_v34  ;;  %vm3071_vm0 = vcmp.gt.f32.partialorder %v1714_v34, 0.0  ;;  %v3391_v48 = vmul.f32 0.2, %v1874_v38  ;;  %vm3135_vm1 = vcmp.gt.f32.partialorder %v1874_v38, 0.0 }
 0x1c0   :  { %v3710_v41 = vsel %vm3198_vm14, %v2031_v30, %v3454_v32  ;;  %v3774_v44 = vsel %vm3262_vm15, %v2191_v33, %v3518_v37 }
 0x1c1   :  { %v5407_v43 = vpack.c.bf16 %v3710_v41, %v3709_v40  ;;  %1753 = vmatmul.bf16.gmra.mxu0 %v4889_v31  ;;  %v5567_v45 = vpack.c.bf16 %v3774_v44, %v3773_v42  ;;  %1913 = vmatmul.bf16.gmra.mxu1 %v4921_v35  ;;  %v3583_v54 = vsel %vm3071_vm0, %v1714_v34, %v3327_v46  ;;  %v4891_v31 = vld [vmem:[%s6612_s0 + $0xe0] sm:$0xff] }
 0x1c2   :  { %2073 = vmatmul.bf16.gmra.mxu2 %v4953_v36  ;;  %2233 = vmatmul.bf16.gmra.mxu3 %v4985_v39  ;;  %v3647_v56 = vsel %vm3135_vm1, %v1874_v38, %v3391_v48  ;;  %v4923_v35 = vld [vmem:[%s6612_s0 + $0x1e0] sm:$0xff] }
 0x1c3   :  { %5719 = vst [vmem:[%s6613_s2 + $0x288] sm:$0xff] %v5407_v43   ;;  %v4955_v36 = vld [vmem:[%s6612_s0 + $0x2e0] sm:$0xff] }
 0x1c4   :  { %5751 = vst [vmem:[%s6613_s2 + $0x388] sm:$0xff] %v5567_v45   ;;  %v4987_v39 = vld [vmem:[%s6612_s0 + $0x3e0] sm:$0xff] }
 0x1c5   :  { %v2034_v47 = vpop.f32.mrf.mxu2  ;;  %v2194_v49 = vpop.f32.mrf.mxu3 }
 0x1c6   :  { %v1716_v50 = vpop.f32.mrf.mxu0  ;;  %v1876_v52 = vpop.f32.mrf.mxu1  ;;  %v3455_v60 = vmul.f32 0.2, %v2034_v47  ;;  %vm3199_vm4 = vcmp.gt.f32.partialorder %v2034_v47, 0.0  ;;  %v3519_v61 = vmul.f32 0.2, %v2194_v49  ;;  %vm3263_vm5 = vcmp.gt.f32.partialorder %v2194_v49, 0.0 }
 0x1c7   :  { %vm3072_vm2 = vcmp.gt.f32.partialorder %v1716_v50, 0.0  ;;  %v3328_v51 = vmul.f32 0.2, %v1716_v50  ;;  %vm3136_vm3 = vcmp.gt.f32.partialorder %v1876_v52, 0.0  ;;  %v3392_v53 = vmul.f32 0.2, %v1876_v52 }
 0x1c8   :  { %v3711_v8 = vsel %vm3199_vm4, %v2034_v47, %v3455_v60  ;;  %v3775_v10 = vsel %vm3263_vm5, %v2194_v49, %v3519_v61 }
 0x1c9   :  { %v3584_v55 = vsel %vm3072_vm2, %v1716_v50, %v3328_v51  ;;  %v3648_v58 = vsel %vm3136_vm3, %v1876_v52, %v3392_v53 }
 0x1ca   :  { %v5092_v57 = vpack.c.bf16 %v3584_v55, %v3583_v54  ;;  %v5252_v59 = vpack.c.bf16 %v3648_v58, %v3647_v56 }
 0x1cc   :  { %5656 = vst [vmem:[%s6613_s2 + $0x90] sm:$0xff] %v5092_v57  }
 0x1cd   :  { %5688 = vst [vmem:[%s6613_s2 + $0x190] sm:$0xff] %v5252_v59   ;;  %v2036_v62 = vpop.f32.mrf.mxu2  ;;  %v2196_v1 = vpop.f32.mrf.mxu3 }
 0x1ce   :  { %vm3200_vm6 = vcmp.gt.f32.partialorder %v2036_v62, 0.0  ;;  %v3456_v0 = vmul.f32 0.2, %v2036_v62  ;;  %v1719_v2 = vpop.f32.mrf.mxu0  ;;  %vm3264_vm7 = vcmp.gt.f32.partialorder %v2196_v1, 0.0  ;;  %v3520_v5 = vmul.f32 0.2, %v2196_v1  ;;  %v1879_v6 = vpop.f32.mrf.mxu1 }
 0x1cf   :  { %v3329_v14 = vmul.f32 0.2, %v1719_v2  ;;  %vm3073_vm8 = vcmp.gt.f32.partialorder %v1719_v2, 0.0  ;;  %v3393_v16 = vmul.f32 0.2, %v1879_v6  ;;  %vm3137_vm9 = vcmp.gt.f32.partialorder %v1879_v6, 0.0 }
 0x1d0   :  { %v3712_v9 = vsel %vm3200_vm6, %v2036_v62, %v3456_v0  ;;  %v3776_v12 = vsel %vm3264_vm7, %v2196_v1, %v3520_v5 }
 0x1d1   :  { %v5412_v11 = vpack.c.bf16 %v3712_v9, %v3711_v8  ;;  %1758 = vmatmul.bf16.gmra.mxu0 %v4890_v63  ;;  %v5572_v13 = vpack.c.bf16 %v3776_v12, %v3775_v10  ;;  %1918 = vmatmul.bf16.gmra.mxu1 %v4922_v3  ;;  %v3585_v22 = vsel %vm3073_vm8, %v1719_v2, %v3329_v14  ;;  %v4892_v63 = vld [vmem:[%s6612_s0 + $0xe8] sm:$0xff] }
 0x1d2   :  { %2078 = vmatmul.bf16.gmra.mxu2 %v4954_v4  ;;  %2238 = vmatmul.bf16.gmra.mxu3 %v4986_v7  ;;  %v3649_v24 = vsel %vm3137_vm9, %v1879_v6, %v3393_v16  ;;  %v4924_v3 = vld [vmem:[%s6612_s0 + $0x1e8] sm:$0xff] }
 0x1d3   :  { %5720 = vst [vmem:[%s6613_s2 + $0x290] sm:$0xff] %v5412_v11   ;;  %v4956_v4 = vld [vmem:[%s6612_s0 + $0x2e8] sm:$0xff] }
 0x1d4   :  { %5752 = vst [vmem:[%s6613_s2 + $0x390] sm:$0xff] %v5572_v13   ;;  %v4988_v7 = vld [vmem:[%s6612_s0 + $0x3e8] sm:$0xff] }
 0x1d5   :  { %v2039_v15 = vpop.f32.mrf.mxu2  ;;  %v2199_v17 = vpop.f32.mrf.mxu3 }
 0x1d6   :  { %v1721_v18 = vpop.f32.mrf.mxu0  ;;  %v1881_v20 = vpop.f32.mrf.mxu1  ;;  %v3457_v28 = vmul.f32 0.2, %v2039_v15  ;;  %vm3201_vm12 = vcmp.gt.f32.partialorder %v2039_v15, 0.0  ;;  %v3521_v29 = vmul.f32 0.2, %v2199_v17  ;;  %vm3265_vm13 = vcmp.gt.f32.partialorder %v2199_v17, 0.0 }
 0x1d7   :  { %vm3074_vm10 = vcmp.gt.f32.partialorder %v1721_v18, 0.0  ;;  %v3330_v19 = vmul.f32 0.2, %v1721_v18  ;;  %vm3138_vm11 = vcmp.gt.f32.partialorder %v1881_v20, 0.0  ;;  %v3394_v21 = vmul.f32 0.2, %v1881_v20 }
 0x1d8   :  { %v3713_v40 = vsel %vm3201_vm12, %v2039_v15, %v3457_v28  ;;  %v3777_v42 = vsel %vm3265_vm13, %v2199_v17, %v3521_v29 }
 0x1d9   :  { %v3586_v23 = vsel %vm3074_vm10, %v1721_v18, %v3330_v19  ;;  %v3650_v26 = vsel %vm3138_vm11, %v1881_v20, %v3394_v21 }
 0x1da   :  { %v5097_v25 = vpack.c.bf16 %v3586_v23, %v3585_v22  ;;  %v5257_v27 = vpack.c.bf16 %v3650_v26, %v3649_v24 }
 0x1dc   :  { %5657 = vst [vmem:[%s6613_s2 + $0x98] sm:$0xff] %v5097_v25  }
 0x1dd   :  { %5689 = vst [vmem:[%s6613_s2 + $0x198] sm:$0xff] %v5257_v27   ;;  %v2041_v30 = vpop.f32.mrf.mxu2  ;;  %v2201_v33 = vpop.f32.mrf.mxu3 }
 0x1de   :  { %vm3202_vm14 = vcmp.gt.f32.partialorder %v2041_v30, 0.0  ;;  %v3458_v32 = vmul.f32 0.2, %v2041_v30  ;;  %v1724_v34 = vpop.f32.mrf.mxu0  ;;  %vm3266_vm15 = vcmp.gt.f32.partialorder %v2201_v33, 0.0  ;;  %v3522_v37 = vmul.f32 0.2, %v2201_v33  ;;  %v1884_v38 = vpop.f32.mrf.mxu1 }
 0x1df   :  { %v3331_v46 = vmul.f32 0.2, %v1724_v34  ;;  %vm3075_vm0 = vcmp.gt.f32.partialorder %v1724_v34, 0.0  ;;  %v3395_v48 = vmul.f32 0.2, %v1884_v38  ;;  %vm3139_vm1 = vcmp.gt.f32.partialorder %v1884_v38, 0.0 }
 0x1e0   :  { %v3714_v41 = vsel %vm3202_vm14, %v2041_v30, %v3458_v32  ;;  %v3778_v44 = vsel %vm3266_vm15, %v2201_v33, %v3522_v37 }
 0x1e1   :  { %v5417_v43 = vpack.c.bf16 %v3714_v41, %v3713_v40  ;;  %1763 = vmatmul.bf16.gmra.mxu0 %v4891_v31  ;;  %v5577_v45 = vpack.c.bf16 %v3778_v44, %v3777_v42  ;;  %1923 = vmatmul.bf16.gmra.mxu1 %v4923_v35  ;;  %v3587_v54 = vsel %vm3075_vm0, %v1724_v34, %v3331_v46  ;;  %v4893_v31 = vld [vmem:[%s6612_s0 + $0xf0] sm:$0xff] }
 0x1e2   :  { %2083 = vmatmul.bf16.gmra.mxu2 %v4955_v36  ;;  %2243 = vmatmul.bf16.gmra.mxu3 %v4987_v39  ;;  %v3651_v56 = vsel %vm3139_vm1, %v1884_v38, %v3395_v48  ;;  %v4925_v35 = vld [vmem:[%s6612_s0 + $0x1f0] sm:$0xff] }
 0x1e3   :  { %5721 = vst [vmem:[%s6613_s2 + $0x298] sm:$0xff] %v5417_v43   ;;  %v4957_v36 = vld [vmem:[%s6612_s0 + $0x2f0] sm:$0xff] }
 0x1e4   :  { %5753 = vst [vmem:[%s6613_s2 + $0x398] sm:$0xff] %v5577_v45   ;;  %v4989_v39 = vld [vmem:[%s6612_s0 + $0x3f0] sm:$0xff] }
 0x1e5   :  { %v2044_v47 = vpop.f32.mrf.mxu2  ;;  %v2204_v49 = vpop.f32.mrf.mxu3 }
 0x1e6   :  { %v1726_v50 = vpop.f32.mrf.mxu0  ;;  %v1886_v52 = vpop.f32.mrf.mxu1  ;;  %v3459_v60 = vmul.f32 0.2, %v2044_v47  ;;  %vm3203_vm4 = vcmp.gt.f32.partialorder %v2044_v47, 0.0  ;;  %v3523_v61 = vmul.f32 0.2, %v2204_v49  ;;  %vm3267_vm5 = vcmp.gt.f32.partialorder %v2204_v49, 0.0 }
 0x1e7   :  { %vm3076_vm2 = vcmp.gt.f32.partialorder %v1726_v50, 0.0  ;;  %v3332_v51 = vmul.f32 0.2, %v1726_v50  ;;  %vm3140_vm3 = vcmp.gt.f32.partialorder %v1886_v52, 0.0  ;;  %v3396_v53 = vmul.f32 0.2, %v1886_v52 }
 0x1e8   :  { %v3715_v8 = vsel %vm3203_vm4, %v2044_v47, %v3459_v60  ;;  %v3779_v10 = vsel %vm3267_vm5, %v2204_v49, %v3523_v61 }
 0x1e9   :  { %v3588_v55 = vsel %vm3076_vm2, %v1726_v50, %v3332_v51  ;;  %v3652_v58 = vsel %vm3140_vm3, %v1886_v52, %v3396_v53 }
 0x1ea   :  { %v5102_v57 = vpack.c.bf16 %v3588_v55, %v3587_v54  ;;  %v5262_v59 = vpack.c.bf16 %v3652_v58, %v3651_v56 }
 0x1ec   :  { %5658 = vst [vmem:[%s6613_s2 + $0xa0] sm:$0xff] %v5102_v57  }
 0x1ed   :  { %5690 = vst [vmem:[%s6613_s2 + $0x1a0] sm:$0xff] %v5262_v59   ;;  %v2046_v62 = vpop.f32.mrf.mxu2  ;;  %v2206_v1 = vpop.f32.mrf.mxu3 }
 0x1ee   :  { %vm3204_vm6 = vcmp.gt.f32.partialorder %v2046_v62, 0.0  ;;  %v3460_v0 = vmul.f32 0.2, %v2046_v62  ;;  %v1729_v2 = vpop.f32.mrf.mxu0  ;;  %vm3268_vm7 = vcmp.gt.f32.partialorder %v2206_v1, 0.0  ;;  %v3524_v5 = vmul.f32 0.2, %v2206_v1  ;;  %v1889_v6 = vpop.f32.mrf.mxu1 }
 0x1ef   :  { %v3333_v14 = vmul.f32 0.2, %v1729_v2  ;;  %vm3077_vm8 = vcmp.gt.f32.partialorder %v1729_v2, 0.0  ;;  %v3397_v16 = vmul.f32 0.2, %v1889_v6  ;;  %vm3141_vm9 = vcmp.gt.f32.partialorder %v1889_v6, 0.0 }
 0x1f0   :  { %v3716_v9 = vsel %vm3204_vm6, %v2046_v62, %v3460_v0  ;;  %v3780_v12 = vsel %vm3268_vm7, %v2206_v1, %v3524_v5 }
 0x1f1   :  { %v5422_v11 = vpack.c.bf16 %v3716_v9, %v3715_v8  ;;  %1768 = vmatmul.bf16.gmra.mxu0 %v4892_v63  ;;  %v5582_v13 = vpack.c.bf16 %v3780_v12, %v3779_v10  ;;  %1928 = vmatmul.bf16.gmra.mxu1 %v4924_v3  ;;  %v3589_v22 = vsel %vm3077_vm8, %v1729_v2, %v3333_v14  ;;  %v4894_v63 = vld [vmem:[%s6612_s0 + $0xf8] sm:$0xff] }
 0x1f2   :  { %2088 = vmatmul.bf16.gmra.mxu2 %v4956_v4  ;;  %2248 = vmatmul.bf16.gmra.mxu3 %v4988_v7  ;;  %v3653_v24 = vsel %vm3141_vm9, %v1889_v6, %v3397_v16  ;;  %v4926_v3 = vld [vmem:[%s6612_s0 + $0x1f8] sm:$0xff] }
 0x1f3   :  { %5722 = vst [vmem:[%s6613_s2 + $0x2a0] sm:$0xff] %v5422_v11   ;;  %v4958_v4 = vld [vmem:[%s6612_s0 + $0x2f8] sm:$0xff] }
 0x1f4   :  { %5754 = vst [vmem:[%s6613_s2 + $0x3a0] sm:$0xff] %v5582_v13   ;;  %v4990_v7 = vld [vmem:[%s6612_s0 + $0x3f8] sm:$0xff] }
 0x1f5   :  { %v2049_v15 = vpop.f32.mrf.mxu2  ;;  %v2209_v17 = vpop.f32.mrf.mxu3 }
 0x1f6   :  { %v1731_v18 = vpop.f32.mrf.mxu0  ;;  %v1891_v20 = vpop.f32.mrf.mxu1  ;;  %v3461_v28 = vmul.f32 0.2, %v2049_v15  ;;  %vm3205_vm12 = vcmp.gt.f32.partialorder %v2049_v15, 0.0  ;;  %v3525_v29 = vmul.f32 0.2, %v2209_v17  ;;  %vm3269_vm13 = vcmp.gt.f32.partialorder %v2209_v17, 0.0 }
 0x1f7   :  { %vm3078_vm10 = vcmp.gt.f32.partialorder %v1731_v18, 0.0  ;;  %v3334_v19 = vmul.f32 0.2, %v1731_v18  ;;  %vm3142_vm11 = vcmp.gt.f32.partialorder %v1891_v20, 0.0  ;;  %v3398_v21 = vmul.f32 0.2, %v1891_v20 }
 0x1f8   :  { %v3717_v40 = vsel %vm3205_vm12, %v2049_v15, %v3461_v28  ;;  %v3781_v42 = vsel %vm3269_vm13, %v2209_v17, %v3525_v29 }
 0x1f9   :  { %v3590_v23 = vsel %vm3078_vm10, %v1731_v18, %v3334_v19  ;;  %v3654_v26 = vsel %vm3142_vm11, %v1891_v20, %v3398_v21 }
 0x1fa   :  { %v5107_v25 = vpack.c.bf16 %v3590_v23, %v3589_v22  ;;  %v5267_v27 = vpack.c.bf16 %v3654_v26, %v3653_v24 }
 0x1fc   :  { %5659 = vst [vmem:[%s6613_s2 + $0xa8] sm:$0xff] %v5107_v25  }
 0x1fd   :  { %5691 = vst [vmem:[%s6613_s2 + $0x1a8] sm:$0xff] %v5267_v27   ;;  %v2051_v30 = vpop.f32.mrf.mxu2  ;;  %v2211_v33 = vpop.f32.mrf.mxu3 }
 0x1fe   :  { %vm3206_vm14 = vcmp.gt.f32.partialorder %v2051_v30, 0.0  ;;  %v3462_v32 = vmul.f32 0.2, %v2051_v30  ;;  %v1734_v34 = vpop.f32.mrf.mxu0  ;;  %vm3270_vm15 = vcmp.gt.f32.partialorder %v2211_v33, 0.0  ;;  %v3526_v37 = vmul.f32 0.2, %v2211_v33  ;;  %v1894_v38 = vpop.f32.mrf.mxu1 }
 0x1ff   :  { %v3335_v46 = vmul.f32 0.2, %v1734_v34  ;;  %vm3079_vm0 = vcmp.gt.f32.partialorder %v1734_v34, 0.0  ;;  %v3399_v48 = vmul.f32 0.2, %v1894_v38  ;;  %vm3143_vm1 = vcmp.gt.f32.partialorder %v1894_v38, 0.0 }
 0x200   :  { %v3718_v41 = vsel %vm3206_vm14, %v2051_v30, %v3462_v32  ;;  %v3782_v44 = vsel %vm3270_vm15, %v2211_v33, %v3526_v37 }
 0x201   :  { %v5427_v43 = vpack.c.bf16 %v3718_v41, %v3717_v40  ;;  %1773 = vmatmul.bf16.gmra.mxu0 %v4893_v31  ;;  %v5587_v45 = vpack.c.bf16 %v3782_v44, %v3781_v42  ;;  %1933 = vmatmul.bf16.gmra.mxu1 %v4925_v35  ;;  %v3591_v54 = vsel %vm3079_vm0, %v1734_v34, %v3335_v46 }
 0x202   :  { %2093 = vmatmul.bf16.gmra.mxu2 %v4957_v36  ;;  %2253 = vmatmul.bf16.gmra.mxu3 %v4989_v39  ;;  %v3655_v56 = vsel %vm3143_vm1, %v1894_v38, %v3399_v48 }
 0x203   :  { %5723 = vst [vmem:[%s6613_s2 + $0x2a8] sm:$0xff] %v5427_v43  }
 0x204   :  { %5755 = vst [vmem:[%s6613_s2 + $0x3a8] sm:$0xff] %v5587_v45  }
 0x205   :  { %v2054_v47 = vpop.f32.mrf.mxu2  ;;  %v2214_v49 = vpop.f32.mrf.mxu3 }
 0x206   :  { %v1736_v50 = vpop.f32.mrf.mxu0  ;;  %v1896_v52 = vpop.f32.mrf.mxu1  ;;  %v3463_v60 = vmul.f32 0.2, %v2054_v47  ;;  %vm3207_vm4 = vcmp.gt.f32.partialorder %v2054_v47, 0.0  ;;  %v3527_v61 = vmul.f32 0.2, %v2214_v49  ;;  %vm3271_vm5 = vcmp.gt.f32.partialorder %v2214_v49, 0.0 }
 0x207   :  { %vm3080_vm2 = vcmp.gt.f32.partialorder %v1736_v50, 0.0  ;;  %v3336_v51 = vmul.f32 0.2, %v1736_v50  ;;  %vm3144_vm3 = vcmp.gt.f32.partialorder %v1896_v52, 0.0  ;;  %v3400_v53 = vmul.f32 0.2, %v1896_v52 }
 0x208   :  { %v3719_v8 = vsel %vm3207_vm4, %v2054_v47, %v3463_v60  ;;  %v3783_v10 = vsel %vm3271_vm5, %v2214_v49, %v3527_v61 }
 0x209   :  { %v3592_v55 = vsel %vm3080_vm2, %v1736_v50, %v3336_v51  ;;  %v3656_v58 = vsel %vm3144_vm3, %v1896_v52, %v3400_v53 }
 0x20a   :  { %v5112_v57 = vpack.c.bf16 %v3592_v55, %v3591_v54  ;;  %v5272_v59 = vpack.c.bf16 %v3656_v58, %v3655_v56 }
 0x20c   :  { %5660 = vst [vmem:[%s6613_s2 + $0xb0] sm:$0xff] %v5112_v57  }
 0x20d   :  { %5692 = vst [vmem:[%s6613_s2 + $0x1b0] sm:$0xff] %v5272_v59   ;;  %v2056_v62 = vpop.f32.mrf.mxu2  ;;  %v2216_v1 = vpop.f32.mrf.mxu3 }
 0x20e   :  { %vm3208_vm6 = vcmp.gt.f32.partialorder %v2056_v62, 0.0  ;;  %v3464_v0 = vmul.f32 0.2, %v2056_v62  ;;  %v1739_v2 = vpop.f32.mrf.mxu0  ;;  %vm3272_vm7 = vcmp.gt.f32.partialorder %v2216_v1, 0.0  ;;  %v3528_v5 = vmul.f32 0.2, %v2216_v1  ;;  %v1899_v6 = vpop.f32.mrf.mxu1 }
 0x20f   :  { %v3337_v14 = vmul.f32 0.2, %v1739_v2  ;;  %vm3081_vm8 = vcmp.gt.f32.partialorder %v1739_v2, 0.0  ;;  %v3401_v16 = vmul.f32 0.2, %v1899_v6  ;;  %vm3145_vm9 = vcmp.gt.f32.partialorder %v1899_v6, 0.0 }
 0x210   :  { %v3720_v9 = vsel %vm3208_vm6, %v2056_v62, %v3464_v0  ;;  %v3784_v12 = vsel %vm3272_vm7, %v2216_v1, %v3528_v5 }
 0x211   :  { %v5432_v11 = vpack.c.bf16 %v3720_v9, %v3719_v8  ;;  %1778 = vmatmul.bf16.gmra.mxu0 %v4894_v63  ;;  %v5592_v13 = vpack.c.bf16 %v3784_v12, %v3783_v10  ;;  %1938 = vmatmul.bf16.gmra.mxu1 %v4926_v3  ;;  %v3593_v22 = vsel %vm3081_vm8, %v1739_v2, %v3337_v14 }
 0x212   :  { %2098 = vmatmul.bf16.gmra.mxu2 %v4958_v4  ;;  %2258 = vmatmul.bf16.gmra.mxu3 %v4990_v7  ;;  %v3657_v24 = vsel %vm3145_vm9, %v1899_v6, %v3401_v16 }
 0x213   :  { %5724 = vst [vmem:[%s6613_s2 + $0x2b0] sm:$0xff] %v5432_v11  }
 0x214   :  { %5756 = vst [vmem:[%s6613_s2 + $0x3b0] sm:$0xff] %v5592_v13  }
 0x215   :  { %v2059_v15 = vpop.f32.mrf.mxu2  ;;  %v2219_v17 = vpop.f32.mrf.mxu3 }
 0x216   :  { %v1741_v18 = vpop.f32.mrf.mxu0  ;;  %v1901_v20 = vpop.f32.mrf.mxu1  ;;  %v3465_v28 = vmul.f32 0.2, %v2059_v15  ;;  %vm3209_vm12 = vcmp.gt.f32.partialorder %v2059_v15, 0.0  ;;  %v3529_v29 = vmul.f32 0.2, %v2219_v17  ;;  %vm3273_vm13 = vcmp.gt.f32.partialorder %v2219_v17, 0.0 }
 0x217   :  { %vm3082_vm10 = vcmp.gt.f32.partialorder %v1741_v18, 0.0  ;;  %v3338_v19 = vmul.f32 0.2, %v1741_v18  ;;  %vm3146_vm11 = vcmp.gt.f32.partialorder %v1901_v20, 0.0  ;;  %v3402_v21 = vmul.f32 0.2, %v1901_v20 }
 0x218   :  { %v3721_v36 = vsel %vm3209_vm12, %v2059_v15, %v3465_v28  ;;  %v3785_v38 = vsel %vm3273_vm13, %v2219_v17, %v3529_v29 }
 0x219   :  { %v3594_v23 = vsel %vm3082_vm10, %v1741_v18, %v3338_v19  ;;  %v3658_v26 = vsel %vm3146_vm11, %v1901_v20, %v3402_v21 }
 0x21a   :  { %v5117_v25 = vpack.c.bf16 %v3594_v23, %v3593_v22  ;;  %v5277_v27 = vpack.c.bf16 %v3658_v26, %v3657_v24 }
 0x21c   :  { %5661 = vst [vmem:[%s6613_s2 + $0xb8] sm:$0xff] %v5117_v25  }
 0x21d   :  { %5693 = vst [vmem:[%s6613_s2 + $0x1b8] sm:$0xff] %v5277_v27   ;;  %v2061_v30 = vpop.f32.mrf.mxu2  ;;  %v2221_v32 = vpop.f32.mrf.mxu3 }
 0x21e   :  { %vm3210_vm14 = vcmp.gt.f32.partialorder %v2061_v30, 0.0  ;;  %v3466_v31 = vmul.f32 0.2, %v2061_v30  ;;  %v1744_v33 = vpop.f32.mrf.mxu0  ;;  %vm3274_vm15 = vcmp.gt.f32.partialorder %v2221_v32, 0.0  ;;  %v3530_v34 = vmul.f32 0.2, %v2221_v32  ;;  %v1904_v35 = vpop.f32.mrf.mxu1 }
 0x21f   :  { %v3339_v42 = vmul.f32 0.2, %v1744_v33  ;;  %vm3083_vm0 = vcmp.gt.f32.partialorder %v1744_v33, 0.0  ;;  %v3403_v44 = vmul.f32 0.2, %v1904_v35  ;;  %vm3147_vm1 = vcmp.gt.f32.partialorder %v1904_v35, 0.0 }
 0x220   :  { %v3722_v37 = vsel %vm3210_vm14, %v2061_v30, %v3466_v31  ;;  %v3786_v40 = vsel %vm3274_vm15, %v2221_v32, %v3530_v34 }
 0x221   :  { %v5437_v39 = vpack.c.bf16 %v3722_v37, %v3721_v36  ;;  %v5597_v41 = vpack.c.bf16 %v3786_v40, %v3785_v38  ;;  %v3595_v50 = vsel %vm3083_vm0, %v1744_v33, %v3339_v42  ;;  %v3659_v52 = vsel %vm3147_vm1, %v1904_v35, %v3403_v44 }
 0x223   :  { %5725 = vst [vmem:[%s6613_s2 + $0x2b8] sm:$0xff] %v5437_v39  }
 0x224   :  { %5757 = vst [vmem:[%s6613_s2 + $0x3b8] sm:$0xff] %v5597_v41  }
 0x225   :  { %v2064_v43 = vpop.f32.mrf.mxu2  ;;  %v2224_v45 = vpop.f32.mrf.mxu3 }
 0x226   :  { %v1746_v46 = vpop.f32.mrf.mxu0  ;;  %v1906_v48 = vpop.f32.mrf.mxu1  ;;  %v3467_v56 = vmul.f32 0.2, %v2064_v43  ;;  %vm3211_vm4 = vcmp.gt.f32.partialorder %v2064_v43, 0.0  ;;  %v3531_v57 = vmul.f32 0.2, %v2224_v45  ;;  %vm3275_vm5 = vcmp.gt.f32.partialorder %v2224_v45, 0.0 }
 0x227   :  { %vm3084_vm2 = vcmp.gt.f32.partialorder %v1746_v46, 0.0  ;;  %v3340_v47 = vmul.f32 0.2, %v1746_v46  ;;  %vm3148_vm3 = vcmp.gt.f32.partialorder %v1906_v48, 0.0  ;;  %v3404_v49 = vmul.f32 0.2, %v1906_v48 }
 0x228   :  { %v3723_v0 = vsel %vm3211_vm4, %v2064_v43, %v3467_v56  ;;  %v3787_v2 = vsel %vm3275_vm5, %v2224_v45, %v3531_v57 }
 0x229   :  { %v3596_v51 = vsel %vm3084_vm2, %v1746_v46, %v3340_v47  ;;  %v3660_v54 = vsel %vm3148_vm3, %v1906_v48, %v3404_v49 }
 0x22a   :  { %v5122_v53 = vpack.c.bf16 %v3596_v51, %v3595_v50  ;;  %v5282_v55 = vpack.c.bf16 %v3660_v54, %v3659_v52 }
 0x22c   :  { %5662 = vst [vmem:[%s6613_s2 + $0xc0] sm:$0xff] %v5122_v53  }
 0x22d   :  { %5694 = vst [vmem:[%s6613_s2 + $0x1c0] sm:$0xff] %v5282_v55   ;;  %v2066_v58 = vpop.f32.mrf.mxu2  ;;  %v2226_v60 = vpop.f32.mrf.mxu3 }
 0x22e   :  { %vm3212_vm6 = vcmp.gt.f32.partialorder %v2066_v58, 0.0  ;;  %v3468_v59 = vmul.f32 0.2, %v2066_v58  ;;  %v1749_v61 = vpop.f32.mrf.mxu0  ;;  %vm3276_vm7 = vcmp.gt.f32.partialorder %v2226_v60, 0.0  ;;  %v3532_v62 = vmul.f32 0.2, %v2226_v60  ;;  %v1909_v63 = vpop.f32.mrf.mxu1 }
 0x22f   :  { %v3341_v6 = vmul.f32 0.2, %v1749_v61  ;;  %vm3085_vm8 = vcmp.gt.f32.partialorder %v1749_v61, 0.0  ;;  %v3405_v8 = vmul.f32 0.2, %v1909_v63  ;;  %vm3149_vm9 = vcmp.gt.f32.partialorder %v1909_v63, 0.0 }
 0x230   :  { %v3724_v1 = vsel %vm3212_vm6, %v2066_v58, %v3468_v59  ;;  %v3788_v4 = vsel %vm3276_vm7, %v2226_v60, %v3532_v62 }
 0x231   :  { %v5442_v3 = vpack.c.bf16 %v3724_v1, %v3723_v0  ;;  %v5602_v5 = vpack.c.bf16 %v3788_v4, %v3787_v2  ;;  %v3597_v14 = vsel %vm3085_vm8, %v1749_v61, %v3341_v6  ;;  %v3661_v16 = vsel %vm3149_vm9, %v1909_v63, %v3405_v8 }
 0x233   :  { %5726 = vst [vmem:[%s6613_s2 + $0x2c0] sm:$0xff] %v5442_v3  }
 0x234   :  { %5758 = vst [vmem:[%s6613_s2 + $0x3c0] sm:$0xff] %v5602_v5  }
 0x235   :  { %v2069_v7 = vpop.f32.mrf.mxu2  ;;  %v2229_v9 = vpop.f32.mrf.mxu3 }
 0x236   :  { %v1751_v10 = vpop.f32.mrf.mxu0  ;;  %v1911_v12 = vpop.f32.mrf.mxu1  ;;  %v3469_v20 = vmul.f32 0.2, %v2069_v7  ;;  %vm3213_vm12 = vcmp.gt.f32.partialorder %v2069_v7, 0.0  ;;  %v3533_v21 = vmul.f32 0.2, %v2229_v9  ;;  %vm3277_vm13 = vcmp.gt.f32.partialorder %v2229_v9, 0.0 }
 0x237   :  { %vm3086_vm10 = vcmp.gt.f32.partialorder %v1751_v10, 0.0  ;;  %v3342_v11 = vmul.f32 0.2, %v1751_v10  ;;  %vm3150_vm11 = vcmp.gt.f32.partialorder %v1911_v12, 0.0  ;;  %v3406_v13 = vmul.f32 0.2, %v1911_v12 }
 0x238   :  { %v3725_v28 = vsel %vm3213_vm12, %v2069_v7, %v3469_v20  ;;  %v3789_v30 = vsel %vm3277_vm13, %v2229_v9, %v3533_v21 }
 0x239   :  { %v3598_v15 = vsel %vm3086_vm10, %v1751_v10, %v3342_v11  ;;  %v3662_v18 = vsel %vm3150_vm11, %v1911_v12, %v3406_v13 }
 0x23a   :  { %v5127_v17 = vpack.c.bf16 %v3598_v15, %v3597_v14  ;;  %v5287_v19 = vpack.c.bf16 %v3662_v18, %v3661_v16 }
 0x23c   :  { %5663 = vst [vmem:[%s6613_s2 + $0xc8] sm:$0xff] %v5127_v17  }
 0x23d   :  { %5695 = vst [vmem:[%s6613_s2 + $0x1c8] sm:$0xff] %v5287_v19   ;;  %v2071_v22 = vpop.f32.mrf.mxu2  ;;  %v2231_v24 = vpop.f32.mrf.mxu3 }
 0x23e   :  { %vm3214_vm14 = vcmp.gt.f32.partialorder %v2071_v22, 0.0  ;;  %v3470_v23 = vmul.f32 0.2, %v2071_v22  ;;  %v1754_v25 = vpop.f32.mrf.mxu0  ;;  %vm3278_vm15 = vcmp.gt.f32.partialorder %v2231_v24, 0.0  ;;  %v3534_v26 = vmul.f32 0.2, %v2231_v24  ;;  %v1914_v27 = vpop.f32.mrf.mxu1 }
 0x23f   :  { %v3343_v34 = vmul.f32 0.2, %v1754_v25  ;;  %vm3087_vm0 = vcmp.gt.f32.partialorder %v1754_v25, 0.0  ;;  %v3407_v36 = vmul.f32 0.2, %v1914_v27  ;;  %vm3151_vm1 = vcmp.gt.f32.partialorder %v1914_v27, 0.0 }
 0x240   :  { %v3726_v29 = vsel %vm3214_vm14, %v2071_v22, %v3470_v23  ;;  %v3790_v32 = vsel %vm3278_vm15, %v2231_v24, %v3534_v26 }
 0x241   :  { %v5447_v31 = vpack.c.bf16 %v3726_v29, %v3725_v28  ;;  %v5607_v33 = vpack.c.bf16 %v3790_v32, %v3789_v30  ;;  %v3599_v42 = vsel %vm3087_vm0, %v1754_v25, %v3343_v34  ;;  %v3663_v44 = vsel %vm3151_vm1, %v1914_v27, %v3407_v36 }
 0x243   :  { %5727 = vst [vmem:[%s6613_s2 + $0x2c8] sm:$0xff] %v5447_v31  }
 0x244   :  { %5759 = vst [vmem:[%s6613_s2 + $0x3c8] sm:$0xff] %v5607_v33  }
 0x245   :  { %v2074_v35 = vpop.f32.mrf.mxu2  ;;  %v2234_v37 = vpop.f32.mrf.mxu3 }
 0x246   :  { %v1756_v38 = vpop.f32.mrf.mxu0  ;;  %v1916_v40 = vpop.f32.mrf.mxu1  ;;  %v3471_v48 = vmul.f32 0.2, %v2074_v35  ;;  %vm3215_vm4 = vcmp.gt.f32.partialorder %v2074_v35, 0.0  ;;  %v3535_v49 = vmul.f32 0.2, %v2234_v37  ;;  %vm3279_vm5 = vcmp.gt.f32.partialorder %v2234_v37, 0.0 }
 0x247   :  { %vm3088_vm2 = vcmp.gt.f32.partialorder %v1756_v38, 0.0  ;;  %v3344_v39 = vmul.f32 0.2, %v1756_v38  ;;  %vm3152_vm3 = vcmp.gt.f32.partialorder %v1916_v40, 0.0  ;;  %v3408_v41 = vmul.f32 0.2, %v1916_v40 }
 0x248   :  { %v3727_v56 = vsel %vm3215_vm4, %v2074_v35, %v3471_v48  ;;  %v3791_v58 = vsel %vm3279_vm5, %v2234_v37, %v3535_v49 }
 0x249   :  { %v3600_v43 = vsel %vm3088_vm2, %v1756_v38, %v3344_v39  ;;  %v3664_v46 = vsel %vm3152_vm3, %v1916_v40, %v3408_v41 }
 0x24a   :  { %v5132_v45 = vpack.c.bf16 %v3600_v43, %v3599_v42  ;;  %v5292_v47 = vpack.c.bf16 %v3664_v46, %v3663_v44 }
 0x24c   :  { %5664 = vst [vmem:[%s6613_s2 + $0xd0] sm:$0xff] %v5132_v45  }
 0x24d   :  { %5696 = vst [vmem:[%s6613_s2 + $0x1d0] sm:$0xff] %v5292_v47   ;;  %v2076_v50 = vpop.f32.mrf.mxu2  ;;  %v2236_v52 = vpop.f32.mrf.mxu3 }
 0x24e   :  { %vm3216_vm6 = vcmp.gt.f32.partialorder %v2076_v50, 0.0  ;;  %v3472_v51 = vmul.f32 0.2, %v2076_v50  ;;  %v1759_v53 = vpop.f32.mrf.mxu0  ;;  %vm3280_vm7 = vcmp.gt.f32.partialorder %v2236_v52, 0.0  ;;  %v3536_v54 = vmul.f32 0.2, %v2236_v52  ;;  %v1919_v55 = vpop.f32.mrf.mxu1 }
 0x24f   :  { %v3345_v62 = vmul.f32 0.2, %v1759_v53  ;;  %vm3089_vm8 = vcmp.gt.f32.partialorder %v1759_v53, 0.0  ;;  %v3409_v0 = vmul.f32 0.2, %v1919_v55  ;;  %vm3153_vm9 = vcmp.gt.f32.partialorder %v1919_v55, 0.0 }
 0x250   :  { %v3728_v57 = vsel %vm3216_vm6, %v2076_v50, %v3472_v51  ;;  %v3792_v60 = vsel %vm3280_vm7, %v2236_v52, %v3536_v54 }
 0x251   :  { %v5452_v59 = vpack.c.bf16 %v3728_v57, %v3727_v56  ;;  %v5612_v61 = vpack.c.bf16 %v3792_v60, %v3791_v58  ;;  %v3601_v6 = vsel %vm3089_vm8, %v1759_v53, %v3345_v62  ;;  %v3665_v8 = vsel %vm3153_vm9, %v1919_v55, %v3409_v0 }
 0x253   :  { %5728 = vst [vmem:[%s6613_s2 + $0x2d0] sm:$0xff] %v5452_v59  }
 0x254   :  { %5760 = vst [vmem:[%s6613_s2 + $0x3d0] sm:$0xff] %v5612_v61  }
 0x255   :  { %v2079_v63 = vpop.f32.mrf.mxu2  ;;  %v2239_v1 = vpop.f32.mrf.mxu3 }
 0x256   :  { %v1761_v2 = vpop.f32.mrf.mxu0  ;;  %v1921_v4 = vpop.f32.mrf.mxu1  ;;  %v3473_v12 = vmul.f32 0.2, %v2079_v63  ;;  %vm3217_vm12 = vcmp.gt.f32.partialorder %v2079_v63, 0.0  ;;  %v3537_v13 = vmul.f32 0.2, %v2239_v1  ;;  %vm3281_vm13 = vcmp.gt.f32.partialorder %v2239_v1, 0.0 }
 0x257   :  { %vm3090_vm10 = vcmp.gt.f32.partialorder %v1761_v2, 0.0  ;;  %v3346_v3 = vmul.f32 0.2, %v1761_v2  ;;  %vm3154_vm11 = vcmp.gt.f32.partialorder %v1921_v4, 0.0  ;;  %v3410_v5 = vmul.f32 0.2, %v1921_v4 }
 0x258   :  { %v3729_v20 = vsel %vm3217_vm12, %v2079_v63, %v3473_v12  ;;  %v3793_v22 = vsel %vm3281_vm13, %v2239_v1, %v3537_v13 }
 0x259   :  { %v3602_v7 = vsel %vm3090_vm10, %v1761_v2, %v3346_v3  ;;  %v3666_v10 = vsel %vm3154_vm11, %v1921_v4, %v3410_v5 }
 0x25a   :  { %v5137_v9 = vpack.c.bf16 %v3602_v7, %v3601_v6  ;;  %v5297_v11 = vpack.c.bf16 %v3666_v10, %v3665_v8 }
 0x25c   :  { %5665 = vst [vmem:[%s6613_s2 + $0xd8] sm:$0xff] %v5137_v9  }
 0x25d   :  { %5697 = vst [vmem:[%s6613_s2 + $0x1d8] sm:$0xff] %v5297_v11   ;;  %v2081_v14 = vpop.f32.mrf.mxu2  ;;  %v2241_v16 = vpop.f32.mrf.mxu3 }
 0x25e   :  { %vm3218_vm14 = vcmp.gt.f32.partialorder %v2081_v14, 0.0  ;;  %v3474_v15 = vmul.f32 0.2, %v2081_v14  ;;  %v1764_v17 = vpop.f32.mrf.mxu0  ;;  %vm3282_vm15 = vcmp.gt.f32.partialorder %v2241_v16, 0.0  ;;  %v3538_v18 = vmul.f32 0.2, %v2241_v16  ;;  %v1924_v19 = vpop.f32.mrf.mxu1 }
 0x25f   :  { %v3347_v26 = vmul.f32 0.2, %v1764_v17  ;;  %vm3091_vm0 = vcmp.gt.f32.partialorder %v1764_v17, 0.0  ;;  %v3411_v28 = vmul.f32 0.2, %v1924_v19  ;;  %vm3155_vm1 = vcmp.gt.f32.partialorder %v1924_v19, 0.0 }
 0x260   :  { %v3730_v21 = vsel %vm3218_vm14, %v2081_v14, %v3474_v15  ;;  %v3794_v24 = vsel %vm3282_vm15, %v2241_v16, %v3538_v18 }
 0x261   :  { %v5457_v23 = vpack.c.bf16 %v3730_v21, %v3729_v20  ;;  %v5617_v25 = vpack.c.bf16 %v3794_v24, %v3793_v22  ;;  %v3603_v34 = vsel %vm3091_vm0, %v1764_v17, %v3347_v26  ;;  %v3667_v36 = vsel %vm3155_vm1, %v1924_v19, %v3411_v28 }
 0x263   :  { %5729 = vst [vmem:[%s6613_s2 + $0x2d8] sm:$0xff] %v5457_v23  }
 0x264   :  { %5761 = vst [vmem:[%s6613_s2 + $0x3d8] sm:$0xff] %v5617_v25  }
 0x265   :  { %v2084_v27 = vpop.f32.mrf.mxu2  ;;  %v2244_v29 = vpop.f32.mrf.mxu3 }
 0x266   :  { %v1766_v30 = vpop.f32.mrf.mxu0  ;;  %v1926_v32 = vpop.f32.mrf.mxu1  ;;  %v3475_v40 = vmul.f32 0.2, %v2084_v27  ;;  %vm3219_vm4 = vcmp.gt.f32.partialorder %v2084_v27, 0.0  ;;  %v3539_v41 = vmul.f32 0.2, %v2244_v29  ;;  %vm3283_vm5 = vcmp.gt.f32.partialorder %v2244_v29, 0.0 }
 0x267   :  { %vm3092_vm2 = vcmp.gt.f32.partialorder %v1766_v30, 0.0  ;;  %v3348_v31 = vmul.f32 0.2, %v1766_v30  ;;  %vm3156_vm3 = vcmp.gt.f32.partialorder %v1926_v32, 0.0  ;;  %v3412_v33 = vmul.f32 0.2, %v1926_v32 }
 0x268   :  { %v3731_v48 = vsel %vm3219_vm4, %v2084_v27, %v3475_v40  ;;  %v3795_v50 = vsel %vm3283_vm5, %v2244_v29, %v3539_v41 }
 0x269   :  { %v3604_v35 = vsel %vm3092_vm2, %v1766_v30, %v3348_v31  ;;  %v3668_v38 = vsel %vm3156_vm3, %v1926_v32, %v3412_v33 }
 0x26a   :  { %v5142_v37 = vpack.c.bf16 %v3604_v35, %v3603_v34  ;;  %v5302_v39 = vpack.c.bf16 %v3668_v38, %v3667_v36 }
 0x26c   :  { %5666 = vst [vmem:[%s6613_s2 + $0xe0] sm:$0xff] %v5142_v37  }
 0x26d   :  { %5698 = vst [vmem:[%s6613_s2 + $0x1e0] sm:$0xff] %v5302_v39   ;;  %v2086_v42 = vpop.f32.mrf.mxu2  ;;  %v2246_v44 = vpop.f32.mrf.mxu3 }
 0x26e   :  { %vm3220_vm6 = vcmp.gt.f32.partialorder %v2086_v42, 0.0  ;;  %v3476_v43 = vmul.f32 0.2, %v2086_v42  ;;  %v1769_v45 = vpop.f32.mrf.mxu0  ;;  %vm3284_vm7 = vcmp.gt.f32.partialorder %v2246_v44, 0.0  ;;  %v3540_v46 = vmul.f32 0.2, %v2246_v44  ;;  %v1929_v47 = vpop.f32.mrf.mxu1 }
 0x26f   :  { %v3349_v54 = vmul.f32 0.2, %v1769_v45  ;;  %vm3093_vm8 = vcmp.gt.f32.partialorder %v1769_v45, 0.0  ;;  %v3413_v56 = vmul.f32 0.2, %v1929_v47  ;;  %vm3157_vm9 = vcmp.gt.f32.partialorder %v1929_v47, 0.0 }
 0x270   :  { %v3732_v49 = vsel %vm3220_vm6, %v2086_v42, %v3476_v43  ;;  %v3796_v52 = vsel %vm3284_vm7, %v2246_v44, %v3540_v46 }
 0x271   :  { %v5462_v51 = vpack.c.bf16 %v3732_v49, %v3731_v48  ;;  %v5622_v53 = vpack.c.bf16 %v3796_v52, %v3795_v50  ;;  %v3605_v62 = vsel %vm3093_vm8, %v1769_v45, %v3349_v54  ;;  %v3669_v0 = vsel %vm3157_vm9, %v1929_v47, %v3413_v56 }
 0x273   :  { %5730 = vst [vmem:[%s6613_s2 + $0x2e0] sm:$0xff] %v5462_v51  }
 0x274   :  { %5762 = vst [vmem:[%s6613_s2 + $0x3e0] sm:$0xff] %v5622_v53  }
 0x275   :  { %v2089_v55 = vpop.f32.mrf.mxu2  ;;  %v2249_v57 = vpop.f32.mrf.mxu3 }
 0x276   :  { %v1771_v58 = vpop.f32.mrf.mxu0  ;;  %v1931_v60 = vpop.f32.mrf.mxu1  ;;  %v3477_v4 = vmul.f32 0.2, %v2089_v55  ;;  %vm3221_vm12 = vcmp.gt.f32.partialorder %v2089_v55, 0.0  ;;  %v3541_v5 = vmul.f32 0.2, %v2249_v57  ;;  %vm3285_vm13 = vcmp.gt.f32.partialorder %v2249_v57, 0.0 }
 0x277   :  { %vm3094_vm10 = vcmp.gt.f32.partialorder %v1771_v58, 0.0  ;;  %v3350_v59 = vmul.f32 0.2, %v1771_v58  ;;  %vm3158_vm11 = vcmp.gt.f32.partialorder %v1931_v60, 0.0  ;;  %v3414_v61 = vmul.f32 0.2, %v1931_v60 }
 0x278   :  { %v3733_v12 = vsel %vm3221_vm12, %v2089_v55, %v3477_v4  ;;  %v3797_v14 = vsel %vm3285_vm13, %v2249_v57, %v3541_v5 }
 0x279   :  { %v3606_v63 = vsel %vm3094_vm10, %v1771_v58, %v3350_v59  ;;  %v3670_v2 = vsel %vm3158_vm11, %v1931_v60, %v3414_v61 }
 0x27a   :  { %v5147_v1 = vpack.c.bf16 %v3606_v63, %v3605_v62  ;;  %v5307_v3 = vpack.c.bf16 %v3670_v2, %v3669_v0 }
 0x27c   :  { %5667 = vst [vmem:[%s6613_s2 + $0xe8] sm:$0xff] %v5147_v1  }
 0x27d   :  { %5699 = vst [vmem:[%s6613_s2 + $0x1e8] sm:$0xff] %v5307_v3   ;;  %v2091_v6 = vpop.f32.mrf.mxu2  ;;  %v2251_v8 = vpop.f32.mrf.mxu3 }
 0x27e   :  { %vm3222_vm14 = vcmp.gt.f32.partialorder %v2091_v6, 0.0  ;;  %v3478_v7 = vmul.f32 0.2, %v2091_v6  ;;  %v1774_v9 = vpop.f32.mrf.mxu0  ;;  %vm3286_vm15 = vcmp.gt.f32.partialorder %v2251_v8, 0.0  ;;  %v3542_v10 = vmul.f32 0.2, %v2251_v8  ;;  %v1934_v11 = vpop.f32.mrf.mxu1 }
 0x27f   :  { %v3351_v18 = vmul.f32 0.2, %v1774_v9  ;;  %vm3095_vm0 = vcmp.gt.f32.partialorder %v1774_v9, 0.0  ;;  %v3415_v20 = vmul.f32 0.2, %v1934_v11  ;;  %vm3159_vm1 = vcmp.gt.f32.partialorder %v1934_v11, 0.0 }
 0x280   :  { %v3734_v13 = vsel %vm3222_vm14, %v2091_v6, %v3478_v7  ;;  %v3798_v16 = vsel %vm3286_vm15, %v2251_v8, %v3542_v10 }
 0x281   :  { %v5467_v15 = vpack.c.bf16 %v3734_v13, %v3733_v12  ;;  %v5627_v17 = vpack.c.bf16 %v3798_v16, %v3797_v14  ;;  %v3607_v26 = vsel %vm3095_vm0, %v1774_v9, %v3351_v18  ;;  %v3671_v28 = vsel %vm3159_vm1, %v1934_v11, %v3415_v20 }
 0x283   :  { %5731 = vst [vmem:[%s6613_s2 + $0x2e8] sm:$0xff] %v5467_v15  }
 0x284   :  { %5763 = vst [vmem:[%s6613_s2 + $0x3e8] sm:$0xff] %v5627_v17  }
 0x285   :  { %v2094_v19 = vpop.f32.mrf.mxu2  ;;  %v2254_v21 = vpop.f32.mrf.mxu3 }
 0x286   :  { %v1776_v22 = vpop.f32.mrf.mxu0  ;;  %v1936_v24 = vpop.f32.mrf.mxu1  ;;  %v3479_v32 = vmul.f32 0.2, %v2094_v19  ;;  %vm3223_vm4 = vcmp.gt.f32.partialorder %v2094_v19, 0.0  ;;  %v3543_v33 = vmul.f32 0.2, %v2254_v21  ;;  %vm3287_vm5 = vcmp.gt.f32.partialorder %v2254_v21, 0.0 }
 0x287   :  { %vm3096_vm2 = vcmp.gt.f32.partialorder %v1776_v22, 0.0  ;;  %v3352_v23 = vmul.f32 0.2, %v1776_v22  ;;  %vm3160_vm3 = vcmp.gt.f32.partialorder %v1936_v24, 0.0  ;;  %v3416_v25 = vmul.f32 0.2, %v1936_v24 }
 0x288   :  { %v3735_v40 = vsel %vm3223_vm4, %v2094_v19, %v3479_v32  ;;  %v3799_v42 = vsel %vm3287_vm5, %v2254_v21, %v3543_v33 }
 0x289   :  { %v3608_v27 = vsel %vm3096_vm2, %v1776_v22, %v3352_v23  ;;  %v3672_v30 = vsel %vm3160_vm3, %v1936_v24, %v3416_v25 }
 0x28a   :  { %v5152_v29 = vpack.c.bf16 %v3608_v27, %v3607_v26  ;;  %v5312_v31 = vpack.c.bf16 %v3672_v30, %v3671_v28 }
 0x28c   :  { %5668 = vst [vmem:[%s6613_s2 + $0xf0] sm:$0xff] %v5152_v29  }
 0x28d   :  { %5700 = vst [vmem:[%s6613_s2 + $0x1f0] sm:$0xff] %v5312_v31   ;;  %v2096_v34 = vpop.f32.mrf.mxu2  ;;  %v2256_v36 = vpop.f32.mrf.mxu3 }
 0x28e   :  { %vm3224_vm6 = vcmp.gt.f32.partialorder %v2096_v34, 0.0  ;;  %v3480_v35 = vmul.f32 0.2, %v2096_v34  ;;  %v1779_v37 = vpop.f32.mrf.mxu0  ;;  %vm3288_vm7 = vcmp.gt.f32.partialorder %v2256_v36, 0.0  ;;  %v3544_v38 = vmul.f32 0.2, %v2256_v36  ;;  %v1939_v39 = vpop.f32.mrf.mxu1 }
 0x28f   :  { %v3353_v46 = vmul.f32 0.2, %v1779_v37  ;;  %vm3097_vm8 = vcmp.gt.f32.partialorder %v1779_v37, 0.0  ;;  %v3417_v48 = vmul.f32 0.2, %v1939_v39  ;;  %vm3161_vm9 = vcmp.gt.f32.partialorder %v1939_v39, 0.0 }
 0x290   :  { %v3736_v41 = vsel %vm3224_vm6, %v2096_v34, %v3480_v35  ;;  %v3800_v44 = vsel %vm3288_vm7, %v2256_v36, %v3544_v38 }
 0x291   :  { %v5472_v43 = vpack.c.bf16 %v3736_v41, %v3735_v40  ;;  %v5632_v45 = vpack.c.bf16 %v3800_v44, %v3799_v42  ;;  %v3609_v54 = vsel %vm3097_vm8, %v1779_v37, %v3353_v46  ;;  %v3673_v56 = vsel %vm3161_vm9, %v1939_v39, %v3417_v48 }
 0x293   :  { %5732 = vst [vmem:[%s6613_s2 + $0x2f0] sm:$0xff] %v5472_v43  }
 0x294   :  { %5764 = vst [vmem:[%s6613_s2 + $0x3f0] sm:$0xff] %v5632_v45  }
 0x295   :  { %v2099_v47 = vpop.f32.mrf.mxu2  ;;  %v2259_v49 = vpop.f32.mrf.mxu3 }
 0x296   :  { %v1781_v50 = vpop.f32.mrf.mxu0  ;;  %v1941_v52 = vpop.f32.mrf.mxu1  ;;  %v3481_v60 = vmul.f32 0.2, %v2099_v47  ;;  %vm3225_vm12 = vcmp.gt.f32.partialorder %v2099_v47, 0.0  ;;  %v3545_v61 = vmul.f32 0.2, %v2259_v49  ;;  %vm3289_vm13 = vcmp.gt.f32.partialorder %v2259_v49, 0.0 }
 0x297   :  { %vm3098_vm10 = vcmp.gt.f32.partialorder %v1781_v50, 0.0  ;;  %v3354_v51 = vmul.f32 0.2, %v1781_v50  ;;  %vm3162_vm11 = vcmp.gt.f32.partialorder %v1941_v52, 0.0  ;;  %v3418_v53 = vmul.f32 0.2, %v1941_v52 }
 0x298   :  { %v3737_v2 = vsel %vm3225_vm12, %v2099_v47, %v3481_v60  ;;  %v3801_v4 = vsel %vm3289_vm13, %v2259_v49, %v3545_v61 }
 0x299   :  { %v3610_v55 = vsel %vm3098_vm10, %v1781_v50, %v3354_v51  ;;  %v3674_v58 = vsel %vm3162_vm11, %v1941_v52, %v3418_v53 }
 0x29a   :  { %v5157_v57 = vpack.c.bf16 %v3610_v55, %v3609_v54  ;;  %v5317_v59 = vpack.c.bf16 %v3674_v58, %v3673_v56 }
 0x29c   :  { %5669 = vst [vmem:[%s6613_s2 + $0xf8] sm:$0xff] %v5157_v57  }
 0x29d   :  { %5701 = vst [vmem:[%s6613_s2 + $0x1f8] sm:$0xff] %v5317_v59   ;;  %v2101_v62 = vpop.f32.mrf.mxu2  ;;  %v2261_v0 = vpop.f32.mrf.mxu3 }
 0x29e   :  { %vm3226_vm14 = vcmp.gt.f32.partialorder %v2101_v62, 0.0  ;;  %v3482_v63 = vmul.f32 0.2, %v2101_v62  ;;  %vm3290_vm15 = vcmp.gt.f32.partialorder %v2261_v0, 0.0  ;;  %v3546_v1 = vmul.f32 0.2, %v2261_v0 }
 0x2a0   :  { %v3738_v3 = vsel %vm3226_vm14, %v2101_v62, %v3482_v63  ;;  %v3802_v6 = vsel %vm3290_vm15, %v2261_v0, %v3546_v1 }
 0x2a1   :  { %v5477_v5 = vpack.c.bf16 %v3738_v3, %v3737_v2  ;;  %v5637_v7 = vpack.c.bf16 %v3802_v6, %v3801_v4 }
 0x2a3   :  { %5733 = vst [vmem:[%s6613_s2 + $0x2f8] sm:$0xff] %v5477_v5  }
 0x2a4   :  { %5765 = vst [vmem:[%s6613_s2 + $0x3f8] sm:$0xff] %v5637_v7  }

// kernel: disc_forward.5
= control target key start
LH: loop header
LB: loop body
LE: loop exit
PB: predicated region body
PF: predicated region fallthrough
CT: control target
= control target key end

     0   :  { %vm1159_vm0 = vcmask 1040384   ;;  %s2112_s1 = inlined_call_operand.vmem [shape: bf16[128,128], index: 1, kind: input, shape index: {}]   ;;  %s2113_s0 = inlined_call_operand.vmem [shape: bf16[512,128], index: 0, kind: input, shape index: {}]   ;;  %s2114_s2 = inlined_call_operand.vmem [shape: bf16[512,128], index: 2, kind: output, shape index: {0}]   ;;  %s2115_s3 = inlined_call_operand.vmem [shape: f32[1,2,128], index: 3, kind: output, shape index: {1}]  }
   0x1   :  { %v1369_v0 = vld [vmem:[%s2112_s1 + $0x38] sm:$0xff]  ;;  %v1368_v1 = vld [vmem:[%s2112_s1 + $0x30] sm:$0xff]  ;;  %v1367_v2 = vld [vmem:[%s2112_s1 + $0x28] sm:$0xff] }
   0x2   :  { %465 = vmatpush.bf16.msra.mxu0 %v1369_v0  ;;  %1561 = vmatpush.bf16.msra.mxu1 %v1369_v0  ;;  %v1366_v3 = vld [vmem:[%s2112_s1 + $0x20] sm:$0xff]  ;;  %v1365_v4 = vld [vmem:[%s2112_s1 + $0x18] sm:$0xff]  ;;  %v1364_v5 = vld [vmem:[%s2112_s1 + $0x10] sm:$0xff] }
   0x3   :  { %1562 = vmatpush.bf16.msra.mxu2 %v1369_v0  ;;  %1563 = vmatpush.bf16.msra.mxu3 %v1369_v0  ;;  %v1363_v6 = vld [vmem:[%s2112_s1 + $0x8] sm:$0xff]  ;;  %v1362_v7 = vld [vmem:[%s2112_s1] sm:$0xff]  ;;  %v1332_v13 = vld [vmem:[%s2113_s0 + $0x10] sm:$0xff] }
   0x4   :  { %v1330_v8 = vld [vmem:[%s2113_s0] sm:$0xff]  ;;  %v1331_v10 = vld [vmem:[%s2113_s0 + $0x8] sm:$0xff]  ;;  %v1340_v14 = vld [vmem:[%s2113_s0 + $0x50] sm:$0xff] }
   0x5   :  { %v1338_v9 = vld [vmem:[%s2113_s0 + $0x40] sm:$0xff]  ;;  %v1339_v11 = vld [vmem:[%s2113_s0 + $0x48] sm:$0xff]  ;;  %v1333_v16 = vld [vmem:[%s2113_s0 + $0x18] sm:$0xff] }
   0x6   :  { %466 = vmatpush.bf16.msra.mxu0 %v1368_v1  ;;  %1564 = vmatpush.bf16.msra.mxu1 %v1368_v1  ;;  %v1346_v12 = vld [vmem:[%s2113_s0 + $0x80] sm:$0xff]  ;;  %v1347_v15 = vld [vmem:[%s2113_s0 + $0x88] sm:$0xff]  ;;  %v1341_v17 = vld [vmem:[%s2113_s0 + $0x58] sm:$0xff] }
   0x7   :  { %1565 = vmatpush.bf16.msra.mxu2 %v1368_v1  ;;  %1566 = vmatpush.bf16.msra.mxu3 %v1368_v1  ;;  %v1348_v18 = vld [vmem:[%s2113_s0 + $0x90] sm:$0xff]  ;;  %v1354_v19 = vld [vmem:[%s2113_s0 + $0xc0] sm:$0xff]  ;;  %v1349_v22 = vld [vmem:[%s2113_s0 + $0x98] sm:$0xff] }
   0x8   :  { %v1334_v20 = vld [vmem:[%s2113_s0 + $0x20] sm:$0xff]  ;;  %v1355_v23 = vld [vmem:[%s2113_s0 + $0xc8] sm:$0xff]  ;;  %v1356_v27 = vld [vmem:[%s2113_s0 + $0xd0] sm:$0xff] }
   0x9   :  { %v1342_v21 = vld [vmem:[%s2113_s0 + $0x60] sm:$0xff]  ;;  %v1335_v24 = vld [vmem:[%s2113_s0 + $0x28] sm:$0xff]  ;;  %v1336_v28 = vld [vmem:[%s2113_s0 + $0x30] sm:$0xff] }
   0xa   :  { %467 = vmatpush.bf16.msra.mxu0 %v1367_v2  ;;  %1567 = vmatpush.bf16.msra.mxu1 %v1367_v2  ;;  %v1343_v25 = vld [vmem:[%s2113_s0 + $0x68] sm:$0xff]  ;;  %v1350_v26 = vld [vmem:[%s2113_s0 + $0xa0] sm:$0xff]  ;;  %v1344_v29 = vld [vmem:[%s2113_s0 + $0x70] sm:$0xff] }
   0xb   :  { %1568 = vmatpush.bf16.msra.mxu2 %v1367_v2  ;;  %1569 = vmatpush.bf16.msra.mxu3 %v1367_v2  ;;  %v1351_v30 = vld [vmem:[%s2113_s0 + $0xa8] sm:$0xff]  ;;  %v1357_v31 = vld [vmem:[%s2113_s0 + $0xd8] sm:$0xff]  ;;  %v1352_v34 = vld [vmem:[%s2113_s0 + $0xb0] sm:$0xff] }
   0xc   :  { %v1337_v32 = vld [vmem:[%s2113_s0 + $0x38] sm:$0xff]  ;;  %v1358_v35 = vld [vmem:[%s2113_s0 + $0xe0] sm:$0xff]  ;;  %v1359_v39 = vld [vmem:[%s2113_s0 + $0xe8] sm:$0xff] }
   0xd   :  { %v1345_v33 = vld [vmem:[%s2113_s0 + $0x78] sm:$0xff]  ;;  %v1360_v53 = vld [vmem:[%s2113_s0 + $0xf0] sm:$0xff] }
   0xe   :  { %468 = vmatpush.bf16.msra.mxu0 %v1366_v3  ;;  %1570 = vmatpush.bf16.msra.mxu1 %v1366_v3  ;;  %v1353_v38 = vld [vmem:[%s2113_s0 + $0xb8] sm:$0xff] }
   0xf   :  { %1571 = vmatpush.bf16.msra.mxu2 %v1366_v3  ;;  %1572 = vmatpush.bf16.msra.mxu3 %v1366_v3 }
  0x12   :  { %469 = vmatpush.bf16.msra.mxu0 %v1365_v4  ;;  %1573 = vmatpush.bf16.msra.mxu1 %v1365_v4 }
  0x13   :  { %1574 = vmatpush.bf16.msra.mxu2 %v1365_v4  ;;  %1575 = vmatpush.bf16.msra.mxu3 %v1365_v4 }
  0x16   :  { %470 = vmatpush.bf16.msra.mxu0 %v1364_v5  ;;  %1576 = vmatpush.bf16.msra.mxu1 %v1364_v5 }
  0x17   :  { %1577 = vmatpush.bf16.msra.mxu2 %v1364_v5  ;;  %1578 = vmatpush.bf16.msra.mxu3 %v1364_v5  ;;  %v1361_v5 = vld [vmem:[%s2113_s0 + $0xf8] sm:$0xff] }
  0x1a   :  { %471 = vmatpush.bf16.msra.mxu0 %v1363_v6  ;;  %1579 = vmatpush.bf16.msra.mxu1 %v1363_v6 }
  0x1b   :  { %1580 = vmatpush.bf16.msra.mxu2 %v1363_v6  ;;  %1581 = vmatpush.bf16.msra.mxu3 %v1363_v6 }
  0x1e   :  { %472 = vmatpush.bf16.msra.mxu0 %v1362_v7  ;;  %1582 = vmatpush.bf16.msra.mxu1 %v1362_v7 }
  0x1f   :  { %1583 = vmatpush.bf16.msra.mxu2 %v1362_v7  ;;  %1584 = vmatpush.bf16.msra.mxu3 %v1362_v7 }
  0x21   :  { %473 = vmatmul.bf16.vlgmr.msra.gmra.mxu0 %v1330_v8  ;;  %513 = vmatmul.bf16.vlgmr.msra.gmra.mxu1 %v1338_v9 }
  0x22   :  { %553 = vmatmul.bf16.vlgmr.msra.gmra.mxu2 %v1346_v12  ;;  %593 = vmatmul.bf16.vlgmr.msra.gmra.mxu3 %v1354_v19 }
  0x31   :  { %478 = vmatmul.bf16.gmra.mxu0 %v1331_v10  ;;  %518 = vmatmul.bf16.gmra.mxu1 %v1339_v11 }
  0x32   :  { %558 = vmatmul.bf16.gmra.mxu2 %v1347_v15  ;;  %598 = vmatmul.bf16.gmra.mxu3 %v1355_v23 }
  0x41   :  { %483 = vmatmul.bf16.gmra.mxu0 %v1332_v13  ;;  %523 = vmatmul.bf16.gmra.mxu1 %v1340_v14 }
  0x42   :  { %563 = vmatmul.bf16.gmra.mxu2 %v1348_v18  ;;  %603 = vmatmul.bf16.gmra.mxu3 %v1356_v27 }
  0x51   :  { %488 = vmatmul.bf16.gmra.mxu0 %v1333_v16  ;;  %528 = vmatmul.bf16.gmra.mxu1 %v1341_v17 }
  0x52   :  { %568 = vmatmul.bf16.gmra.mxu2 %v1349_v22  ;;  %608 = vmatmul.bf16.gmra.mxu3 %v1357_v31 }
  0x61   :  { %493 = vmatmul.bf16.gmra.mxu0 %v1334_v20  ;;  %533 = vmatmul.bf16.gmra.mxu1 %v1342_v21 }
  0x62   :  { %573 = vmatmul.bf16.gmra.mxu2 %v1350_v26  ;;  %613 = vmatmul.bf16.gmra.mxu3 %v1358_v35 }
  0x71   :  { %498 = vmatmul.bf16.gmra.mxu0 %v1335_v24  ;;  %538 = vmatmul.bf16.gmra.mxu1 %v1343_v25 }
  0x72   :  { %578 = vmatmul.bf16.gmra.mxu2 %v1351_v30  ;;  %618 = vmatmul.bf16.gmra.mxu3 %v1359_v39 }
  0x81   :  { %503 = vmatmul.bf16.gmra.mxu0 %v1336_v28  ;;  %543 = vmatmul.bf16.gmra.mxu1 %v1344_v29 }
  0x82   :  { %583 = vmatmul.bf16.gmra.mxu2 %v1352_v34  ;;  %623 = vmatmul.bf16.gmra.mxu3 %v1360_v53 }
  0x91   :  { %508 = vmatmul.bf16.gmra.mxu0 %v1337_v32  ;;  %548 = vmatmul.bf16.gmra.mxu1 %v1345_v33 }
  0x92   :  { %588 = vmatmul.bf16.gmra.mxu2 %v1353_v38  ;;  %628 = vmatmul.bf16.gmra.mxu3 %v1361_v5 }
  0x9e   :  { %v474_v36 = vpop.f32.mrf.mxu0  ;;  %v1713_v37 = vpop.f32.mrf.mxu1 }
  0x9f   :  { %v1026_v40 = vmul.f32 %v474_v36, %v474_v36 }
  0xa5   :  { %v1740_v60 = vpop.f32.mrf.mxu2  ;;  %v1791_v20 = vpop.f32.mrf.mxu3 }
  0xa6   :  { %v476_v41 = vpop.f32.mrf.mxu0  ;;  %v1721_v42 = vpop.f32.mrf.mxu1 }
  0xa7   :  { %v1373_v43 = vpack.c.bf16 %v476_v41, %v474_v36  ;;  %v957_v44 = vadd.f32 %v476_v41, %v474_v36  ;;  %v1027_v45 = vmul.f32 %v476_v41, %v476_v41  ;;  %v1413_v46 = vpack.c.bf16 %v1721_v42, %v1713_v37 }
  0xa9   :  { %1374 = vst [vmem:[%s2114_s2] sm:$0xff] %v1373_v43   ;;  %v1090_v47 = vadd.f32 %v1027_v45, %v1026_v40 }
  0xaa   :  { %1537 = vst [vmem:[%s2114_s2 + $0x40] sm:$0xff] %v1413_v46  }
  0xad   :  { %v1752_v2 = vpop.f32.mrf.mxu2  ;;  %v1803_v24 = vpop.f32.mrf.mxu3 }
  0xae   :  { %v479_v48 = vpop.f32.mrf.mxu0  ;;  %v1731_v49 = vpop.f32.mrf.mxu1  ;;  %v1453_v3 = vpack.c.bf16 %v1752_v2, %v1740_v60  ;;  %v1493_v26 = vpack.c.bf16 %v1803_v24, %v1791_v20 }
  0xaf   :  { %v958_v50 = vadd.f32 %v957_v44, %v479_v48  ;;  %v1028_v51 = vmul.f32 %v479_v48, %v479_v48 }
  0xb0   :  { %1545 = vst [vmem:[%s2114_s2 + $0x80] sm:$0xff] %v1453_v3  }
  0xb1   :  { %v1091_v52 = vadd.f32 %v1090_v47, %v1028_v51  ;;  %1553 = vst [vmem:[%s2114_s2 + $0xc0] sm:$0xff] %v1493_v26  }
  0xb5   :  { %v1768_v10 = vpop.f32.mrf.mxu2  ;;  %v1821_v32 = vpop.f32.mrf.mxu3 }
  0xb6   :  { %v481_v54 = vpop.f32.mrf.mxu0  ;;  %v1736_v55 = vpop.f32.mrf.mxu1 }
  0xb7   :  { %v1378_v56 = vpack.c.bf16 %v481_v54, %v479_v48  ;;  %v959_v57 = vadd.f32 %v958_v50, %v481_v54  ;;  %v1029_v58 = vmul.f32 %v481_v54, %v481_v54  ;;  %v1418_v59 = vpack.c.bf16 %v1736_v55, %v1731_v49 }
  0xb9   :  { %1530 = vst [vmem:[%s2114_s2 + $0x8] sm:$0xff] %v1378_v56   ;;  %v1092_v61 = vadd.f32 %v1091_v52, %v1029_v58 }
  0xba   :  { %1538 = vst [vmem:[%s2114_s2 + $0x48] sm:$0xff] %v1418_v59  }
  0xbd   :  { %v1778_v13 = vpop.f32.mrf.mxu2  ;;  %v1833_v36 = vpop.f32.mrf.mxu3 }
  0xbe   :  { %v484_v62 = vpop.f32.mrf.mxu0  ;;  %v1748_v63 = vpop.f32.mrf.mxu1  ;;  %v1458_v14 = vpack.c.bf16 %v1778_v13, %v1768_v10  ;;  %v1498_v39 = vpack.c.bf16 %v1833_v36, %v1821_v32 }
  0xbf   :  { %v1750_v0 = vadd.f32 %v959_v57, %v484_v62  ;;  %v1030_v1 = vmul.f32 %v484_v62, %v484_v62 }
  0xc0   :  { %1546 = vst [vmem:[%s2114_s2 + $0x88] sm:$0xff] %v1458_v14  }
  0xc1   :  { %v1756_v4 = vadd.f32 %v1092_v61, %v1030_v1  ;;  %1554 = vst [vmem:[%s2114_s2 + $0xc8] sm:$0xff] %v1498_v39  }
  0xc5   :  { %v1789_v19 = vpop.f32.mrf.mxu2  ;;  %v1851_v46 = vpop.f32.mrf.mxu3 }
  0xc6   :  { %v486_v6 = vpop.f32.mrf.mxu0  ;;  %v1764_v7 = vpop.f32.mrf.mxu1 }
  0xc7   :  { %v1383_v8 = vpack.c.bf16 %v486_v6, %v484_v62  ;;  %v1423_v9 = vpack.c.bf16 %v1764_v7, %v1748_v63  ;;  %v1031_v52 = vmul.f32 %v486_v6, %v486_v6  ;;  %v961_v57 = vadd.f32 %v1750_v0, %v486_v6 }
  0xc9   :  { %1531 = vst [vmem:[%s2114_s2 + $0x10] sm:$0xff] %v1383_v8   ;;  %v1094_v58 = vadd.f32 %v1756_v4, %v1031_v52 }
  0xca   :  { %1539 = vst [vmem:[%s2114_s2 + $0x50] sm:$0xff] %v1423_v9  }
  0xcd   :  { %v1801_v23 = vpop.f32.mrf.mxu2  ;;  %v1863_v51 = vpop.f32.mrf.mxu3 }
  0xce   :  { %v489_v11 = vpop.f32.mrf.mxu0  ;;  %v1776_v12 = vpop.f32.mrf.mxu1  ;;  %v1463_v25 = vpack.c.bf16 %v1801_v23, %v1789_v19  ;;  %v1503_v54 = vpack.c.bf16 %v1863_v51, %v1851_v46 }
  0xcf   :  { %v1032_v56 = vmul.f32 %v489_v11, %v489_v11  ;;  %v962_v61 = vadd.f32 %v961_v57, %v489_v11 }
  0xd0   :  { %1547 = vst [vmem:[%s2114_s2 + $0x90] sm:$0xff] %v1463_v25  }
  0xd1   :  { %1555 = vst [vmem:[%s2114_s2 + $0xd0] sm:$0xff] %v1503_v54   ;;  %v1095_v62 = vadd.f32 %v1094_v58, %v1032_v56 }
  0xd5   :  { %v1819_v31 = vpop.f32.mrf.mxu2  ;;  %v1883_v0 = vpop.f32.mrf.mxu3 }
  0xd6   :  { %v491_v15 = vpop.f32.mrf.mxu0  ;;  %v1785_v16 = vpop.f32.mrf.mxu1 }
  0xd7   :  { %v1388_v17 = vpack.c.bf16 %v491_v15, %v489_v11  ;;  %v1428_v18 = vpack.c.bf16 %v1785_v16, %v1776_v12  ;;  %v1033_v59 = vmul.f32 %v491_v15, %v491_v15  ;;  %v963_v8 = vadd.f32 %v962_v61, %v491_v15 }
  0xd9   :  { %1532 = vst [vmem:[%s2114_s2 + $0x18] sm:$0xff] %v1388_v17   ;;  %v1096_v6 = vadd.f32 %v1095_v62, %v1033_v59 }
  0xda   :  { %1540 = vst [vmem:[%s2114_s2 + $0x58] sm:$0xff] %v1428_v18  }
  0xdd   :  { %v1831_v35 = vpop.f32.mrf.mxu2 }
  0xde   :  { %v494_v21 = vpop.f32.mrf.mxu0  ;;  %v1799_v22 = vpop.f32.mrf.mxu1  ;;  %v1468_v38 = vpack.c.bf16 %v1831_v35, %v1819_v31 }
  0xdf   :  { %v1034_v1 = vmul.f32 %v494_v21, %v494_v21  ;;  %v964_v25 = vadd.f32 %v963_v8, %v494_v21 }
  0xe0   :  { %1548 = vst [vmem:[%s2114_s2 + $0x98] sm:$0xff] %v1468_v38  }
  0xe1   :  { %v1097_v4 = vadd.f32 %v1096_v6, %v1034_v1 }
  0xe5   :  { %v1849_v45 = vpop.f32.mrf.mxu2 }
  0xe6   :  { %v496_v27 = vpop.f32.mrf.mxu0  ;;  %v1815_v28 = vpop.f32.mrf.mxu1 }
  0xe7   :  { %v1393_v29 = vpack.c.bf16 %v496_v27, %v494_v21  ;;  %v1433_v30 = vpack.c.bf16 %v1815_v28, %v1799_v22  ;;  %v1035_v18 = vmul.f32 %v496_v27, %v496_v27  ;;  %v965_v15 = vadd.f32 %v964_v25, %v496_v27 }
  0xe9   :  { %1533 = vst [vmem:[%s2114_s2 + $0x20] sm:$0xff] %v1393_v29   ;;  %v1098_v26 = vadd.f32 %v1097_v4, %v1035_v18 }
  0xea   :  { %1541 = vst [vmem:[%s2114_s2 + $0x60] sm:$0xff] %v1433_v30  }
  0xed   :  { %v1861_v50 = vpop.f32.mrf.mxu2 }
  0xee   :  { %v499_v33 = vpop.f32.mrf.mxu0  ;;  %v1829_v34 = vpop.f32.mrf.mxu1  ;;  %v1473_v53 = vpack.c.bf16 %v1861_v50, %v1849_v45 }
  0xef   :  { %v1036_v11 = vmul.f32 %v499_v33, %v499_v33  ;;  %v966_v30 = vadd.f32 %v965_v15, %v499_v33 }
  0xf0   :  { %1549 = vst [vmem:[%s2114_s2 + $0xa0] sm:$0xff] %v1473_v53   ;;  %v1895_v53 = vpop.f32.mrf.mxu3 }
  0xf1   :  { %v1099_v38 = vadd.f32 %v1098_v26, %v1036_v11  ;;  %v1508_v27 = vpack.c.bf16 %v1895_v53, %v1883_v0  ;;  %v1043_v26 = vmul.f32 %v1721_v42, %v1721_v42 }
  0xf3   :  { %1556 = vst [vmem:[%s2114_s2 + $0xd8] sm:$0xff] %v1508_v27  }
  0xf5   :  { %v1881_v17 = vpop.f32.mrf.mxu2 }
  0xf6   :  { %v501_v40 = vpop.f32.mrf.mxu0  ;;  %v1845_v41 = vpop.f32.mrf.mxu1 }
  0xf7   :  { %v1398_v43 = vpack.c.bf16 %v501_v40, %v499_v33  ;;  %v1438_v44 = vpack.c.bf16 %v1845_v41, %v1829_v34  ;;  %v1037_v29 = vmul.f32 %v501_v40, %v501_v40  ;;  %v967_v21 = vadd.f32 %v966_v30, %v501_v40 }
  0xf8   :  { %v1913_v4 = vpop.f32.mrf.mxu3 }
  0xf9   :  { %1534 = vst [vmem:[%s2114_s2 + $0x28] sm:$0xff] %v1398_v43   ;;  %v1100_v54 = vadd.f32 %v1099_v38, %v1037_v29  ;;  %v1044_v38 = vmul.f32 %v1731_v49, %v1731_v49 }
  0xfa   :  { %1542 = vst [vmem:[%s2114_s2 + $0x68] sm:$0xff] %v1438_v44  }
  0xfd   :  { %v1893_v52 = vpop.f32.mrf.mxu2 }
  0xfe   :  { %v504_v47 = vpop.f32.mrf.mxu0  ;;  %v1859_v48 = vpop.f32.mrf.mxu1  ;;  %v1478_v57 = vpack.c.bf16 %v1893_v52, %v1881_v17 }
  0xff   :  { %v1038_v39 = vmul.f32 %v504_v47, %v504_v47  ;;  %v968_v58 = vadd.f32 %v967_v21, %v504_v47 }
 0x100   :  { %1550 = vst [vmem:[%s2114_s2 + $0xa8] sm:$0xff] %v1478_v57   ;;  %v1935_v57 = vpop.f32.mrf.mxu3 }
 0x101   :  { %v1101_v33 = vadd.f32 %v1100_v54, %v1038_v39  ;;  %v1513_v27 = vpack.c.bf16 %v1935_v57, %v1913_v4 }
 0x103   :  { %1557 = vst [vmem:[%s2114_s2 + $0xe0] sm:$0xff] %v1513_v27  }
 0x105   :  { %v1911_v25 = vpop.f32.mrf.mxu2 }
 0x106   :  { %v506_v3 = vpop.f32.mrf.mxu0  ;;  %v1877_v5 = vpop.f32.mrf.mxu1 }
 0x107   :  { %v1403_v9 = vpack.c.bf16 %v506_v3, %v504_v47  ;;  %v1443_v14 = vpack.c.bf16 %v1877_v5, %v1859_v48  ;;  %v1039_v56 = vmul.f32 %v506_v3, %v506_v3  ;;  %v969_v40 = vadd.f32 %v968_v58, %v506_v3 }
 0x108   :  { %v1042_v3 = vmul.f32 %v1713_v37, %v1713_v37  ;;  %v1055_v27 = vmul.f32 %v1877_v5, %v1877_v5 }
 0x109   :  { %1535 = vst [vmem:[%s2114_s2 + $0x30] sm:$0xff] %v1403_v9   ;;  %v1102_v61 = vadd.f32 %v1101_v33, %v1039_v56 }
 0x10a   :  { %1543 = vst [vmem:[%s2114_s2 + $0x70] sm:$0xff] %v1443_v14  }
 0x10d   :  { %v1933_v56 = vpop.f32.mrf.mxu2 }
 0x10e   :  { %v509_v43 = vpop.f32.mrf.mxu0  ;;  %v1891_v44 = vpop.f32.mrf.mxu1 }
 0x10f   :  { %v1040_v59 = vmul.f32 %v509_v43, %v509_v43  ;;  %v970_v62 = vadd.f32 %v969_v40, %v509_v43 }
 0x111   :  { %v1103_v1 = vadd.f32 %v1102_v61, %v1040_v59  ;;  %v1048_v61 = vmul.f32 %v1776_v12, %v1776_v12 }
 0x116   :  { %v511_v8 = vpop.f32.mrf.mxu0  ;;  %v1907_v9 = vpop.f32.mrf.mxu1 }
 0x117   :  { %v1408_v14 = vpack.c.bf16 %v511_v8, %v509_v43  ;;  %v971_v6 = vadd.f32 %v970_v62, %v511_v8  ;;  %v1041_v47 = vmul.f32 %v511_v8, %v511_v8  ;;  %v1448_v18 = vpack.c.bf16 %v1907_v9, %v1891_v44 }
 0x119   :  { %1536 = vst [vmem:[%s2114_s2 + $0x38] sm:$0xff] %v1408_v14   ;;  %v972_v11 = vadd.f32 %v971_v6, %v1713_v37  ;;  %v1104_v15 = vadd.f32 %v1103_v1, %v1041_v47  ;;  %v1045_v37 = vmul.f32 %v1736_v55, %v1736_v55  ;;  %v1049_v1 = vmul.f32 %v1785_v16, %v1785_v16  ;;  %v1959_v6 = vpop.f32.mrf.mxu2 }
 0x11a   :  { %1544 = vst [vmem:[%s2114_s2 + $0x78] sm:$0xff] %v1448_v18   ;;  %v1050_v47 = vmul.f32 %v1799_v22, %v1799_v22 }
 0x11b   :  { %v973_v29 = vadd.f32 %v972_v11, %v1721_v42  ;;  %v1105_v30 = vadd.f32 %v1104_v15, %v1042_v3  ;;  %v1483_v42 = vpack.c.bf16 %v1933_v56, %v1911_v25  ;;  %v1051_v11 = vmul.f32 %v1815_v28, %v1815_v28 }
 0x11d   :  { %v974_v39 = vadd.f32 %v973_v29, %v1731_v49  ;;  %v1106_v43 = vadd.f32 %v1105_v30, %v1043_v26  ;;  %v1046_v49 = vmul.f32 %v1748_v63, %v1748_v63  ;;  %1551 = vst [vmem:[%s2114_s2 + $0xb0] sm:$0xff] %v1483_v42   ;;  %v1053_v30 = vmul.f32 %v1845_v41, %v1845_v41 }
 0x11f   :  { %v975_v21 = vadd.f32 %v974_v39, %v1736_v55  ;;  %v1107_v54 = vadd.f32 %v1106_v43, %v1044_v38  ;;  %v1047_v55 = vmul.f32 %v1764_v7, %v1764_v7 }
 0x121   :  { %v976_v58 = vadd.f32 %v975_v21, %v1748_v63  ;;  %v1108_v33 = vadd.f32 %v1107_v54, %v1045_v37 }
 0x123   :  { %v977_v59 = vadd.f32 %v976_v58, %v1764_v7  ;;  %v1109_v40 = vadd.f32 %v1108_v33, %v1046_v49  ;;  %v1961_v7 = vpop.f32.mrf.mxu3 }
 0x125   :  { %v1110_v62 = vadd.f32 %v1109_v40, %v1047_v55  ;;  %v978_v63 = vadd.f32 %v977_v59, %v1776_v12  ;;  %v1057_v59 = vmul.f32 %v1907_v9, %v1907_v9 }
 0x127   :  { %v979_v8 = vadd.f32 %v978_v63, %v1785_v16  ;;  %v1111_v14 = vadd.f32 %v1110_v62, %v1048_v61  ;;  %v1052_v16 = vmul.f32 %v1829_v34, %v1829_v34  ;;  %v1059_v63 = vmul.f32 %v1752_v2, %v1752_v2 }
 0x129   :  { %v980_v18 = vadd.f32 %v979_v8, %v1799_v22  ;;  %v1112_v3 = vadd.f32 %v1111_v14, %v1049_v1  ;;  %v1975_v22 = vpop.f32.mrf.mxu2  ;;  %v1060_v8 = vmul.f32 %v1768_v10, %v1768_v10 }
 0x12b   :  { %v981_v12 = vadd.f32 %v980_v18, %v1815_v28  ;;  %v1113_v15 = vadd.f32 %v1112_v3, %v1050_v47  ;;  %v1977_v43 = vpop.f32.mrf.mxu3  ;;  %v1488_v28 = vpack.c.bf16 %v1975_v22, %v1959_v6  ;;  %v1061_v47 = vmul.f32 %v1778_v13, %v1778_v13 }
 0x12c   :  { %v1518_v37 = vpack.c.bf16 %v1977_v43, %v1961_v7 }
 0x12d   :  { %v982_v26 = vadd.f32 %v981_v12, %v1829_v34  ;;  %v1114_v29 = vadd.f32 %v1113_v15, %v1051_v11  ;;  %v1054_v34 = vmul.f32 %v1859_v48, %v1859_v48  ;;  %1552 = vst [vmem:[%s2114_s2 + $0xb8] sm:$0xff] %v1488_v28  }
 0x12e   :  { %1558 = vst [vmem:[%s2114_s2 + $0xe8] sm:$0xff] %v1518_v37   ;;  %v1066_v37 = vmul.f32 %v1849_v45, %v1849_v45 }
 0x12f   :  { %v983_v38 = vadd.f32 %v982_v26, %v1845_v41  ;;  %v1115_v39 = vadd.f32 %v1114_v29, %v1052_v16  ;;  %v1064_v26 = vmul.f32 %v1819_v31, %v1819_v31 }
 0x131   :  { %v984_v21 = vadd.f32 %v983_v38, %v1859_v48  ;;  %v1116_v54 = vadd.f32 %v1115_v39, %v1053_v30  ;;  %v1056_v48 = vmul.f32 %v1891_v44, %v1891_v44 }
 0x133   :  { %v1117_v41 = vadd.f32 %v1116_v54, %v1054_v34  ;;  %v985_v42 = vadd.f32 %v984_v21, %v1877_v5  ;;  %v2001_v40 = vpop.f32.mrf.mxu3  ;;  %v1058_v5 = vmul.f32 %v1740_v60, %v1740_v60  ;;  %v1067_v34 = vmul.f32 %v1861_v50, %v1861_v50 }
 0x135   :  { %v1118_v49 = vadd.f32 %v1117_v41, %v1055_v27  ;;  %v986_v58 = vadd.f32 %v985_v42, %v1891_v44  ;;  %v1068_v41 = vmul.f32 %v1881_v17, %v1881_v17 }
 0x137   :  { %v1119_v33 = vadd.f32 %v1118_v49, %v1056_v48  ;;  %v987_v55 = vadd.f32 %v986_v58, %v1907_v9  ;;  %v1069_v49 = vmul.f32 %v1893_v52, %v1893_v52 }
 0x139   :  { %v988_v61 = vadd.f32 %v987_v55, %v1740_v60  ;;  %v1120_v62 = vadd.f32 %v1119_v33, %v1057_v59 }
 0x13b   :  { %v989_v1 = vadd.f32 %v988_v61, %v1752_v2  ;;  %v1121_v44 = vadd.f32 %v1120_v62, %v1058_v5  ;;  %v2015_v60 = vpop.f32.mrf.mxu3  ;;  %v1062_v2 = vmul.f32 %v1789_v19, %v1789_v19  ;;  %v1072_v62 = vmul.f32 %v1959_v6, %v1959_v6 }
 0x13c   :  { %v1523_v11 = vpack.c.bf16 %v2015_v60, %v2001_v40 }
 0x13d   :  { %v990_v14 = vadd.f32 %v989_v1, %v1768_v10  ;;  %v1122_v9 = vadd.f32 %v1121_v44, %v1059_v63  ;;  %v1063_v10 = vmul.f32 %v1801_v23, %v1801_v23  ;;  %v1074_v44 = vmul.f32 %v1791_v20, %v1791_v20 }
 0x13e   :  { %1559 = vst [vmem:[%s2114_s2 + $0xf0] sm:$0xff] %v1523_v11  }
 0x13f   :  { %v991_v18 = vadd.f32 %v990_v14, %v1778_v13  ;;  %v1123_v3 = vadd.f32 %v1122_v9, %v1060_v8 }
 0x141   :  { %v992_v12 = vadd.f32 %v991_v18, %v1789_v19  ;;  %v1124_v15 = vadd.f32 %v1123_v3, %v1061_v47  ;;  %v1065_v19 = vmul.f32 %v1831_v35, %v1831_v35 }
 0x143   :  { %v993_v13 = vadd.f32 %v992_v12, %v1801_v23  ;;  %v1125_v16 = vadd.f32 %v1124_v15, %v1062_v2  ;;  %v2034_v28 = vpop.f32.mrf.mxu3 }
 0x145   :  { %v1126_v29 = vadd.f32 %v1125_v16, %v1063_v10  ;;  %v994_v30 = vadd.f32 %v993_v13, %v1819_v31 }
 0x147   :  { %v995_v38 = vadd.f32 %v994_v30, %v1831_v35  ;;  %v1127_v39 = vadd.f32 %v1126_v29, %v1064_v26 }
 0x149   :  { %v996_v23 = vadd.f32 %v995_v38, %v1849_v45  ;;  %v1128_v21 = vadd.f32 %v1127_v39, %v1065_v19 }
 0x14b   :  { %v997_v54 = vadd.f32 %v996_v23, %v1861_v50  ;;  %v1129_v31 = vadd.f32 %v1128_v21, %v1066_v37  ;;  %v631_v45 = vpop.f32.mrf.mxu3  ;;  %v1070_v50 = vmul.f32 %v1911_v25, %v1911_v25 }
 0x14c   :  { %v1528_v48 = vpack.c.bf16 %v631_v45, %v2034_v28 }
 0x14d   :  { %v998_v35 = vadd.f32 %v997_v54, %v1881_v17  ;;  %v1130_v42 = vadd.f32 %v1129_v31, %v1067_v34  ;;  %v1085_v34 = vmul.f32 %v1977_v43, %v1977_v43 }
 0x14e   :  { %1560 = vst [vmem:[%s2114_s2 + $0xf8] sm:$0xff] %v1528_v48   ;;  %v1089_v48 = vmul.f32 %v631_v45, %v631_v45 }
 0x14f   :  { %v999_v27 = vadd.f32 %v998_v35, %v1893_v52  ;;  %v1131_v58 = vadd.f32 %v1130_v42, %v1068_v41  ;;  %v1071_v52 = vmul.f32 %v1933_v56, %v1933_v56  ;;  %v1086_v41 = vmul.f32 %v2001_v40, %v2001_v40 }
 0x150   :  { %v1087_v42 = vmul.f32 %v2015_v60, %v2015_v60 }
 0x151   :  { %v1132_v33 = vadd.f32 %v1131_v58, %v1069_v49  ;;  %v1000_v55 = vadd.f32 %v999_v27, %v1911_v25  ;;  %v1073_v25 = vmul.f32 %v1975_v22, %v1975_v22  ;;  %v1088_v49 = vmul.f32 %v2034_v28, %v2034_v28 }
 0x153   :  { %v1133_v17 = vadd.f32 %v1132_v33, %v1070_v50  ;;  %v1001_v59 = vadd.f32 %v1000_v55, %v1933_v56  ;;  %v1075_v56 = vmul.f32 %v1803_v24, %v1803_v24 }
 0x155   :  { %v1134_v5 = vadd.f32 %v1133_v17, %v1071_v52  ;;  %v1002_v61 = vadd.f32 %v1001_v59, %v1959_v6  ;;  %v1076_v6 = vmul.f32 %v1821_v32, %v1821_v32 }
 0x157   :  { %v1135_v63 = vadd.f32 %v1134_v5, %v1072_v62  ;;  %v1003_v1 = vadd.f32 %v1002_v61, %v1975_v22  ;;  %v1077_v22 = vmul.f32 %v1833_v36, %v1833_v36 }
 0x159   :  { %v1004_v8 = vadd.f32 %v1003_v1, %v1791_v20  ;;  %v1136_v14 = vadd.f32 %v1135_v63, %v1073_v25  ;;  %v1078_v20 = vmul.f32 %v1851_v46, %v1851_v46 }
 0x15b   :  { %v1005_v9 = vadd.f32 %v1004_v8, %v1803_v24  ;;  %v1137_v47 = vadd.f32 %v1136_v14, %v1074_v44  ;;  %v1079_v24 = vmul.f32 %v1863_v51, %v1863_v51 }
 0x15d   :  { %v1006_v18 = vadd.f32 %v1005_v9, %v1821_v32  ;;  %v1138_v3 = vadd.f32 %v1137_v47, %v1075_v56  ;;  %v1080_v32 = vmul.f32 %v1883_v0, %v1883_v0 }
 0x15f   :  { %v1007_v11 = vadd.f32 %v1006_v18, %v1833_v36  ;;  %v1139_v2 = vadd.f32 %v1138_v3, %v1076_v6  ;;  %v1081_v36 = vmul.f32 %v1895_v53, %v1895_v53 }
 0x161   :  { %v1008_v12 = vadd.f32 %v1007_v11, %v1851_v46  ;;  %v1140_v15 = vadd.f32 %v1139_v2, %v1077_v22  ;;  %v1082_v46 = vmul.f32 %v1913_v4, %v1913_v4 }
 0x163   :  { %v1009_v10 = vadd.f32 %v1008_v12, %v1863_v51  ;;  %v1141_v13 = vadd.f32 %v1140_v15, %v1078_v20  ;;  %v1083_v51 = vmul.f32 %v1935_v57, %v1935_v57 }
 0x165   :  { %v1142_v16 = vadd.f32 %v1141_v13, %v1079_v24  ;;  %v1010_v26 = vadd.f32 %v1009_v10, %v1883_v0  ;;  %v1084_v0 = vmul.f32 %v1961_v7, %v1961_v7 }
 0x167   :  { %v1011_v29 = vadd.f32 %v1010_v26, %v1895_v53  ;;  %v1143_v30 = vadd.f32 %v1142_v16, %v1080_v32 }
 0x169   :  { %v1012_v19 = vadd.f32 %v1011_v29, %v1913_v4  ;;  %v1144_v38 = vadd.f32 %v1143_v30, %v1081_v36 }
 0x16b   :  { %v1013_v39 = vadd.f32 %v1012_v19, %v1935_v57  ;;  %v1145_v37 = vadd.f32 %v1144_v38, %v1082_v46 }
 0x16d   :  { %v1014_v23 = vadd.f32 %v1013_v39, %v1961_v7  ;;  %v1146_v21 = vadd.f32 %v1145_v37, %v1083_v51 }
 0x16f   :  { %v1015_v53 = vadd.f32 %v1014_v23, %v1977_v43  ;;  %v1147_v54 = vadd.f32 %v1146_v21, %v1084_v0 }
 0x171   :  { %v1148_v4 = vadd.f32 %v1147_v54, %v1085_v34  ;;  %v1016_v31 = vadd.f32 %v1015_v53, %v2001_v40 }
 0x173   :  { %v1149_v57 = vadd.f32 %v1148_v4, %v1086_v41  ;;  %v1017_v35 = vadd.f32 %v1016_v31, %v2015_v60 }
 0x175   :  { %v1150_v7 = vadd.f32 %v1149_v57, %v1087_v42  ;;  %v1018_v27 = vadd.f32 %v1017_v35, %v2034_v28 }
 0x177   :  { %v1151_v43 = vadd.f32 %v1150_v7, %v1088_v49  ;;  %v1019_v58 = vadd.f32 %v1018_v27, %v631_v45 }
 0x179   :  { %v1020_v33 = vrot.slane %v1019_v58, 4  ;;  %v1152_v55 = vadd.f32 %v1151_v43, %v1089_v48 }
 0x17b   :  { %v1021_v50 = vadd.f32 %v1020_v33, %v1019_v58  ;;  %v1153_v17 = vrot.slane %v1152_v55, 4 }
 0x17d   :  { %v1022_v40 = vrot.slane %v1021_v50, 2  ;;  %v1154_v59 = vadd.f32 %v1153_v17, %v1152_v55 }
 0x17f   :  { %v1023_v52 = vadd.f32 %v1022_v40, %v1021_v50  ;;  %v1155_v5 = vrot.slane %v1154_v59, 2 }
 0x181   :  { %v1024_v61 = vrot.slane %v1023_v52, 1  ;;  %v1156_v62 = vadd.f32 %v1155_v5, %v1154_v59 }
 0x183   :  { %v1157_v60 = vrot.slane %v1156_v62, 1  ;;  %v1025_v63 = vadd.f32 %v1024_v61, %v1023_v52 }
 0x185   :  { %v1158_v1 = vadd.f32 %v1157_v60, %v1156_v62 }
 0x187   :  { %v1160_v25 = vsel %vm1159_vm0, %v1025_v63, %v1158_v1 }
 0x188   :  { %1161 = vst [vmem:[%s2115_s3] sm:$0x3] %v1160_v25 }

// kernel: disc_forward.6
= control target key start
LH: loop header
LB: loop body
LE: loop exit
PB: predicated region body
PF: predicated region fallthrough
CT: control target
= control target key end

     0   :  { %vm512_vm0 = vcmask 1040384   ;;  %s961_s1 = inlined_call_operand.vmem [shape: bf16[256,128], index: 1, kind: input, shape index: {}]   ;;  %s962_s0 = inlined_call_operand.vmem [shape: bf16[128,256], index: 0, kind: input, shape index: {}]   ;;  %s963_s2 = inlined_call_operand.vmem [shape: bf16[128,128], index: 2, kind: output, shape index: {0}]   ;;  %s964_s3 = inlined_call_operand.vmem [shape: f32[1,2,128], index: 3, kind: output, shape index: {1}]  }
   0x1   :  { %v674_v0 = vld [vmem:[%s961_s1 + $0x38] sm:$0xff]  ;;  %v673_v2 = vld [vmem:[%s961_s1 + $0x30] sm:$0xff]  ;;  %v672_v4 = vld [vmem:[%s961_s1 + $0x28] sm:$0xff] }
   0x2   :  { %v682_v1 = vld [vmem:[%s961_s1 + $0x78] sm:$0xff]  ;;  %273 = vmatpush.bf16.msra.mxu0 %v674_v0  ;;  %v681_v3 = vld [vmem:[%s961_s1 + $0x70] sm:$0xff]  ;;  %730 = vmatpush.bf16.msra.mxu2 %v674_v0  ;;  %v680_v5 = vld [vmem:[%s961_s1 + $0x68] sm:$0xff] }
   0x3   :  { %322 = vmatpush.bf16.msra.mxu1 %v682_v1  ;;  %738 = vmatpush.bf16.msra.mxu3 %v682_v1  ;;  %v671_v6 = vld [vmem:[%s961_s1 + $0x20] sm:$0xff]  ;;  %v670_v8 = vld [vmem:[%s961_s1 + $0x18] sm:$0xff]  ;;  %v669_v10 = vld [vmem:[%s961_s1 + $0x10] sm:$0xff] }
   0x4   :  { %v679_v7 = vld [vmem:[%s961_s1 + $0x60] sm:$0xff]  ;;  %v678_v9 = vld [vmem:[%s961_s1 + $0x58] sm:$0xff]  ;;  %v677_v11 = vld [vmem:[%s961_s1 + $0x50] sm:$0xff] }
   0x5   :  { %v668_v12 = vld [vmem:[%s961_s1 + $0x8] sm:$0xff]  ;;  %v667_v14 = vld [vmem:[%s961_s1] sm:$0xff]  ;;  %v533_v28 = vld [vmem:[%s962_s0 + $0x10] sm:$0xf] }
   0x6   :  { %274 = vmatpush.bf16.msra.mxu0 %v673_v2  ;;  %731 = vmatpush.bf16.msra.mxu2 %v673_v2  ;;  %v676_v13 = vld [vmem:[%s961_s1 + $0x48] sm:$0xff]  ;;  %v675_v15 = vld [vmem:[%s961_s1 + $0x40] sm:$0xff]  ;;  %v654_v29 = vld [vmem:[%s962_s0 + $0x14] sm:$0xf0] }
   0x7   :  { %323 = vmatpush.bf16.msra.mxu1 %v681_v3  ;;  %739 = vmatpush.bf16.msra.mxu3 %v681_v3  ;;  %v525_v16 = vld [vmem:[%s962_s0] sm:$0xf]  ;;  %v652_v17 = vld [vmem:[%s962_s0 + $0x4] sm:$0xf0]  ;;  %v651_v18 = vld [vmem:[%s962_s0 + $0x4] sm:$0xf]  ;;  %v534_v36 = vor.u32 %v654_v29, %v533_v28 }
   0x8   :  { %v527_v19 = vld [vmem:[%s962_s0 + $0x8] sm:$0xf0]  ;;  %v557_v20 = vld [vmem:[%s962_s0 + $0x40] sm:$0xf]  ;;  %v660_v21 = vld [vmem:[%s962_s0 + $0x44] sm:$0xf0]  ;;  %v526_v24 = vor.u32 %v652_v17, %v525_v16 }
   0x9   :  { %v659_v22 = vld [vmem:[%s962_s0 + $0x44] sm:$0xf]  ;;  %v559_v23 = vld [vmem:[%s962_s0 + $0x48] sm:$0xf0]  ;;  %v530_v25 = vor.u32 %v651_v18, %v527_v19  ;;  %v558_v26 = vor.u32 %v660_v21, %v557_v20  ;;  %v653_v30 = vld [vmem:[%s962_s0 + $0x14] sm:$0xf] }
   0xa   :  { %275 = vmatpush.bf16.msra.mxu0 %v672_v4  ;;  %732 = vmatpush.bf16.msra.mxu2 %v672_v4  ;;  %v562_v27 = vor.u32 %v659_v22, %v559_v23  ;;  %v535_v31 = vld [vmem:[%s962_s0 + $0x18] sm:$0xf0]  ;;  %v565_v32 = vld [vmem:[%s962_s0 + $0x50] sm:$0xf]  ;;  %v662_v33 = vld [vmem:[%s962_s0 + $0x54] sm:$0xf0] }
   0xb   :  { %324 = vmatpush.bf16.msra.mxu1 %v680_v5  ;;  %740 = vmatpush.bf16.msra.mxu3 %v680_v5  ;;  %v661_v34 = vld [vmem:[%s962_s0 + $0x54] sm:$0xf]  ;;  %v567_v35 = vld [vmem:[%s962_s0 + $0x58] sm:$0xf0]  ;;  %v538_v37 = vor.u32 %v653_v30, %v535_v31  ;;  %v566_v38 = vor.u32 %v662_v33, %v565_v32  ;;  %v541_v40 = vld [vmem:[%s962_s0 + $0x20] sm:$0xf] }
   0xc   :  { %v570_v39 = vor.u32 %v661_v34, %v567_v35  ;;  %v656_v41 = vld [vmem:[%s962_s0 + $0x24] sm:$0xf0]  ;;  %v655_v42 = vld [vmem:[%s962_s0 + $0x24] sm:$0xf]  ;;  %v543_v43 = vld [vmem:[%s962_s0 + $0x28] sm:$0xf0] }
   0xd   :  { %v573_v44 = vld [vmem:[%s962_s0 + $0x60] sm:$0xf]  ;;  %v664_v45 = vld [vmem:[%s962_s0 + $0x64] sm:$0xf0]  ;;  %v663_v46 = vld [vmem:[%s962_s0 + $0x64] sm:$0xf]  ;;  %v542_v48 = vor.u32 %v656_v41, %v541_v40  ;;  %v546_v49 = vor.u32 %v655_v42, %v543_v43 }
   0xe   :  { %276 = vmatpush.bf16.msra.mxu0 %v671_v6  ;;  %733 = vmatpush.bf16.msra.mxu2 %v671_v6  ;;  %v575_v47 = vld [vmem:[%s962_s0 + $0x68] sm:$0xf0]  ;;  %v574_v50 = vor.u32 %v664_v45, %v573_v44  ;;  %v549_v52 = vld [vmem:[%s962_s0 + $0x30] sm:$0xf]  ;;  %v658_v53 = vld [vmem:[%s962_s0 + $0x34] sm:$0xf0] }
   0xf   :  { %325 = vmatpush.bf16.msra.mxu1 %v679_v7  ;;  %741 = vmatpush.bf16.msra.mxu3 %v679_v7  ;;  %v578_v51 = vor.u32 %v663_v46, %v575_v47  ;;  %v657_v54 = vld [vmem:[%s962_s0 + $0x34] sm:$0xf]  ;;  %v551_v55 = vld [vmem:[%s962_s0 + $0x38] sm:$0xf0]  ;;  %v581_v56 = vld [vmem:[%s962_s0 + $0x70] sm:$0xf]  ;;  %v550_v60 = vor.u32 %v658_v53, %v549_v52 }
  0x10   :  { %v666_v57 = vld [vmem:[%s962_s0 + $0x74] sm:$0xf0]  ;;  %v665_v58 = vld [vmem:[%s962_s0 + $0x74] sm:$0xf]  ;;  %v583_v59 = vld [vmem:[%s962_s0 + $0x78] sm:$0xf0]  ;;  %v554_v61 = vor.u32 %v657_v54, %v551_v55 }
  0x11   :  { %v582_v62 = vor.u32 %v666_v57, %v581_v56  ;;  %v586_v63 = vor.u32 %v665_v58, %v583_v59 }
  0x12   :  { %277 = vmatpush.bf16.msra.mxu0 %v670_v8  ;;  %734 = vmatpush.bf16.msra.mxu2 %v670_v8 }
  0x13   :  { %326 = vmatpush.bf16.msra.mxu1 %v678_v9  ;;  %742 = vmatpush.bf16.msra.mxu3 %v678_v9 }
  0x16   :  { %278 = vmatpush.bf16.msra.mxu0 %v669_v10  ;;  %735 = vmatpush.bf16.msra.mxu2 %v669_v10 }
  0x17   :  { %327 = vmatpush.bf16.msra.mxu1 %v677_v11  ;;  %743 = vmatpush.bf16.msra.mxu3 %v677_v11 }
  0x1a   :  { %279 = vmatpush.bf16.msra.mxu0 %v668_v12  ;;  %736 = vmatpush.bf16.msra.mxu2 %v668_v12 }
  0x1b   :  { %328 = vmatpush.bf16.msra.mxu1 %v676_v13  ;;  %744 = vmatpush.bf16.msra.mxu3 %v676_v13 }
  0x1e   :  { %280 = vmatpush.bf16.msra.mxu0 %v667_v14  ;;  %737 = vmatpush.bf16.msra.mxu2 %v667_v14 }
  0x1f   :  { %329 = vmatpush.bf16.msra.mxu1 %v675_v15  ;;  %745 = vmatpush.bf16.msra.mxu3 %v675_v15 }
  0x21   :  { %281 = vmatmul.bf16.vlgmr.msra.gmra.mxu0 %v526_v24  ;;  %301 = vmatmul.bf16.vlgmr.msra.gmra.mxu2 %v558_v26 }
  0x22   :  { %330 = vmatmul.bf16.vlgmr.msra.gmra.mxu1 %v530_v25  ;;  %350 = vmatmul.bf16.vlgmr.msra.gmra.mxu3 %v562_v27 }
  0x31   :  { %286 = vmatmul.bf16.gmra.mxu0 %v534_v36  ;;  %306 = vmatmul.bf16.gmra.mxu2 %v566_v38 }
  0x32   :  { %335 = vmatmul.bf16.gmra.mxu1 %v538_v37  ;;  %355 = vmatmul.bf16.gmra.mxu3 %v570_v39 }
  0x41   :  { %291 = vmatmul.bf16.gmra.mxu0 %v542_v48  ;;  %311 = vmatmul.bf16.gmra.mxu2 %v574_v50 }
  0x42   :  { %340 = vmatmul.bf16.gmra.mxu1 %v546_v49  ;;  %360 = vmatmul.bf16.gmra.mxu3 %v578_v51 }
  0x51   :  { %296 = vmatmul.bf16.gmra.mxu0 %v550_v60  ;;  %316 = vmatmul.bf16.gmra.mxu2 %v582_v62 }
  0x52   :  { %345 = vmatmul.bf16.gmra.mxu1 %v554_v61  ;;  %365 = vmatmul.bf16.gmra.mxu3 %v586_v63 }
  0x9e   :  { %v282_v0 = vpop.f32.mrf.mxu0 }
  0x9f   :  { %v331_v1 = vpop.f32.mrf.mxu1 }
  0xa0   :  { %v332_v6 = vadd.f32 %v331_v1, %v282_v0 }
  0xa2   :  { %v475_v39 = vmul.f32 %v332_v6, %v332_v6 }
  0xa4   :  { %v302_v2 = vpop.f32.mrf.mxu2 }
  0xa5   :  { %v351_v3 = vpop.f32.mrf.mxu3 }
  0xa6   :  { %v284_v4 = vpop.f32.mrf.mxu0  ;;  %v913_v9 = vadd.f32 %v351_v3, %v302_v2 }
  0xa7   :  { %v333_v5 = vpop.f32.mrf.mxu1 }
  0xa8   :  { %v334_v7 = vadd.f32 %v333_v5, %v284_v4 }
  0xaa   :  { %v686_v8 = vpack.c.bf16 %v334_v7, %v332_v6  ;;  %v476_v37 = vmul.f32 %v334_v7, %v334_v7  ;;  %v454_v40 = vadd.f32 %v334_v7, %v332_v6 }
  0xac   :  { %687 = vst [vmem:[%s963_s2] sm:$0xff] %v686_v8   ;;  %v304_v10 = vpop.f32.mrf.mxu2  ;;  %v491_v47 = vadd.f32 %v476_v37, %v475_v39  ;;  %v483_v8 = vmul.f32 %v913_v9, %v913_v9 }
  0xad   :  { %v353_v11 = vpop.f32.mrf.mxu3 }
  0xae   :  { %v287_v12 = vpop.f32.mrf.mxu0  ;;  %v915_v14 = vadd.f32 %v353_v11, %v304_v10 }
  0xaf   :  { %v336_v13 = vpop.f32.mrf.mxu1 }
  0xb0   :  { %v706_v15 = vpack.c.bf16 %v915_v14, %v913_v9  ;;  %v337_v20 = vadd.f32 %v336_v13, %v287_v12  ;;  %v484_v13 = vmul.f32 %v915_v14, %v915_v14 }
  0xb2   :  { %726 = vst [vmem:[%s963_s2 + $0x20] sm:$0xff] %v706_v15   ;;  %v477_v41 = vmul.f32 %v337_v20, %v337_v20  ;;  %v455_v48 = vadd.f32 %v454_v40, %v337_v20 }
  0xb4   :  { %v307_v16 = vpop.f32.mrf.mxu2  ;;  %v492_v51 = vadd.f32 %v491_v47, %v477_v41 }
  0xb5   :  { %v356_v17 = vpop.f32.mrf.mxu3 }
  0xb6   :  { %v289_v18 = vpop.f32.mrf.mxu0  ;;  %v925_v23 = vadd.f32 %v356_v17, %v307_v16 }
  0xb7   :  { %v338_v19 = vpop.f32.mrf.mxu1 }
  0xb8   :  { %v339_v21 = vadd.f32 %v338_v19, %v289_v18 }
  0xba   :  { %v691_v22 = vpack.c.bf16 %v339_v21, %v337_v20  ;;  %v478_v49 = vmul.f32 %v339_v21, %v339_v21  ;;  %v456_v52 = vadd.f32 %v455_v48, %v339_v21  ;;  %v485_v20 = vmul.f32 %v925_v23, %v925_v23 }
  0xbc   :  { %723 = vst [vmem:[%s963_s2 + $0x8] sm:$0xff] %v691_v22   ;;  %v309_v24 = vpop.f32.mrf.mxu2  ;;  %v493_v55 = vadd.f32 %v492_v51, %v478_v49 }
  0xbd   :  { %v358_v25 = vpop.f32.mrf.mxu3 }
  0xbe   :  { %v292_v26 = vpop.f32.mrf.mxu0  ;;  %v927_v28 = vadd.f32 %v358_v25, %v309_v24 }
  0xbf   :  { %v341_v27 = vpop.f32.mrf.mxu1 }
  0xc0   :  { %v711_v29 = vpack.c.bf16 %v927_v28, %v925_v23  ;;  %v342_v34 = vadd.f32 %v341_v27, %v292_v26 }
  0xc2   :  { %727 = vst [vmem:[%s963_s2 + $0x28] sm:$0xff] %v711_v29   ;;  %v479_v53 = vmul.f32 %v342_v34, %v342_v34  ;;  %v457_v56 = vadd.f32 %v456_v52, %v342_v34 }
  0xc4   :  { %v312_v30 = vpop.f32.mrf.mxu2  ;;  %v494_v58 = vadd.f32 %v493_v55, %v479_v53 }
  0xc5   :  { %v361_v31 = vpop.f32.mrf.mxu3 }
  0xc6   :  { %v294_v32 = vpop.f32.mrf.mxu0  ;;  %v362_v38 = vadd.f32 %v361_v31, %v312_v30 }
  0xc7   :  { %v343_v33 = vpop.f32.mrf.mxu1 }
  0xc8   :  { %v344_v35 = vadd.f32 %v343_v33, %v294_v32 }
  0xca   :  { %v696_v36 = vpack.c.bf16 %v344_v35, %v342_v34  ;;  %v480_v57 = vmul.f32 %v344_v35, %v344_v35  ;;  %v458_v59 = vadd.f32 %v457_v56, %v344_v35 }
  0xcc   :  { %724 = vst [vmem:[%s963_s2 + $0x10] sm:$0xff] %v696_v36   ;;  %v314_v42 = vpop.f32.mrf.mxu2  ;;  %v495_v1 = vadd.f32 %v494_v58, %v480_v57 }
  0xcd   :  { %v363_v43 = vpop.f32.mrf.mxu3 }
  0xce   :  { %v297_v44 = vpop.f32.mrf.mxu0  ;;  %v364_v46 = vadd.f32 %v363_v43, %v314_v42 }
  0xcf   :  { %v346_v45 = vpop.f32.mrf.mxu1 }
  0xd0   :  { %v716_v50 = vpack.c.bf16 %v364_v46, %v362_v38  ;;  %v347_v54 = vadd.f32 %v346_v45, %v297_v44  ;;  %v488_v30 = vmul.f32 %v364_v46, %v364_v46 }
  0xd2   :  { %728 = vst [vmem:[%s963_s2 + $0x30] sm:$0xff] %v716_v50   ;;  %v481_v60 = vmul.f32 %v347_v54, %v347_v54  ;;  %v459_v2 = vadd.f32 %v458_v59, %v347_v54 }
  0xd4   :  { %v317_v61 = vpop.f32.mrf.mxu2  ;;  %v496_v4 = vadd.f32 %v495_v1, %v481_v60 }
  0xd5   :  { %v366_v62 = vpop.f32.mrf.mxu3 }
  0xd6   :  { %v299_v63 = vpop.f32.mrf.mxu0  ;;  %v367_v12 = vadd.f32 %v366_v62, %v317_v61 }
  0xd7   :  { %v348_v0 = vpop.f32.mrf.mxu1 }
  0xd8   :  { %v349_v3 = vadd.f32 %v348_v0, %v299_v63 }
  0xda   :  { %v701_v5 = vpack.c.bf16 %v349_v3, %v347_v54  ;;  %v460_v6 = vadd.f32 %v459_v2, %v349_v3  ;;  %v482_v7 = vmul.f32 %v349_v3, %v349_v3 }
  0xdc   :  { %725 = vst [vmem:[%s963_s2 + $0x18] sm:$0xff] %v701_v5   ;;  %v461_v10 = vadd.f32 %v460_v6, %v913_v9  ;;  %v497_v11 = vadd.f32 %v496_v4, %v482_v7  ;;  %v319_v17 = vpop.f32.mrf.mxu2  ;;  %v486_v9 = vmul.f32 %v927_v28, %v927_v28 }
  0xdd   :  { %v368_v18 = vpop.f32.mrf.mxu3 }
  0xde   :  { %v462_v15 = vadd.f32 %v461_v10, %v915_v14  ;;  %v498_v16 = vadd.f32 %v497_v11, %v483_v8  ;;  %v369_v19 = vadd.f32 %v368_v18, %v319_v17  ;;  %v487_v14 = vmul.f32 %v362_v38, %v362_v38 }
  0xe0   :  { %v463_v21 = vadd.f32 %v462_v15, %v925_v23  ;;  %v499_v22 = vadd.f32 %v498_v16, %v484_v13  ;;  %v721_v24 = vpack.c.bf16 %v369_v19, %v367_v12  ;;  %v489_v23 = vmul.f32 %v367_v12, %v367_v12 }
  0xe1   :  { %v490_v37 = vmul.f32 %v369_v19, %v369_v19 }
  0xe2   :  { %v500_v25 = vadd.f32 %v499_v22, %v485_v20  ;;  %v464_v26 = vadd.f32 %v463_v21, %v927_v28  ;;  %729 = vst [vmem:[%s963_s2 + $0x38] sm:$0xff] %v721_v24  }
  0xe4   :  { %v465_v27 = vadd.f32 %v464_v26, %v362_v38  ;;  %v501_v29 = vadd.f32 %v500_v25, %v486_v9 }
  0xe6   :  { %v466_v31 = vadd.f32 %v465_v27, %v364_v46  ;;  %v502_v32 = vadd.f32 %v501_v29, %v487_v14 }
  0xe8   :  { %v467_v33 = vadd.f32 %v466_v31, %v367_v12  ;;  %v503_v34 = vadd.f32 %v502_v32, %v488_v30 }
  0xea   :  { %v504_v35 = vadd.f32 %v503_v34, %v489_v23  ;;  %v468_v36 = vadd.f32 %v467_v33, %v369_v19 }
  0xec   :  { %v469_v39 = vrot.slane %v468_v36, 4  ;;  %v505_v40 = vadd.f32 %v504_v35, %v490_v37 }
  0xee   :  { %v470_v41 = vadd.f32 %v469_v39, %v468_v36  ;;  %v506_v28 = vrot.slane %v505_v40, 4 }
  0xf0   :  { %v471_v42 = vrot.slane %v470_v41, 2  ;;  %v507_v43 = vadd.f32 %v506_v28, %v505_v40 }
  0xf2   :  { %v472_v44 = vadd.f32 %v471_v42, %v470_v41  ;;  %v508_v45 = vrot.slane %v507_v43, 2 }
  0xf4   :  { %v473_v47 = vrot.slane %v472_v44, 1  ;;  %v509_v38 = vadd.f32 %v508_v45, %v507_v43 }
  0xf6   :  { %v510_v48 = vrot.slane %v509_v38, 1  ;;  %v474_v46 = vadd.f32 %v473_v47, %v472_v44 }
  0xf8   :  { %v511_v49 = vadd.f32 %v510_v48, %v509_v38 }
  0xfa   :  { %v513_v50 = vsel %vm512_vm0, %v474_v46, %v511_v49 }
  0xfb   :  { %514 = vst [vmem:[%s964_s3] sm:$0x3] %v513_v50 }

// kernel: disc_forward.7
= control target key start
LH: loop header
LB: loop body
LE: loop exit
PB: predicated region body
PF: predicated region fallthrough
CT: control target
= control target key end

     0   :  { %vm450_vm0 = vcmask 1040384   ;;  %s845_s1 = inlined_call_operand.vmem [shape: bf16[512,128], index: 1, kind: input, shape index: {}]   ;;  %s846_s0 = inlined_call_operand.vmem [shape: bf16[32,512], index: 0, kind: input, shape index: {}]   ;;  %s847_s2 = inlined_call_operand.vmem [shape: bf16[32,128], index: 2, kind: output, shape index: {0}]   ;;  %s848_s3 = inlined_call_operand.vmem [shape: f32[1,2,128], index: 3, kind: output, shape index: {1}]  }
   0x1   :  { %v636_v0 = vld [vmem:[%s845_s1 + $0x38] sm:$0xff]  ;;  %v635_v4 = vld [vmem:[%s845_s1 + $0x30] sm:$0xff]  ;;  %v634_v8 = vld [vmem:[%s845_s1 + $0x28] sm:$0xff] }
   0x2   :  { %v644_v1 = vld [vmem:[%s845_s1 + $0x78] sm:$0xff]  ;;  %329 = vmatpush.bf16.msra.mxu0 %v636_v0  ;;  %v643_v5 = vld [vmem:[%s845_s1 + $0x70] sm:$0xff]  ;;  %v642_v9 = vld [vmem:[%s845_s1 + $0x68] sm:$0xff] }
   0x3   :  { %v652_v2 = vld [vmem:[%s845_s1 + $0xb8] sm:$0xff]  ;;  %348 = vmatpush.bf16.msra.mxu1 %v644_v1  ;;  %v651_v6 = vld [vmem:[%s845_s1 + $0xb0] sm:$0xff]  ;;  %v650_v10 = vld [vmem:[%s845_s1 + $0xa8] sm:$0xff] }
   0x4   :  { %v660_v3 = vld [vmem:[%s845_s1 + $0xf8] sm:$0xff]  ;;  %367 = vmatpush.bf16.msra.mxu2 %v652_v2  ;;  %v659_v7 = vld [vmem:[%s845_s1 + $0xf0] sm:$0xff]  ;;  %v658_v11 = vld [vmem:[%s845_s1 + $0xe8] sm:$0xff] }
   0x5   :  { %386 = vmatpush.bf16.msra.mxu3 %v660_v3  ;;  %v633_v12 = vld [vmem:[%s845_s1 + $0x20] sm:$0xff]  ;;  %v632_v16 = vld [vmem:[%s845_s1 + $0x18] sm:$0xff]  ;;  %v631_v20 = vld [vmem:[%s845_s1 + $0x10] sm:$0xff] }
   0x6   :  { %330 = vmatpush.bf16.msra.mxu0 %v635_v4  ;;  %v641_v13 = vld [vmem:[%s845_s1 + $0x60] sm:$0xff]  ;;  %v640_v17 = vld [vmem:[%s845_s1 + $0x58] sm:$0xff]  ;;  %v639_v21 = vld [vmem:[%s845_s1 + $0x50] sm:$0xff] }
   0x7   :  { %349 = vmatpush.bf16.msra.mxu1 %v643_v5  ;;  %v649_v14 = vld [vmem:[%s845_s1 + $0xa0] sm:$0xff]  ;;  %v648_v18 = vld [vmem:[%s845_s1 + $0x98] sm:$0xff]  ;;  %v647_v22 = vld [vmem:[%s845_s1 + $0x90] sm:$0xff] }
   0x8   :  { %368 = vmatpush.bf16.msra.mxu2 %v651_v6  ;;  %v657_v15 = vld [vmem:[%s845_s1 + $0xe0] sm:$0xff]  ;;  %v656_v19 = vld [vmem:[%s845_s1 + $0xd8] sm:$0xff]  ;;  %v655_v23 = vld [vmem:[%s845_s1 + $0xd0] sm:$0xff] }
   0x9   :  { %387 = vmatpush.bf16.msra.mxu3 %v659_v7  ;;  %v630_v24 = vld [vmem:[%s845_s1 + $0x8] sm:$0xff]  ;;  %v629_v28 = vld [vmem:[%s845_s1] sm:$0xff]  ;;  %v623_v33 = vld [vmem:[%s846_s0 + $0xc] sm:$0xf0] }
   0xa   :  { %331 = vmatpush.bf16.msra.mxu0 %v634_v8  ;;  %v638_v25 = vld [vmem:[%s845_s1 + $0x48] sm:$0xff]  ;;  %v637_v29 = vld [vmem:[%s845_s1 + $0x40] sm:$0xff]  ;;  %v465_v35 = vld [vmem:[%s846_s0 + $0x10] sm:$0xf0] }
   0xb   :  { %350 = vmatpush.bf16.msra.mxu1 %v642_v9  ;;  %v646_v26 = vld [vmem:[%s845_s1 + $0x88] sm:$0xff]  ;;  %v645_v30 = vld [vmem:[%s845_s1 + $0x80] sm:$0xff]  ;;  %v624_v37 = vld [vmem:[%s846_s0 + $0x14] sm:$0xf0] }
   0xc   :  { %369 = vmatpush.bf16.msra.mxu2 %v650_v10  ;;  %v654_v27 = vld [vmem:[%s845_s1 + $0xc8] sm:$0xff]  ;;  %v653_v31 = vld [vmem:[%s845_s1 + $0xc0] sm:$0xff]  ;;  %v473_v39 = vld [vmem:[%s846_s0 + $0x18] sm:$0xf0] }
   0xd   :  { %388 = vmatpush.bf16.msra.mxu3 %v658_v11  ;;  %v463_v32 = vld [vmem:[%s846_s0] sm:$0xf]  ;;  %v621_v34 = vld [vmem:[%s846_s0 + $0x4] sm:$0xf]  ;;  %v471_v36 = vld [vmem:[%s846_s0 + $0x8] sm:$0xf] }
   0xe   :  { %332 = vmatpush.bf16.msra.mxu0 %v633_v12  ;;  %v622_v38 = vld [vmem:[%s846_s0 + $0xc] sm:$0xf]  ;;  %v464_v40 = vor.u32 %v623_v33, %v463_v32  ;;  %v468_v41 = vor.u32 %v621_v34, %v465_v35  ;;  %v472_v42 = vor.u32 %v624_v37, %v471_v36  ;;  %v479_v44 = vld [vmem:[%s846_s0 + $0x20] sm:$0xf]  ;;  %v627_v45 = vld [vmem:[%s846_s0 + $0x2c] sm:$0xf0] }
   0xf   :  { %351 = vmatpush.bf16.msra.mxu1 %v641_v13  ;;  %v476_v43 = vor.u32 %v622_v38, %v473_v39  ;;  %v625_v46 = vld [vmem:[%s846_s0 + $0x24] sm:$0xf]  ;;  %v481_v47 = vld [vmem:[%s846_s0 + $0x30] sm:$0xf0]  ;;  %v487_v48 = vld [vmem:[%s846_s0 + $0x28] sm:$0xf]  ;;  %v480_v52 = vor.u32 %v627_v45, %v479_v44 }
  0x10   :  { %370 = vmatpush.bf16.msra.mxu2 %v649_v14  ;;  %v628_v49 = vld [vmem:[%s846_s0 + $0x34] sm:$0xf0]  ;;  %v626_v50 = vld [vmem:[%s846_s0 + $0x2c] sm:$0xf]  ;;  %v489_v51 = vld [vmem:[%s846_s0 + $0x38] sm:$0xf0]  ;;  %v484_v53 = vor.u32 %v625_v46, %v481_v47 }
  0x11   :  { %389 = vmatpush.bf16.msra.mxu3 %v657_v15  ;;  %v488_v54 = vor.u32 %v628_v49, %v487_v48  ;;  %v492_v55 = vor.u32 %v626_v50, %v489_v51 }
  0x12   :  { %333 = vmatpush.bf16.msra.mxu0 %v632_v16 }
  0x13   :  { %352 = vmatpush.bf16.msra.mxu1 %v640_v17 }
  0x14   :  { %371 = vmatpush.bf16.msra.mxu2 %v648_v18 }
  0x15   :  { %390 = vmatpush.bf16.msra.mxu3 %v656_v19 }
  0x16   :  { %334 = vmatpush.bf16.msra.mxu0 %v631_v20 }
  0x17   :  { %353 = vmatpush.bf16.msra.mxu1 %v639_v21 }
  0x18   :  { %372 = vmatpush.bf16.msra.mxu2 %v647_v22 }
  0x19   :  { %391 = vmatpush.bf16.msra.mxu3 %v655_v23 }
  0x1a   :  { %335 = vmatpush.bf16.msra.mxu0 %v630_v24 }
  0x1b   :  { %354 = vmatpush.bf16.msra.mxu1 %v638_v25 }
  0x1c   :  { %373 = vmatpush.bf16.msra.mxu2 %v646_v26 }
  0x1d   :  { %392 = vmatpush.bf16.msra.mxu3 %v654_v27 }
  0x1e   :  { %336 = vmatpush.bf16.msra.mxu0 %v629_v28 }
  0x1f   :  { %355 = vmatpush.bf16.msra.mxu1 %v637_v29 }
  0x20   :  { %374 = vmatpush.bf16.msra.mxu2 %v645_v30 }
  0x21   :  { %393 = vmatpush.bf16.msra.mxu3 %v653_v31  ;;  %337 = vmatmul.bf16.vlgmr.msra.gmra.mxu0 %v464_v40 }
  0x22   :  { %356 = vmatmul.bf16.vlgmr.msra.gmra.mxu1 %v468_v41 }
  0x23   :  { %375 = vmatmul.bf16.vlgmr.msra.gmra.mxu2 %v472_v42 }
  0x24   :  { %394 = vmatmul.bf16.vlgmr.msra.gmra.mxu3 %v476_v43 }
  0x31   :  { %342 = vmatmul.bf16.gmra.mxu0 %v480_v52 }
  0x32   :  { %361 = vmatmul.bf16.gmra.mxu1 %v484_v53 }
  0x33   :  { %380 = vmatmul.bf16.gmra.mxu2 %v488_v54 }
  0x34   :  { %399 = vmatmul.bf16.gmra.mxu3 %v492_v55 }
  0x9e   :  { %v338_v56 = vpop.f32.mrf.mxu0 }
  0x9f   :  { %v357_v57 = vpop.f32.mrf.mxu1 }
  0xa0   :  { %v358_v62 = vadd.f32 %v357_v57, %v338_v56 }
  0xa6   :  { %v376_v58 = vpop.f32.mrf.mxu2  ;;  %v340_v60 = vpop.f32.mrf.mxu0 }
  0xa7   :  { %v395_v59 = vpop.f32.mrf.mxu3  ;;  %v359_v61 = vpop.f32.mrf.mxu1  ;;  %v377_v63 = vadd.f32 %v376_v58, %v358_v62 }
  0xa8   :  { %v360_v0 = vadd.f32 %v359_v61, %v340_v60 }
  0xa9   :  { %v396_v6 = vadd.f32 %v395_v59, %v377_v63 }
  0xab   :  { %v437_v19 = vmul.f32 %v396_v6, %v396_v6 }
  0xae   :  { %v378_v1 = vpop.f32.mrf.mxu2  ;;  %v343_v4 = vpop.f32.mrf.mxu0 }
  0xaf   :  { %v397_v2 = vpop.f32.mrf.mxu3  ;;  %v379_v3 = vadd.f32 %v378_v1, %v360_v0  ;;  %v362_v5 = vpop.f32.mrf.mxu1 }
  0xb0   :  { %v363_v9 = vadd.f32 %v362_v5, %v343_v4 }
  0xb1   :  { %v398_v7 = vadd.f32 %v397_v2, %v379_v3 }
  0xb3   :  { %v664_v8 = vpack.c.bf16 %v398_v7, %v396_v6  ;;  %v438_v16 = vmul.f32 %v398_v7, %v398_v7  ;;  %v428_v20 = vadd.f32 %v398_v7, %v396_v6 }
  0xb5   :  { %665 = vst [vmem:[%s847_s2] sm:$0xff] %v664_v8   ;;  %v441_v24 = vadd.f32 %v438_v16, %v437_v19 }
  0xb6   :  { %v381_v10 = vpop.f32.mrf.mxu2  ;;  %v345_v13 = vpop.f32.mrf.mxu0 }
  0xb7   :  { %v400_v11 = vpop.f32.mrf.mxu3  ;;  %v382_v12 = vadd.f32 %v381_v10, %v363_v9  ;;  %v364_v14 = vpop.f32.mrf.mxu1 }
  0xb8   :  { %v365_v17 = vadd.f32 %v364_v14, %v345_v13 }
  0xb9   :  { %v401_v15 = vadd.f32 %v400_v11, %v382_v12 }
  0xbb   :  { %v439_v21 = vmul.f32 %v401_v15, %v401_v15  ;;  %v429_v25 = vadd.f32 %v428_v20, %v401_v15 }
  0xbd   :  { %v442_v27 = vadd.f32 %v441_v24, %v439_v21 }
  0xbe   :  { %v383_v18 = vpop.f32.mrf.mxu2 }
  0xbf   :  { %v384_v22 = vadd.f32 %v383_v18, %v365_v17  ;;  %v402_v23 = vpop.f32.mrf.mxu3 }
  0xc1   :  { %v403_v26 = vadd.f32 %v402_v23, %v384_v22 }
  0xc3   :  { %v669_v28 = vpack.c.bf16 %v403_v26, %v401_v15  ;;  %v430_v29 = vadd.f32 %v429_v25, %v403_v26  ;;  %v440_v30 = vmul.f32 %v403_v26, %v403_v26 }
  0xc5   :  { %671 = vst [vmem:[%s847_s2 + $0x8] sm:$0xff] %v669_v28   ;;  %v431_v31 = vrot.slane %v430_v29, 4  ;;  %v443_v32 = vadd.f32 %v442_v27, %v440_v30 }
  0xc7   :  { %v432_v33 = vadd.f32 %v431_v31, %v430_v29  ;;  %v444_v34 = vrot.slane %v443_v32, 4 }
  0xc9   :  { %v433_v35 = vrot.slane %v432_v33, 2  ;;  %v445_v36 = vadd.f32 %v444_v34, %v443_v32 }
  0xcb   :  { %v434_v37 = vadd.f32 %v433_v35, %v432_v33  ;;  %v446_v38 = vrot.slane %v445_v36, 2 }
  0xcd   :  { %v435_v39 = vrot.slane %v434_v37, 1  ;;  %v447_v40 = vadd.f32 %v446_v38, %v445_v36 }
  0xcf   :  { %v448_v41 = vrot.slane %v447_v40, 1  ;;  %v436_v42 = vadd.f32 %v435_v39, %v434_v37 }
  0xd1   :  { %v449_v43 = vadd.f32 %v448_v41, %v447_v40 }
  0xd3   :  { %v451_v44 = vsel %vm450_vm0, %v436_v42, %v449_v43 }
  0xd4   :  { %452 = vst [vmem:[%s848_s3] sm:$0x3] %v451_v44 }

</bundles_post_ra>
